<compile_context>
chip_gen: v7x
topology: tpu7x:2x2x1
jax: 0.10.0
libtpu: 0.0.40
codegen_flags: <defaults>
</compile_context>

<pallas_src>
import functools

import jax
import jax.numpy as jnp
from jax import lax
from jax.experimental import pallas as pl
from jax.experimental.pallas import tpu as pltpu

IGNORE_INDEX = -100


def _layer_norm(x, g, b, eps=1e-5):
    mu = jnp.mean(x, axis=-1, keepdims=True)
    xc = x - mu
    var = jnp.mean(xc * xc, axis=-1, keepdims=True)
    return xc * lax.rsqrt(var + eps) * g + b


def _gelu_new(x):
    # GPT-2 "gelu_new" (tanh approximation), f32 math
    return 0.5 * x * (1.0 + jnp.tanh(0.7978845608028654 * (x + 0.044715 * x * x * x)))


def gpt2_prefix_kernel(*refs, n_layer, n_head, seq_total, batch_tile, with_logits):
    (x_ref, mask_ref, lab_ref, wte_t_ref,
     ln1g_ref, ln1b_ref, wqkv_ref, bqkv_ref, wo_ref, bo_ref,
     ln2g_ref, ln2b_ref, wfc_ref, bfc_ref, wpr_ref, bpr_ref,
     lnfg_ref, lnfb_ref, *rest) = refs
    if with_logits:
        logits_ref, lsum_ref, lcnt_ref = rest
    else:
        logits_ref = None
        lsum_ref, lcnt_ref = rest

    Bt = batch_tile
    T = seq_total                       # padded (multiple of 8) total length
    N = Bt * T
    H = n_head
    f32 = jnp.float32
    bf16 = jnp.bfloat16

    x3 = x_ref[...]                     # (Bt, T, D) assembled embeddings (+wpe)
    D = x3.shape[-1]
    hd = D // H
    x = x3.reshape(N, D)                # T % 8 == 0 -> clean reshape

    # additive attention bias, built once and reused across layers/heads:
    # causal part from iota compares, padding part from the (Bt, T) key mask.
    rowi = lax.broadcasted_iota(jnp.int32, (T, T), 0)
    coli = lax.broadcasted_iota(jnp.int32, (T, T), 1)
    causal_ok = coli <= rowi                                   # (T, T)
    key_ok = mask_ref[0] > 0.5                                 # (Bt, T)
    allowed = jnp.logical_and(causal_ok[None, :, :], key_ok[:, None, :])
    bias = jnp.where(allowed, 0.0, -1e30).astype(f32)          # (Bt, T, T)

    scale = 1.0 / float(hd) ** 0.5

    # ---- transformer blocks --------------------------------------------------
    for l in range(n_layer):
        # attention
        h1 = _layer_norm(x, ln1g_ref[l], ln1b_ref[l]).astype(bf16)
        # fused c_attn: one (N, D) x (D, 3D) matmul, f32 accumulation
        qkv = jnp.dot(h1, wqkv_ref[l], preferred_element_type=f32) + bqkv_ref[l]
        heads = []
        for hh in range(H):
            lo = hh * hd
            qh = qkv[:, 0 * D + lo:0 * D + lo + hd].astype(bf16).reshape(Bt, T, hd)
            kh = qkv[:, 1 * D + lo:1 * D + lo + hd].astype(bf16).reshape(Bt, T, hd)
            vh = qkv[:, 2 * D + lo:2 * D + lo + hd].astype(bf16).reshape(Bt, T, hd)
            # per-batch-row attention (no cross-batch blocks)
            s = jnp.einsum("bqd,bkd->bqk", qh, kh,
                           preferred_element_type=f32) * scale + bias  # (Bt,T,T)
            m = jnp.max(s, axis=-1, keepdims=True)
            e = jnp.exp(s - m)
            p = e * pl.reciprocal(jnp.sum(e, axis=-1, keepdims=True), approx=True)
            ctx = jnp.einsum("bqk,bkd->bqd", p.astype(bf16), vh,
                             preferred_element_type=f32)               # (Bt,T,hd)
            heads.append(ctx.reshape(N, hd))
        # c_proj as one concat(N, D) x (D, D) matmul
        merged = jnp.concatenate(heads, axis=-1).astype(bf16)          # (N, D)
        attn = jnp.dot(merged, wo_ref[l], preferred_element_type=f32) + bo_ref[l]
        x = x + attn

        # MLP
        h2 = _layer_norm(x, ln2g_ref[l], ln2b_ref[l])
        m1 = jnp.dot(h2.astype(bf16), wfc_ref[l],
                     preferred_element_type=f32) + bfc_ref[l]          # (N, 4D)
        m2 = jnp.dot(_gelu_new(m1).astype(bf16), wpr_ref[l],
                     preferred_element_type=f32) + bpr_ref[l]          # (N, D)
        x = x + m2

    # ---- final LN + tied lm_head (wte pre-transposed to (D, V)) --------------
    xn = _layer_norm(x, lnfg_ref[...], lnfb_ref[...])
    logits = jnp.dot(xn.astype(bf16), wte_t_ref[...],
                     preferred_element_type=f32)                       # (N, V)
    V = logits.shape[-1]
    if with_logits:
        logits_ref[...] = logits.reshape(Bt, T, V)

    # ---- cross-entropy; labels are already shifted (+ -100 ignore/pad) -------
    lab = lab_ref[0]                                # (N, 1) int32
    valid = lab != IGNORE_INDEX
    iota_v = lax.broadcasted_iota(jnp.int32, (N, V), 1)
    onehot = iota_v == lab
    mx = jnp.max(logits, axis=-1, keepdims=True)
    lse = mx + jnp.log(jnp.sum(jnp.exp(logits - mx), axis=-1, keepdims=True))
    picked = jnp.sum(jnp.where(onehot, logits, 0.0), axis=-1, keepdims=True)
    tok_loss = jnp.where(valid, lse - picked, 0.0)
    lsum_ref[...] = jnp.broadcast_to(jnp.sum(tok_loss), lsum_ref.shape)
    lcnt_ref[...] = jnp.broadcast_to(jnp.sum(valid.astype(f32)), lcnt_ref.shape)


def _full_spec(shape):
    nd = len(shape)
    return pl.BlockSpec(shape, lambda g, _nd=nd: (0,) * _nd)


def init_params(key, *, vocab, n_pos, n_embd, n_layer, image_dim, context_dim):
    D = n_embd
    ks = jax.random.split(key, 8)
    std = 0.02

    def nrm(k, shape, s=std):
        return (s * jax.random.normal(k, shape)).astype(jnp.float32)

    return dict(
        wte=nrm(ks[0], (vocab, D)),
        wpe=nrm(ks[1], (n_pos, D), 0.01),
        wimg=nrm(ks[2], (image_dim, D)),
        bimg=jnp.zeros((1, D), jnp.float32),
        wctx=nrm(ks[3], (context_dim, D)),
        bctx=jnp.zeros((1, D), jnp.float32),
        ln1g=jnp.ones((n_layer, 1, D), jnp.float32),
        ln1b=jnp.zeros((n_layer, 1, D), jnp.float32),
        wqkv=nrm(ks[4], (n_layer, D, 3 * D)),
        bqkv=jnp.zeros((n_layer, 3 * D), jnp.float32),
        wo=nrm(ks[5], (n_layer, D, D)),
        bo=jnp.zeros((n_layer, 1, D), jnp.float32),
        ln2g=jnp.ones((n_layer, 1, D), jnp.float32),
        ln2b=jnp.zeros((n_layer, 1, D), jnp.float32),
        wfc=nrm(ks[6], (n_layer, D, 4 * D)),
        bfc=jnp.zeros((n_layer, 1, 4 * D), jnp.float32),
        wpr=nrm(ks[7], (n_layer, 4 * D, D)),
        bpr=jnp.zeros((n_layer, 1, D), jnp.float32),
        lnfg=jnp.ones((1, D), jnp.float32),
        lnfb=jnp.zeros((1, D), jnp.float32),
    )


def gpt2_prefix_caption_forward(params, image_feat, context_embed, input_ids,
                                attention_mask, labels=None, *,
                                prefix_len=2, n_head=2, n_layer=2,
                                batch_tile=None, return_logits=True):
    # The module builds exactly [image_prefix, context_prefix] -> 2 prefix rows.
    assert prefix_len == 2, "GPT2PrefixCaptionModel always has a 2-row prefix"

    B, S = input_ids.shape
    V, D = params["wte"].shape
    T = prefix_len + S
    Tp = ((T + 7) // 8) * 8          # pad so per-batch rows sit on 8-sublane bounds
    L, H = n_layer, n_head
    f32, bf16 = jnp.float32, jnp.bfloat16
    assert params["wpe"].shape[0] >= T

    # batch tile: keep >= 2 grid steps so the "parallel" batch axis can split
    # across v7x's two TensorCores; on single-TC v5e/v6e pass batch_tile=B
    # explicitly to minimize serial grid-step overhead.
    if batch_tile is None:
        if B >= 2:
            batch_tile = max(d for d in range(1, B // 2 + 1) if B % d == 0)
        else:
            batch_tile = B
    assert B % batch_tile == 0
    Bt = batch_tile
    G = B // Bt
    N = Bt * Tp

    # ---- prefix assembly / wpe / masks / labels: plain-XLA glue --------------
    img_prefix = image_feat.astype(f32) @ params["wimg"] + params["bimg"]   # (B, D)
    ctx_prefix = context_embed.astype(f32) @ params["wctx"] + params["bctx"]
    tok_embeds = jnp.take(params["wte"], input_ids, axis=0)                 # (B, S, D)
    x_full = jnp.concatenate(
        [img_prefix[:, None, :], ctx_prefix[:, None, :], tok_embeds], axis=1)  # (B, T, D)
    x_full = x_full + params["wpe"][:T][None, :, :]
    x_in = jnp.pad(x_full, ((0, 0), (0, Tp - T), (0, 0)))                   # (B, Tp, D)

    prefix_mask = jnp.ones((B, prefix_len), f32)
    full_mask = jnp.concatenate([prefix_mask, attention_mask.astype(f32)], axis=1)
    mask_in = jnp.pad(full_mask, ((0, 0), (0, Tp - T))).reshape(G, Bt, Tp)

    # labels: -100 prefix, then SHIFT by one here (kernel sees next-token targets),
    # padded positions also -100.
    if labels is None:
        labels_full = jnp.full((B, T), IGNORE_INDEX, jnp.int32)
    else:
        ignore_prefix = jnp.full((B, prefix_len), IGNORE_INDEX, jnp.int32)
        labels_full = jnp.concatenate([ignore_prefix, labels.astype(jnp.int32)], axis=1)
    lab_shift = jnp.concatenate(
        [labels_full[:, 1:], jnp.full((B, 1), IGNORE_INDEX, jnp.int32)], axis=1)
    lab_in = jnp.pad(lab_shift, ((0, 0), (0, Tp - T)),
                     constant_values=IGNORE_INDEX).reshape(G, N, 1)

    # ---- parameter repacking (one-time, XLA side) -----------------------------
    pvals = [
        params["wte"].T.astype(bf16),                 # (D, V) pre-transposed lm_head
        params["ln1g"], params["ln1b"],
        params["wqkv"].astype(bf16),                  # (L, D, 3D) fused c_attn
        params["bqkv"].reshape(L, 1, 3 * D),
        params["wo"].astype(bf16), params["bo"],
        params["ln2g"], params["ln2b"],
        params["wfc"].astype(bf16), params["bfc"],
        params["wpr"].astype(bf16), params["bpr"],
        params["lnfg"], params["lnfb"],
    ]

    in_specs = [
        pl.BlockSpec((Bt, Tp, D), lambda g: (g, 0, 0)),   # assembled activations
        pl.BlockSpec((1, Bt, Tp), lambda g: (g, 0, 0)),   # key padding mask
        pl.BlockSpec((1, N, 1), lambda g: (g, 0, 0)),     # pre-shifted labels
    ] + [_full_spec(p.shape) for p in pvals]

    out_shapes, out_specs = [], []
    if return_logits:
        out_shapes.append(jax.ShapeDtypeStruct((B, Tp, V), jnp.float32))
        out_specs.append(pl.BlockSpec((Bt, Tp, V), lambda g: (g, 0, 0)))
    out_shapes += [jax.ShapeDtypeStruct((G, 1, 128), jnp.float32),
                   jax.ShapeDtypeStruct((G, 1, 128), jnp.float32)]
    out_specs += [pl.BlockSpec((1, 1, 128), lambda g: (g, 0, 0)),
                  pl.BlockSpec((1, 1, 128), lambda g: (g, 0, 0))]

    kernel = functools.partial(
        gpt2_prefix_kernel, n_layer=L, n_head=H, seq_total=Tp,
        batch_tile=Bt, with_logits=return_logits)

    outs = pl.pallas_call(
        kernel,
        out_shape=tuple(out_shapes),
        grid_spec=pltpu.PrefetchScalarGridSpec(
            num_scalar_prefetch=0,
            grid=(G,),
            in_specs=in_specs,
            out_specs=tuple(out_specs),
        ),
        compiler_params=pltpu.CompilerParams(
            dimension_semantics=("parallel",)),
    )(x_in, mask_in, lab_in, *pvals)

    if return_logits:
        logits_p, lsum, lcnt = outs
        logits = logits_p[:, :T, :]                   # drop padded positions
    else:
        lsum, lcnt = outs
        logits = None

    loss = None
    if labels is not None:
        total = jnp.sum(lsum[:, 0, 0])
        cnt = jnp.sum(lcnt[:, 0, 0])
        loss = jnp.where(cnt > 0, total / jnp.maximum(cnt, 1.0), 0.0)
    return {"loss": loss, "logits": logits}


if __name__ == "__main__":
    # small shapes consistent with the module's forward
    B, S, P = 4, 8, 2            # batch, caption length, prefix_len
    D, V, L, H = 64, 128, 2, 2   # n_embd, vocab, n_layer, n_head
    Di, Dc = 96, 48              # image_dim, context_dim
    n_pos = 32

    key = jax.random.PRNGKey(0)
    kp, k1, k2, k3 = jax.random.split(key, 4)
    params = init_params(kp, vocab=V, n_pos=n_pos, n_embd=D, n_layer=L,
                         image_dim=Di, context_dim=Dc)

    image_feat = jax.random.normal(k1, (B, Di), jnp.float32)
    context_embed = jax.random.normal(k2, (B, Dc), jnp.float32)
    input_ids = jax.random.randint(k3, (B, S), 0, V, dtype=jnp.int32)
    attention_mask = jnp.ones((B, S), jnp.int32).at[1, 6:].set(0).at[3, 5:].set(0)
    labels = jnp.where(attention_mask == 1, input_ids, IGNORE_INDEX).astype(jnp.int32)

    # full forward (logits + loss)
    out = gpt2_prefix_caption_forward(
        params, image_feat, context_embed, input_ids, attention_mask, labels,
        prefix_len=P, n_head=H, n_layer=L)
    jax.block_until_ready(out["logits"])
    jax.block_until_ready(out["loss"])

    # loss-only fast path (skips the (B, T, V) logits writeback)
    out2 = gpt2_prefix_caption_forward(
        params, image_feat, context_embed, input_ids, attention_mask, labels,
        prefix_len=P, n_head=H, n_layer=L, return_logits=False)
    jax.block_until_ready(out2["loss"])

    assert jnp.isfinite(out["loss"]) and jnp.isfinite(out2["loss"])
    assert jnp.allclose(out["loss"], out2["loss"], rtol=1e-3, atol=1e-4)

    print("KERNEL_OK")
</pallas_src>

<mosaic_0001>
module attributes {stable_mosaic.version = 11 : i64} {
  func.func @gpt2_prefix_kernel(%arg0: i32, %arg1: memref<2x16x64xf32, #tpu.memory_space<vmem>>, %arg2: memref<1x2x16xf32, #tpu.memory_space<vmem>>, %arg3: memref<1x32x1xi32, #tpu.memory_space<vmem>>, %arg4: memref<64x128xbf16, #tpu.memory_space<vmem>>, %arg5: memref<2x1x64xf32, #tpu.memory_space<vmem>>, %arg6: memref<2x1x64xf32, #tpu.memory_space<vmem>>, %arg7: memref<2x64x192xbf16, #tpu.memory_space<vmem>>, %arg8: memref<2x1x192xf32, #tpu.memory_space<vmem>>, %arg9: memref<2x64x64xbf16, #tpu.memory_space<vmem>>, %arg10: memref<2x1x64xf32, #tpu.memory_space<vmem>>, %arg11: memref<2x1x64xf32, #tpu.memory_space<vmem>>, %arg12: memref<2x1x64xf32, #tpu.memory_space<vmem>>, %arg13: memref<2x64x256xbf16, #tpu.memory_space<vmem>>, %arg14: memref<2x1x256xf32, #tpu.memory_space<vmem>>, %arg15: memref<2x256x64xbf16, #tpu.memory_space<vmem>>, %arg16: memref<2x1x64xf32, #tpu.memory_space<vmem>>, %arg17: memref<1x64xf32, #tpu.memory_space<vmem>>, %arg18: memref<1x64xf32, #tpu.memory_space<vmem>>, %arg19: memref<2x16x128xf32, #tpu.memory_space<vmem>>, %arg20: memref<1x1x128xf32, #tpu.memory_space<vmem>>, %arg21: memref<1x1x128xf32, #tpu.memory_space<vmem>>) attributes {dimension_semantics = [#tpu.dimension_semantics<parallel>], iteration_bounds = array<i64: 2>, scalar_prefetch = 0 : i64, scratch_operands = 0 : i64, tpu.core_type = #tpu.core_type<tc>, window_params = [{transform_indices = @transform_0, window_bounds = array<i64: 2, 16, 64>}, {transform_indices = @transform_1, window_bounds = array<i64: 1, 2, 16>}, {transform_indices = @transform_2, window_bounds = array<i64: 1, 32, 1>}, {pipeline_mode = #tpu.pipeline_mode<synchronous>, transform_indices = @transform_3, window_bounds = array<i64: 64, 128>}, {pipeline_mode = #tpu.pipeline_mode<synchronous>, transform_indices = @transform_4, window_bounds = array<i64: 2, 1, 64>}, {pipeline_mode = #tpu.pipeline_mode<synchronous>, transform_indices = @transform_5, window_bounds = array<i64: 2, 1, 64>}, {pipeline_mode = #tpu.pipeline_mode<synchronous>, transform_indices = @transform_6, window_bounds = array<i64: 2, 64, 192>}, {pipeline_mode = #tpu.pipeline_mode<synchronous>, transform_indices = @transform_7, window_bounds = array<i64: 2, 1, 192>}, {pipeline_mode = #tpu.pipeline_mode<synchronous>, transform_indices = @transform_8, window_bounds = array<i64: 2, 64, 64>}, {pipeline_mode = #tpu.pipeline_mode<synchronous>, transform_indices = @transform_9, window_bounds = array<i64: 2, 1, 64>}, {pipeline_mode = #tpu.pipeline_mode<synchronous>, transform_indices = @transform_10, window_bounds = array<i64: 2, 1, 64>}, {pipeline_mode = #tpu.pipeline_mode<synchronous>, transform_indices = @transform_11, window_bounds = array<i64: 2, 1, 64>}, {pipeline_mode = #tpu.pipeline_mode<synchronous>, transform_indices = @transform_12, window_bounds = array<i64: 2, 64, 256>}, {pipeline_mode = #tpu.pipeline_mode<synchronous>, transform_indices = @transform_13, window_bounds = array<i64: 2, 1, 256>}, {pipeline_mode = #tpu.pipeline_mode<synchronous>, transform_indices = @transform_14, window_bounds = array<i64: 2, 256, 64>}, {pipeline_mode = #tpu.pipeline_mode<synchronous>, transform_indices = @transform_15, window_bounds = array<i64: 2, 1, 64>}, {pipeline_mode = #tpu.pipeline_mode<synchronous>, transform_indices = @transform_16, window_bounds = array<i64: 1, 64>}, {pipeline_mode = #tpu.pipeline_mode<synchronous>, transform_indices = @transform_17, window_bounds = array<i64: 1, 64>}, {transform_indices = @transform_18, window_bounds = array<i64: 2, 16, 128>}, {transform_indices = @transform_19, window_bounds = array<i64: 1, 1, 128>}, {transform_indices = @transform_20, window_bounds = array<i64: 1, 1, 128>}]} {
    %c0 = arith.constant 0 : index
    %c0_0 = arith.constant 0 : index
    %c0_1 = arith.constant 0 : index
    %0 = vector.load %arg1[%c0, %c0_0, %c0_1] : memref<2x16x64xf32, #tpu.memory_space<vmem>>, vector<2x16x64xf32>
    %1 = vector.shape_cast %0 : vector<2x16x64xf32> to vector<32x64xf32>
    %2 = tpu.iota {dimensions = array<i32: 0>} : vector<16x16xi32>
    %3 = tpu.iota {dimensions = array<i32: 1>} : vector<16x16xi32>
    %4 = arith.cmpi sle, %3, %2 : vector<16x16xi32>
    %c0_2 = arith.constant 0 : index
    %c0_3 = arith.constant 0 : index
    %c0_4 = arith.constant 0 : index
    %5 = vector.load %arg2[%c0_2, %c0_3, %c0_4] : memref<1x2x16xf32, #tpu.memory_space<vmem>>, vector<1x2x16xf32>
    %6 = vector.shape_cast %5 : vector<1x2x16xf32> to vector<2x16xf32>
    %cst = arith.constant 5.000000e-01 : f32
    %7 = vector.broadcast %cst : f32 to vector<2x16xf32>
    %8 = arith.cmpf ogt, %6, %7 : vector<2x16xf32>
    %9 = vector.shape_cast %4 : vector<16x16xi1> to vector<1x16x16xi1>
    %10 = vector.shape_cast %8 : vector<2x16xi1> to vector<2x1x16xi1>
    %11 = vector.broadcast %9 : vector<1x16x16xi1> to vector<2x16x16xi1>
    %12 = vector.broadcast %10 : vector<2x1x16xi1> to vector<2x16x16xi1>
    %13 = arith.andi %11, %12 : vector<2x16x16xi1>
    %cst_5 = arith.constant 0.000000e+00 : f32
    %cst_6 = arith.constant -1.000000e+30 : f32
    %14 = vector.broadcast %cst_5 : f32 to vector<2x16x16xf32>
    %15 = vector.broadcast %cst_6 : f32 to vector<2x16x16xf32>
    %16 = arith.select %13, %14, %15 : vector<2x16x16xi1>, vector<2x16x16xf32>
    %c0_7 = arith.constant 0 : index
    %c0_8 = arith.constant 0 : index
    %c0_9 = arith.constant 0 : index
    %17 = vector.load %arg5[%c0_7, %c0_8, %c0_9] : memref<2x1x64xf32, #tpu.memory_space<vmem>>, vector<1x1x64xf32>
    %18 = vector.shape_cast %17 : vector<1x1x64xf32> to vector<1x64xf32>
    %c0_10 = arith.constant 0 : index
    %c0_11 = arith.constant 0 : index
    %c0_12 = arith.constant 0 : index
    %19 = vector.load %arg6[%c0_10, %c0_11, %c0_12] : memref<2x1x64xf32, #tpu.memory_space<vmem>>, vector<1x1x64xf32>
    %20 = vector.shape_cast %19 : vector<1x1x64xf32> to vector<1x64xf32>
    %cst_13 = arith.constant dense<0.000000e+00> : vector<32xf32>
    %21 = vector.multi_reduction <add>, %1, %cst_13 [1] : vector<32x64xf32> to vector<32xf32>
    %22 = vector.shape_cast %21 : vector<32xf32> to vector<32x1xf32>
    %cst_14 = arith.constant 6.400000e+01 : f32
    %23 = vector.broadcast %cst_14 : f32 to vector<32x1xf32>
    %24 = arith.divf %22, %23 : vector<32x1xf32>
    %25 = vector.broadcast %24 : vector<32x1xf32> to vector<32x64xf32>
    %26 = arith.subf %1, %25 : vector<32x64xf32>
    %27 = arith.mulf %26, %26 : vector<32x64xf32>
    %cst_15 = arith.constant dense<0.000000e+00> : vector<32xf32>
    %28 = vector.multi_reduction <add>, %27, %cst_15 [1] : vector<32x64xf32> to vector<32xf32>
    %29 = vector.shape_cast %28 : vector<32xf32> to vector<32x1xf32>
    %cst_16 = arith.constant 6.400000e+01 : f32
    %30 = vector.broadcast %cst_16 : f32 to vector<32x1xf32>
    %31 = arith.divf %29, %30 : vector<32x1xf32>
    %cst_17 = arith.constant 9.99999974E-6 : f32
    %32 = vector.broadcast %cst_17 : f32 to vector<32x1xf32>
    %33 = arith.addf %31, %32 : vector<32x1xf32>
    %34 = math.rsqrt %33 : vector<32x1xf32>
    %35 = vector.broadcast %34 : vector<32x1xf32> to vector<32x64xf32>
    %36 = arith.mulf %26, %35 : vector<32x64xf32>
    %37 = vector.broadcast %18 : vector<1x64xf32> to vector<32x64xf32>
    %38 = arith.mulf %36, %37 : vector<32x64xf32>
    %39 = vector.broadcast %20 : vector<1x64xf32> to vector<32x64xf32>
    %40 = arith.addf %38, %39 : vector<32x64xf32>
    %41 = arith.truncf %40 : vector<32x64xf32> to vector<32x64xbf16>
    %c0_18 = arith.constant 0 : index
    %c0_19 = arith.constant 0 : index
    %c0_20 = arith.constant 0 : index
    %42 = vector.load %arg7[%c0_18, %c0_19, %c0_20] : memref<2x64x192xbf16, #tpu.memory_space<vmem>>, vector<1x64x192xbf16>
    %43 = vector.shape_cast %42 : vector<1x64x192xbf16> to vector<64x192xbf16>
    %cst_21 = arith.constant dense<0.000000e+00> : vector<32x192xf32>
    %44 = tpu.matmul %41, %43, %cst_21 {dimension_numbers = #tpu.dot_dimension_numbers<[1], [0], [0], [1], [0, 0, 1, 1], [], []>} : vector<32x64xbf16>, vector<64x192xbf16>, vector<32x192xf32> -> vector<32x192xf32>
    %c0_22 = arith.constant 0 : index
    %c0_23 = arith.constant 0 : index
    %c0_24 = arith.constant 0 : index
    %45 = vector.load %arg8[%c0_22, %c0_23, %c0_24] : memref<2x1x192xf32, #tpu.memory_space<vmem>>, vector<1x1x192xf32>
    %46 = vector.shape_cast %45 : vector<1x1x192xf32> to vector<1x192xf32>
    %47 = vector.broadcast %46 : vector<1x192xf32> to vector<32x192xf32>
    %48 = arith.addf %44, %47 : vector<32x192xf32>
    %49 = vector.extract_strided_slice %48 {offsets = [0, 0], sizes = [32, 32], strides = [1, 1]} : vector<32x192xf32> to vector<32x32xf32>
    %50 = arith.truncf %49 : vector<32x32xf32> to vector<32x32xbf16>
    %51 = vector.shape_cast %50 : vector<32x32xbf16> to vector<2x16x32xbf16>
    %52 = vector.extract_strided_slice %48 {offsets = [0, 64], sizes = [32, 32], strides = [1, 1]} : vector<32x192xf32> to vector<32x32xf32>
    %53 = arith.truncf %52 : vector<32x32xf32> to vector<32x32xbf16>
    %54 = vector.shape_cast %53 : vector<32x32xbf16> to vector<2x16x32xbf16>
    %55 = vector.extract_strided_slice %48 {offsets = [0, 128], sizes = [32, 32], strides = [1, 1]} : vector<32x192xf32> to vector<32x32xf32>
    %56 = arith.truncf %55 : vector<32x32xf32> to vector<32x32xbf16>
    %57 = vector.shape_cast %56 : vector<32x32xbf16> to vector<2x16x32xbf16>
    "tpu.trace_start"() <{level = 10 : i32, message = "bqd,bkd->bqk"}> : () -> ()
    %cst_25 = arith.constant dense<0.000000e+00> : vector<2x16x16xf32>
    %58 = tpu.matmul %51, %54, %cst_25 {dimension_numbers = #tpu.dot_dimension_numbers<[2], [2], [1], [1], [0, 0, 0, 1, 1, 1], [0], [0]>} : vector<2x16x32xbf16>, vector<2x16x32xbf16>, vector<2x16x16xf32> -> vector<2x16x16xf32>
    "tpu.trace_stop"() : () -> ()
    %cst_26 = arith.constant 0.176776692 : f32
    %59 = vector.broadcast %cst_26 : f32 to vector<2x16x16xf32>
    %60 = arith.mulf %58, %59 : vector<2x16x16xf32>
    %61 = arith.addf %60, %16 : vector<2x16x16xf32>
    %cst_27 = arith.constant dense<0xFF800000> : vector<2x16xf32>
    %62 = vector.multi_reduction <maximumf>, %61, %cst_27 [2] : vector<2x16x16xf32> to vector<2x16xf32>
    %63 = vector.shape_cast %62 : vector<2x16xf32> to vector<2x16x1xf32>
    %64 = vector.broadcast %63 : vector<2x16x1xf32> to vector<2x16x16xf32>
    %65 = arith.subf %61, %64 : vector<2x16x16xf32>
    %66 = math.exp %65 : vector<2x16x16xf32>
    %cst_28 = arith.constant dense<0.000000e+00> : vector<2x16xf32>
    %67 = vector.multi_reduction <add>, %66, %cst_28 [2] : vector<2x16x16xf32> to vector<2x16xf32>
    %68 = vector.shape_cast %67 : vector<2x16xf32> to vector<2x16x1xf32>
    %69 = tpu.reciprocal %68 {approx = true} : vector<2x16x1xf32> -> vector<2x16x1xf32>
    %70 = vector.broadcast %69 : vector<2x16x1xf32> to vector<2x16x16xf32>
    %71 = arith.mulf %66, %70 : vector<2x16x16xf32>
    %72 = arith.truncf %71 : vector<2x16x16xf32> to vector<2x16x16xbf16>
    "tpu.trace_start"() <{level = 10 : i32, message = "bqk,bkd->bqd"}> : () -> ()
    %cst_29 = arith.constant dense<0.000000e+00> : vector<2x16x32xf32>
    %73 = tpu.matmul %72, %57, %cst_29 {dimension_numbers = #tpu.dot_dimension_numbers<[2], [1], [1], [2], [0, 0, 0, 1, 1, 2], [0], [0]>} : vector<2x16x16xbf16>, vector<2x16x32xbf16>, vector<2x16x32xf32> -> vector<2x16x32xf32>
    "tpu.trace_stop"() : () -> ()
    %74 = vector.shape_cast %73 : vector<2x16x32xf32> to vector<32x32xf32>
    %75 = vector.extract_strided_slice %48 {offsets = [0, 32], sizes = [32, 32], strides = [1, 1]} : vector<32x192xf32> to vector<32x32xf32>
    %76 = arith.truncf %75 : vector<32x32xf32> to vector<32x32xbf16>
    %77 = vector.shape_cast %76 : vector<32x32xbf16> to vector<2x16x32xbf16>
    %78 = vector.extract_strided_slice %48 {offsets = [0, 96], sizes = [32, 32], strides = [1, 1]} : vector<32x192xf32> to vector<32x32xf32>
    %79 = arith.truncf %78 : vector<32x32xf32> to vector<32x32xbf16>
    %80 = vector.shape_cast %79 : vector<32x32xbf16> to vector<2x16x32xbf16>
    %81 = vector.extract_strided_slice %48 {offsets = [0, 160], sizes = [32, 32], strides = [1, 1]} : vector<32x192xf32> to vector<32x32xf32>
    %82 = arith.truncf %81 : vector<32x32xf32> to vector<32x32xbf16>
    %83 = vector.shape_cast %82 : vector<32x32xbf16> to vector<2x16x32xbf16>
    "tpu.trace_start"() <{level = 10 : i32, message = "bqd,bkd->bqk"}> : () -> ()
    %cst_30 = arith.constant dense<0.000000e+00> : vector<2x16x16xf32>
    %84 = tpu.matmul %77, %80, %cst_30 {dimension_numbers = #tpu.dot_dimension_numbers<[2], [2], [1], [1], [0, 0, 0, 1, 1, 1], [0], [0]>} : vector<2x16x32xbf16>, vector<2x16x32xbf16>, vector<2x16x16xf32> -> vector<2x16x16xf32>
    "tpu.trace_stop"() : () -> ()
    %cst_31 = arith.constant 0.176776692 : f32
    %85 = vector.broadcast %cst_31 : f32 to vector<2x16x16xf32>
    %86 = arith.mulf %84, %85 : vector<2x16x16xf32>
    %87 = arith.addf %86, %16 : vector<2x16x16xf32>
    %cst_32 = arith.constant dense<0xFF800000> : vector<2x16xf32>
    %88 = vector.multi_reduction <maximumf>, %87, %cst_32 [2] : vector<2x16x16xf32> to vector<2x16xf32>
    %89 = vector.shape_cast %88 : vector<2x16xf32> to vector<2x16x1xf32>
    %90 = vector.broadcast %89 : vector<2x16x1xf32> to vector<2x16x16xf32>
    %91 = arith.subf %87, %90 : vector<2x16x16xf32>
    %92 = math.exp %91 : vector<2x16x16xf32>
    %cst_33 = arith.constant dense<0.000000e+00> : vector<2x16xf32>
    %93 = vector.multi_reduction <add>, %92, %cst_33 [2] : vector<2x16x16xf32> to vector<2x16xf32>
    %94 = vector.shape_cast %93 : vector<2x16xf32> to vector<2x16x1xf32>
    %95 = tpu.reciprocal %94 {approx = true} : vector<2x16x1xf32> -> vector<2x16x1xf32>
    %96 = vector.broadcast %95 : vector<2x16x1xf32> to vector<2x16x16xf32>
    %97 = arith.mulf %92, %96 : vector<2x16x16xf32>
    %98 = arith.truncf %97 : vector<2x16x16xf32> to vector<2x16x16xbf16>
    "tpu.trace_start"() <{level = 10 : i32, message = "bqk,bkd->bqd"}> : () -> ()
    %cst_34 = arith.constant dense<0.000000e+00> : vector<2x16x32xf32>
    %99 = tpu.matmul %98, %83, %cst_34 {dimension_numbers = #tpu.dot_dimension_numbers<[2], [1], [1], [2], [0, 0, 0, 1, 1, 2], [0], [0]>} : vector<2x16x16xbf16>, vector<2x16x32xbf16>, vector<2x16x32xf32> -> vector<2x16x32xf32>
    "tpu.trace_stop"() : () -> ()
    %100 = vector.shape_cast %99 : vector<2x16x32xf32> to vector<32x32xf32>
    %101 = tpu.concatenate %74, %100 in 1 : vector<32x32xf32>, vector<32x32xf32> -> vector<32x64xf32>
    %102 = arith.truncf %101 : vector<32x64xf32> to vector<32x64xbf16>
    %c0_35 = arith.constant 0 : index
    %c0_36 = arith.constant 0 : index
    %c0_37 = arith.constant 0 : index
    %103 = vector.load %arg9[%c0_35, %c0_36, %c0_37] : memref<2x64x64xbf16, #tpu.memory_space<vmem>>, vector<1x64x64xbf16>
    %104 = vector.shape_cast %103 : vector<1x64x64xbf16> to vector<64x64xbf16>
    %cst_38 = arith.constant dense<0.000000e+00> : vector<32x64xf32>
    %105 = tpu.matmul %102, %104, %cst_38 {dimension_numbers = #tpu.dot_dimension_numbers<[1], [0], [0], [1], [0, 0, 1, 1], [], []>} : vector<32x64xbf16>, vector<64x64xbf16>, vector<32x64xf32> -> vector<32x64xf32>
    %c0_39 = arith.constant 0 : index
    %c0_40 = arith.constant 0 : index
    %c0_41 = arith.constant 0 : index
    %106 = vector.load %arg10[%c0_39, %c0_40, %c0_41] : memref<2x1x64xf32, #tpu.memory_space<vmem>>, vector<1x1x64xf32>
    %107 = vector.shape_cast %106 : vector<1x1x64xf32> to vector<1x64xf32>
    %108 = vector.broadcast %107 : vector<1x64xf32> to vector<32x64xf32>
    %109 = arith.addf %105, %108 : vector<32x64xf32>
    %110 = arith.addf %1, %109 : vector<32x64xf32>
    %c0_42 = arith.constant 0 : index
    %c0_43 = arith.constant 0 : index
    %c0_44 = arith.constant 0 : index
    %111 = vector.load %arg11[%c0_42, %c0_43, %c0_44] : memref<2x1x64xf32, #tpu.memory_space<vmem>>, vector<1x1x64xf32>
    %112 = vector.shape_cast %111 : vector<1x1x64xf32> to vector<1x64xf32>
    %c0_45 = arith.constant 0 : index
    %c0_46 = arith.constant 0 : index
    %c0_47 = arith.constant 0 : index
    %113 = vector.load %arg12[%c0_45, %c0_46, %c0_47] : memref<2x1x64xf32, #tpu.memory_space<vmem>>, vector<1x1x64xf32>
    %114 = vector.shape_cast %113 : vector<1x1x64xf32> to vector<1x64xf32>
    %cst_48 = arith.constant dense<0.000000e+00> : vector<32xf32>
    %115 = vector.multi_reduction <add>, %110, %cst_48 [1] : vector<32x64xf32> to vector<32xf32>
    %116 = vector.shape_cast %115 : vector<32xf32> to vector<32x1xf32>
    %cst_49 = arith.constant 6.400000e+01 : f32
    %117 = vector.broadcast %cst_49 : f32 to vector<32x1xf32>
    %118 = arith.divf %116, %117 : vector<32x1xf32>
    %119 = vector.broadcast %118 : vector<32x1xf32> to vector<32x64xf32>
    %120 = arith.subf %110, %119 : vector<32x64xf32>
    %121 = arith.mulf %120, %120 : vector<32x64xf32>
    %cst_50 = arith.constant dense<0.000000e+00> : vector<32xf32>
    %122 = vector.multi_reduction <add>, %121, %cst_50 [1] : vector<32x64xf32> to vector<32xf32>
    %123 = vector.shape_cast %122 : vector<32xf32> to vector<32x1xf32>
    %cst_51 = arith.constant 6.400000e+01 : f32
    %124 = vector.broadcast %cst_51 : f32 to vector<32x1xf32>
    %125 = arith.divf %123, %124 : vector<32x1xf32>
    %cst_52 = arith.constant 9.99999974E-6 : f32
    %126 = vector.broadcast %cst_52 : f32 to vector<32x1xf32>
    %127 = arith.addf %125, %126 : vector<32x1xf32>
    %128 = math.rsqrt %127 : vector<32x1xf32>
    %129 = vector.broadcast %128 : vector<32x1xf32> to vector<32x64xf32>
    %130 = arith.mulf %120, %129 : vector<32x64xf32>
    %131 = vector.broadcast %112 : vector<1x64xf32> to vector<32x64xf32>
    %132 = arith.mulf %130, %131 : vector<32x64xf32>
    %133 = vector.broadcast %114 : vector<1x64xf32> to vector<32x64xf32>
    %134 = arith.addf %132, %133 : vector<32x64xf32>
    %135 = arith.truncf %134 : vector<32x64xf32> to vector<32x64xbf16>
    %c0_53 = arith.constant 0 : index
    %c0_54 = arith.constant 0 : index
    %c0_55 = arith.constant 0 : index
    %136 = vector.load %arg13[%c0_53, %c0_54, %c0_55] : memref<2x64x256xbf16, #tpu.memory_space<vmem>>, vector<1x64x256xbf16>
    %137 = vector.shape_cast %136 : vector<1x64x256xbf16> to vector<64x256xbf16>
    %cst_56 = arith.constant dense<0.000000e+00> : vector<32x256xf32>
    %138 = tpu.matmul %135, %137, %cst_56 {dimension_numbers = #tpu.dot_dimension_numbers<[1], [0], [0], [1], [0, 0, 1, 1], [], []>} : vector<32x64xbf16>, vector<64x256xbf16>, vector<32x256xf32> -> vector<32x256xf32>
    %c0_57 = arith.constant 0 : index
    %c0_58 = arith.constant 0 : index
    %c0_59 = arith.constant 0 : index
    %139 = vector.load %arg14[%c0_57, %c0_58, %c0_59] : memref<2x1x256xf32, #tpu.memory_space<vmem>>, vector<1x1x256xf32>
    %140 = vector.shape_cast %139 : vector<1x1x256xf32> to vector<1x256xf32>
    %141 = vector.broadcast %140 : vector<1x256xf32> to vector<32x256xf32>
    %142 = arith.addf %138, %141 : vector<32x256xf32>
    %cst_60 = arith.constant 5.000000e-01 : f32
    %143 = vector.broadcast %cst_60 : f32 to vector<32x256xf32>
    %144 = arith.mulf %143, %142 : vector<32x256xf32>
    %cst_61 = arith.constant 4.471500e-02 : f32
    %145 = vector.broadcast %cst_61 : f32 to vector<32x256xf32>
    %146 = arith.mulf %145, %142 : vector<32x256xf32>
    %147 = arith.mulf %146, %142 : vector<32x256xf32>
    %148 = arith.mulf %147, %142 : vector<32x256xf32>
    %149 = arith.addf %142, %148 : vector<32x256xf32>
    %cst_62 = arith.constant 0.797884583 : f32
    %150 = vector.broadcast %cst_62 : f32 to vector<32x256xf32>
    %151 = arith.mulf %150, %149 : vector<32x256xf32>
    %152 = math.tanh %151 : vector<32x256xf32>
    %cst_63 = arith.constant 1.000000e+00 : f32
    %153 = vector.broadcast %cst_63 : f32 to vector<32x256xf32>
    %154 = arith.addf %153, %152 : vector<32x256xf32>
    %155 = arith.mulf %144, %154 : vector<32x256xf32>
    %156 = arith.truncf %155 : vector<32x256xf32> to vector<32x256xbf16>
    %c0_64 = arith.constant 0 : index
    %c0_65 = arith.constant 0 : index
    %c0_66 = arith.constant 0 : index
    %157 = vector.load %arg15[%c0_64, %c0_65, %c0_66] : memref<2x256x64xbf16, #tpu.memory_space<vmem>>, vector<1x256x64xbf16>
    %158 = vector.shape_cast %157 : vector<1x256x64xbf16> to vector<256x64xbf16>
    %cst_67 = arith.constant dense<0.000000e+00> : vector<32x64xf32>
    %159 = tpu.matmul %156, %158, %cst_67 {dimension_numbers = #tpu.dot_dimension_numbers<[1], [0], [0], [1], [0, 0, 1, 1], [], []>} : vector<32x256xbf16>, vector<256x64xbf16>, vector<32x64xf32> -> vector<32x64xf32>
    %c0_68 = arith.constant 0 : index
    %c0_69 = arith.constant 0 : index
    %c0_70 = arith.constant 0 : index
    %160 = vector.load %arg16[%c0_68, %c0_69, %c0_70] : memref<2x1x64xf32, #tpu.memory_space<vmem>>, vector<1x1x64xf32>
    %161 = vector.shape_cast %160 : vector<1x1x64xf32> to vector<1x64xf32>
    %162 = vector.broadcast %161 : vector<1x64xf32> to vector<32x64xf32>
    %163 = arith.addf %159, %162 : vector<32x64xf32>
    %164 = arith.addf %110, %163 : vector<32x64xf32>
    %c1 = arith.constant 1 : index
    %c0_71 = arith.constant 0 : index
    %c0_72 = arith.constant 0 : index
    %165 = vector.load %arg5[%c1, %c0_71, %c0_72] : memref<2x1x64xf32, #tpu.memory_space<vmem>>, vector<1x1x64xf32>
    %166 = vector.shape_cast %165 : vector<1x1x64xf32> to vector<1x64xf32>
    %c1_73 = arith.constant 1 : index
    %c0_74 = arith.constant 0 : index
    %c0_75 = arith.constant 0 : index
    %167 = vector.load %arg6[%c1_73, %c0_74, %c0_75] : memref<2x1x64xf32, #tpu.memory_space<vmem>>, vector<1x1x64xf32>
    %168 = vector.shape_cast %167 : vector<1x1x64xf32> to vector<1x64xf32>
    %cst_76 = arith.constant dense<0.000000e+00> : vector<32xf32>
    %169 = vector.multi_reduction <add>, %164, %cst_76 [1] : vector<32x64xf32> to vector<32xf32>
    %170 = vector.shape_cast %169 : vector<32xf32> to vector<32x1xf32>
    %cst_77 = arith.constant 6.400000e+01 : f32
    %171 = vector.broadcast %cst_77 : f32 to vector<32x1xf32>
    %172 = arith.divf %170, %171 : vector<32x1xf32>
    %173 = vector.broadcast %172 : vector<32x1xf32> to vector<32x64xf32>
    %174 = arith.subf %164, %173 : vector<32x64xf32>
    %175 = arith.mulf %174, %174 : vector<32x64xf32>
    %cst_78 = arith.constant dense<0.000000e+00> : vector<32xf32>
    %176 = vector.multi_reduction <add>, %175, %cst_78 [1] : vector<32x64xf32> to vector<32xf32>
    %177 = vector.shape_cast %176 : vector<32xf32> to vector<32x1xf32>
    %cst_79 = arith.constant 6.400000e+01 : f32
    %178 = vector.broadcast %cst_79 : f32 to vector<32x1xf32>
    %179 = arith.divf %177, %178 : vector<32x1xf32>
    %cst_80 = arith.constant 9.99999974E-6 : f32
    %180 = vector.broadcast %cst_80 : f32 to vector<32x1xf32>
    %181 = arith.addf %179, %180 : vector<32x1xf32>
    %182 = math.rsqrt %181 : vector<32x1xf32>
    %183 = vector.broadcast %182 : vector<32x1xf32> to vector<32x64xf32>
    %184 = arith.mulf %174, %183 : vector<32x64xf32>
    %185 = vector.broadcast %166 : vector<1x64xf32> to vector<32x64xf32>
    %186 = arith.mulf %184, %185 : vector<32x64xf32>
    %187 = vector.broadcast %168 : vector<1x64xf32> to vector<32x64xf32>
    %188 = arith.addf %186, %187 : vector<32x64xf32>
    %189 = arith.truncf %188 : vector<32x64xf32> to vector<32x64xbf16>
    %c1_81 = arith.constant 1 : index
    %c0_82 = arith.constant 0 : index
    %c0_83 = arith.constant 0 : index
    %190 = vector.load %arg7[%c1_81, %c0_82, %c0_83] : memref<2x64x192xbf16, #tpu.memory_space<vmem>>, vector<1x64x192xbf16>
    %191 = vector.shape_cast %190 : vector<1x64x192xbf16> to vector<64x192xbf16>
    %cst_84 = arith.constant dense<0.000000e+00> : vector<32x192xf32>
    %192 = tpu.matmul %189, %191, %cst_84 {dimension_numbers = #tpu.dot_dimension_numbers<[1], [0], [0], [1], [0, 0, 1, 1], [], []>} : vector<32x64xbf16>, vector<64x192xbf16>, vector<32x192xf32> -> vector<32x192xf32>
    %c1_85 = arith.constant 1 : index
    %c0_86 = arith.constant 0 : index
    %c0_87 = arith.constant 0 : index
    %193 = vector.load %arg8[%c1_85, %c0_86, %c0_87] : memref<2x1x192xf32, #tpu.memory_space<vmem>>, vector<1x1x192xf32>
    %194 = vector.shape_cast %193 : vector<1x1x192xf32> to vector<1x192xf32>
    %195 = vector.broadcast %194 : vector<1x192xf32> to vector<32x192xf32>
    %196 = arith.addf %192, %195 : vector<32x192xf32>
    %197 = vector.extract_strided_slice %196 {offsets = [0, 0], sizes = [32, 32], strides = [1, 1]} : vector<32x192xf32> to vector<32x32xf32>
    %198 = arith.truncf %197 : vector<32x32xf32> to vector<32x32xbf16>
    %199 = vector.shape_cast %198 : vector<32x32xbf16> to vector<2x16x32xbf16>
    %200 = vector.extract_strided_slice %196 {offsets = [0, 64], sizes = [32, 32], strides = [1, 1]} : vector<32x192xf32> to vector<32x32xf32>
    %201 = arith.truncf %200 : vector<32x32xf32> to vector<32x32xbf16>
    %202 = vector.shape_cast %201 : vector<32x32xbf16> to vector<2x16x32xbf16>
    %203 = vector.extract_strided_slice %196 {offsets = [0, 128], sizes = [32, 32], strides = [1, 1]} : vector<32x192xf32> to vector<32x32xf32>
    %204 = arith.truncf %203 : vector<32x32xf32> to vector<32x32xbf16>
    %205 = vector.shape_cast %204 : vector<32x32xbf16> to vector<2x16x32xbf16>
    "tpu.trace_start"() <{level = 10 : i32, message = "bqd,bkd->bqk"}> : () -> ()
    %cst_88 = arith.constant dense<0.000000e+00> : vector<2x16x16xf32>
    %206 = tpu.matmul %199, %202, %cst_88 {dimension_numbers = #tpu.dot_dimension_numbers<[2], [2], [1], [1], [0, 0, 0, 1, 1, 1], [0], [0]>} : vector<2x16x32xbf16>, vector<2x16x32xbf16>, vector<2x16x16xf32> -> vector<2x16x16xf32>
    "tpu.trace_stop"() : () -> ()
    %cst_89 = arith.constant 0.176776692 : f32
    %207 = vector.broadcast %cst_89 : f32 to vector<2x16x16xf32>
    %208 = arith.mulf %206, %207 : vector<2x16x16xf32>
    %209 = arith.addf %208, %16 : vector<2x16x16xf32>
    %cst_90 = arith.constant dense<0xFF800000> : vector<2x16xf32>
    %210 = vector.multi_reduction <maximumf>, %209, %cst_90 [2] : vector<2x16x16xf32> to vector<2x16xf32>
    %211 = vector.shape_cast %210 : vector<2x16xf32> to vector<2x16x1xf32>
    %212 = vector.broadcast %211 : vector<2x16x1xf32> to vector<2x16x16xf32>
    %213 = arith.subf %209, %212 : vector<2x16x16xf32>
    %214 = math.exp %213 : vector<2x16x16xf32>
    %cst_91 = arith.constant dense<0.000000e+00> : vector<2x16xf32>
    %215 = vector.multi_reduction <add>, %214, %cst_91 [2] : vector<2x16x16xf32> to vector<2x16xf32>
    %216 = vector.shape_cast %215 : vector<2x16xf32> to vector<2x16x1xf32>
    %217 = tpu.reciprocal %216 {approx = true} : vector<2x16x1xf32> -> vector<2x16x1xf32>
    %218 = vector.broadcast %217 : vector<2x16x1xf32> to vector<2x16x16xf32>
    %219 = arith.mulf %214, %218 : vector<2x16x16xf32>
    %220 = arith.truncf %219 : vector<2x16x16xf32> to vector<2x16x16xbf16>
    "tpu.trace_start"() <{level = 10 : i32, message = "bqk,bkd->bqd"}> : () -> ()
    %cst_92 = arith.constant dense<0.000000e+00> : vector<2x16x32xf32>
    %221 = tpu.matmul %220, %205, %cst_92 {dimension_numbers = #tpu.dot_dimension_numbers<[2], [1], [1], [2], [0, 0, 0, 1, 1, 2], [0], [0]>} : vector<2x16x16xbf16>, vector<2x16x32xbf16>, vector<2x16x32xf32> -> vector<2x16x32xf32>
    "tpu.trace_stop"() : () -> ()
    %222 = vector.shape_cast %221 : vector<2x16x32xf32> to vector<32x32xf32>
    %223 = vector.extract_strided_slice %196 {offsets = [0, 32], sizes = [32, 32], strides = [1, 1]} : vector<32x192xf32> to vector<32x32xf32>
    %224 = arith.truncf %223 : vector<32x32xf32> to vector<32x32xbf16>
    %225 = vector.shape_cast %224 : vector<32x32xbf16> to vector<2x16x32xbf16>
    %226 = vector.extract_strided_slice %196 {offsets = [0, 96], sizes = [32, 32], strides = [1, 1]} : vector<32x192xf32> to vector<32x32xf32>
    %227 = arith.truncf %226 : vector<32x32xf32> to vector<32x32xbf16>
    %228 = vector.shape_cast %227 : vector<32x32xbf16> to vector<2x16x32xbf16>
    %229 = vector.extract_strided_slice %196 {offsets = [0, 160], sizes = [32, 32], strides = [1, 1]} : vector<32x192xf32> to vector<32x32xf32>
    %230 = arith.truncf %229 : vector<32x32xf32> to vector<32x32xbf16>
    %231 = vector.shape_cast %230 : vector<32x32xbf16> to vector<2x16x32xbf16>
    "tpu.trace_start"() <{level = 10 : i32, message = "bqd,bkd->bqk"}> : () -> ()
    %cst_93 = arith.constant dense<0.000000e+00> : vector<2x16x16xf32>
    %232 = tpu.matmul %225, %228, %cst_93 {dimension_numbers = #tpu.dot_dimension_numbers<[2], [2], [1], [1], [0, 0, 0, 1, 1, 1], [0], [0]>} : vector<2x16x32xbf16>, vector<2x16x32xbf16>, vector<2x16x16xf32> -> vector<2x16x16xf32>
    "tpu.trace_stop"() : () -> ()
    %cst_94 = arith.constant 0.176776692 : f32
    %233 = vector.broadcast %cst_94 : f32 to vector<2x16x16xf32>
    %234 = arith.mulf %232, %233 : vector<2x16x16xf32>
    %235 = arith.addf %234, %16 : vector<2x16x16xf32>
    %cst_95 = arith.constant dense<0xFF800000> : vector<2x16xf32>
    %236 = vector.multi_reduction <maximumf>, %235, %cst_95 [2] : vector<2x16x16xf32> to vector<2x16xf32>
    %237 = vector.shape_cast %236 : vector<2x16xf32> to vector<2x16x1xf32>
    %238 = vector.broadcast %237 : vector<2x16x1xf32> to vector<2x16x16xf32>
    %239 = arith.subf %235, %238 : vector<2x16x16xf32>
    %240 = math.exp %239 : vector<2x16x16xf32>
    %cst_96 = arith.constant dense<0.000000e+00> : vector<2x16xf32>
    %241 = vector.multi_reduction <add>, %240, %cst_96 [2] : vector<2x16x16xf32> to vector<2x16xf32>
    %242 = vector.shape_cast %241 : vector<2x16xf32> to vector<2x16x1xf32>
    %243 = tpu.reciprocal %242 {approx = true} : vector<2x16x1xf32> -> vector<2x16x1xf32>
    %244 = vector.broadcast %243 : vector<2x16x1xf32> to vector<2x16x16xf32>
    %245 = arith.mulf %240, %244 : vector<2x16x16xf32>
    %246 = arith.truncf %245 : vector<2x16x16xf32> to vector<2x16x16xbf16>
    "tpu.trace_start"() <{level = 10 : i32, message = "bqk,bkd->bqd"}> : () -> ()
    %cst_97 = arith.constant dense<0.000000e+00> : vector<2x16x32xf32>
    %247 = tpu.matmul %246, %231, %cst_97 {dimension_numbers = #tpu.dot_dimension_numbers<[2], [1], [1], [2], [0, 0, 0, 1, 1, 2], [0], [0]>} : vector<2x16x16xbf16>, vector<2x16x32xbf16>, vector<2x16x32xf32> -> vector<2x16x32xf32>
    "tpu.trace_stop"() : () -> ()
    %248 = vector.shape_cast %247 : vector<2x16x32xf32> to vector<32x32xf32>
    %249 = tpu.concatenate %222, %248 in 1 : vector<32x32xf32>, vector<32x32xf32> -> vector<32x64xf32>
    %250 = arith.truncf %249 : vector<32x64xf32> to vector<32x64xbf16>
    %c1_98 = arith.constant 1 : index
    %c0_99 = arith.constant 0 : index
    %c0_100 = arith.constant 0 : index
    %251 = vector.load %arg9[%c1_98, %c0_99, %c0_100] : memref<2x64x64xbf16, #tpu.memory_space<vmem>>, vector<1x64x64xbf16>
    %252 = vector.shape_cast %251 : vector<1x64x64xbf16> to vector<64x64xbf16>
    %cst_101 = arith.constant dense<0.000000e+00> : vector<32x64xf32>
    %253 = tpu.matmul %250, %252, %cst_101 {dimension_numbers = #tpu.dot_dimension_numbers<[1], [0], [0], [1], [0, 0, 1, 1], [], []>} : vector<32x64xbf16>, vector<64x64xbf16>, vector<32x64xf32> -> vector<32x64xf32>
    %c1_102 = arith.constant 1 : index
    %c0_103 = arith.constant 0 : index
    %c0_104 = arith.constant 0 : index
    %254 = vector.load %arg10[%c1_102, %c0_103, %c0_104] : memref<2x1x64xf32, #tpu.memory_space<vmem>>, vector<1x1x64xf32>
    %255 = vector.shape_cast %254 : vector<1x1x64xf32> to vector<1x64xf32>
    %256 = vector.broadcast %255 : vector<1x64xf32> to vector<32x64xf32>
    %257 = arith.addf %253, %256 : vector<32x64xf32>
    %258 = arith.addf %164, %257 : vector<32x64xf32>
    %c1_105 = arith.constant 1 : index
    %c0_106 = arith.constant 0 : index
    %c0_107 = arith.constant 0 : index
    %259 = vector.load %arg11[%c1_105, %c0_106, %c0_107] : memref<2x1x64xf32, #tpu.memory_space<vmem>>, vector<1x1x64xf32>
    %260 = vector.shape_cast %259 : vector<1x1x64xf32> to vector<1x64xf32>
    %c1_108 = arith.constant 1 : index
    %c0_109 = arith.constant 0 : index
    %c0_110 = arith.constant 0 : index
    %261 = vector.load %arg12[%c1_108, %c0_109, %c0_110] : memref<2x1x64xf32, #tpu.memory_space<vmem>>, vector<1x1x64xf32>
    %262 = vector.shape_cast %261 : vector<1x1x64xf32> to vector<1x64xf32>
    %cst_111 = arith.constant dense<0.000000e+00> : vector<32xf32>
    %263 = vector.multi_reduction <add>, %258, %cst_111 [1] : vector<32x64xf32> to vector<32xf32>
    %264 = vector.shape_cast %263 : vector<32xf32> to vector<32x1xf32>
    %cst_112 = arith.constant 6.400000e+01 : f32
    %265 = vector.broadcast %cst_112 : f32 to vector<32x1xf32>
    %266 = arith.divf %264, %265 : vector<32x1xf32>
    %267 = vector.broadcast %266 : vector<32x1xf32> to vector<32x64xf32>
    %268 = arith.subf %258, %267 : vector<32x64xf32>
    %269 = arith.mulf %268, %268 : vector<32x64xf32>
    %cst_113 = arith.constant dense<0.000000e+00> : vector<32xf32>
    %270 = vector.multi_reduction <add>, %269, %cst_113 [1] : vector<32x64xf32> to vector<32xf32>
    %271 = vector.shape_cast %270 : vector<32xf32> to vector<32x1xf32>
    %cst_114 = arith.constant 6.400000e+01 : f32
    %272 = vector.broadcast %cst_114 : f32 to vector<32x1xf32>
    %273 = arith.divf %271, %272 : vector<32x1xf32>
    %cst_115 = arith.constant 9.99999974E-6 : f32
    %274 = vector.broadcast %cst_115 : f32 to vector<32x1xf32>
    %275 = arith.addf %273, %274 : vector<32x1xf32>
    %276 = math.rsqrt %275 : vector<32x1xf32>
    %277 = vector.broadcast %276 : vector<32x1xf32> to vector<32x64xf32>
    %278 = arith.mulf %268, %277 : vector<32x64xf32>
    %279 = vector.broadcast %260 : vector<1x64xf32> to vector<32x64xf32>
    %280 = arith.mulf %278, %279 : vector<32x64xf32>
    %281 = vector.broadcast %262 : vector<1x64xf32> to vector<32x64xf32>
    %282 = arith.addf %280, %281 : vector<32x64xf32>
    %283 = arith.truncf %282 : vector<32x64xf32> to vector<32x64xbf16>
    %c1_116 = arith.constant 1 : index
    %c0_117 = arith.constant 0 : index
    %c0_118 = arith.constant 0 : index
    %284 = vector.load %arg13[%c1_116, %c0_117, %c0_118] : memref<2x64x256xbf16, #tpu.memory_space<vmem>>, vector<1x64x256xbf16>
    %285 = vector.shape_cast %284 : vector<1x64x256xbf16> to vector<64x256xbf16>
    %cst_119 = arith.constant dense<0.000000e+00> : vector<32x256xf32>
    %286 = tpu.matmul %283, %285, %cst_119 {dimension_numbers = #tpu.dot_dimension_numbers<[1], [0], [0], [1], [0, 0, 1, 1], [], []>} : vector<32x64xbf16>, vector<64x256xbf16>, vector<32x256xf32> -> vector<32x256xf32>
    %c1_120 = arith.constant 1 : index
    %c0_121 = arith.constant 0 : index
    %c0_122 = arith.constant 0 : index
    %287 = vector.load %arg14[%c1_120, %c0_121, %c0_122] : memref<2x1x256xf32, #tpu.memory_space<vmem>>, vector<1x1x256xf32>
    %288 = vector.shape_cast %287 : vector<1x1x256xf32> to vector<1x256xf32>
    %289 = vector.broadcast %288 : vector<1x256xf32> to vector<32x256xf32>
    %290 = arith.addf %286, %289 : vector<32x256xf32>
    %cst_123 = arith.constant 5.000000e-01 : f32
    %291 = vector.broadcast %cst_123 : f32 to vector<32x256xf32>
    %292 = arith.mulf %291, %290 : vector<32x256xf32>
    %cst_124 = arith.constant 4.471500e-02 : f32
    %293 = vector.broadcast %cst_124 : f32 to vector<32x256xf32>
    %294 = arith.mulf %293, %290 : vector<32x256xf32>
    %295 = arith.mulf %294, %290 : vector<32x256xf32>
    %296 = arith.mulf %295, %290 : vector<32x256xf32>
    %297 = arith.addf %290, %296 : vector<32x256xf32>
    %cst_125 = arith.constant 0.797884583 : f32
    %298 = vector.broadcast %cst_125 : f32 to vector<32x256xf32>
    %299 = arith.mulf %298, %297 : vector<32x256xf32>
    %300 = math.tanh %299 : vector<32x256xf32>
    %cst_126 = arith.constant 1.000000e+00 : f32
    %301 = vector.broadcast %cst_126 : f32 to vector<32x256xf32>
    %302 = arith.addf %301, %300 : vector<32x256xf32>
    %303 = arith.mulf %292, %302 : vector<32x256xf32>
    %304 = arith.truncf %303 : vector<32x256xf32> to vector<32x256xbf16>
    %c1_127 = arith.constant 1 : index
    %c0_128 = arith.constant 0 : index
    %c0_129 = arith.constant 0 : index
    %305 = vector.load %arg15[%c1_127, %c0_128, %c0_129] : memref<2x256x64xbf16, #tpu.memory_space<vmem>>, vector<1x256x64xbf16>
    %306 = vector.shape_cast %305 : vector<1x256x64xbf16> to vector<256x64xbf16>
    %cst_130 = arith.constant dense<0.000000e+00> : vector<32x64xf32>
    %307 = tpu.matmul %304, %306, %cst_130 {dimension_numbers = #tpu.dot_dimension_numbers<[1], [0], [0], [1], [0, 0, 1, 1], [], []>} : vector<32x256xbf16>, vector<256x64xbf16>, vector<32x64xf32> -> vector<32x64xf32>
    %c1_131 = arith.constant 1 : index
    %c0_132 = arith.constant 0 : index
    %c0_133 = arith.constant 0 : index
    %308 = vector.load %arg16[%c1_131, %c0_132, %c0_133] : memref<2x1x64xf32, #tpu.memory_space<vmem>>, vector<1x1x64xf32>
    %309 = vector.shape_cast %308 : vector<1x1x64xf32> to vector<1x64xf32>
    %310 = vector.broadcast %309 : vector<1x64xf32> to vector<32x64xf32>
    %311 = arith.addf %307, %310 : vector<32x64xf32>
    %312 = arith.addf %258, %311 : vector<32x64xf32>
    %c0_134 = arith.constant 0 : index
    %c0_135 = arith.constant 0 : index
    %313 = vector.load %arg17[%c0_134, %c0_135] : memref<1x64xf32, #tpu.memory_space<vmem>>, vector<1x64xf32>
    %c0_136 = arith.constant 0 : index
    %c0_137 = arith.constant 0 : index
    %314 = vector.load %arg18[%c0_136, %c0_137] : memref<1x64xf32, #tpu.memory_space<vmem>>, vector<1x64xf32>
    %cst_138 = arith.constant dense<0.000000e+00> : vector<32xf32>
    %315 = vector.multi_reduction <add>, %312, %cst_138 [1] : vector<32x64xf32> to vector<32xf32>
    %316 = vector.shape_cast %315 : vector<32xf32> to vector<32x1xf32>
    %cst_139 = arith.constant 6.400000e+01 : f32
    %317 = vector.broadcast %cst_139 : f32 to vector<32x1xf32>
    %318 = arith.divf %316, %317 : vector<32x1xf32>
    %319 = vector.broadcast %318 : vector<32x1xf32> to vector<32x64xf32>
    %320 = arith.subf %312, %319 : vector<32x64xf32>
    %321 = arith.mulf %320, %320 : vector<32x64xf32>
    %cst_140 = arith.constant dense<0.000000e+00> : vector<32xf32>
    %322 = vector.multi_reduction <add>, %321, %cst_140 [1] : vector<32x64xf32> to vector<32xf32>
    %323 = vector.shape_cast %322 : vector<32xf32> to vector<32x1xf32>
    %cst_141 = arith.constant 6.400000e+01 : f32
    %324 = vector.broadcast %cst_141 : f32 to vector<32x1xf32>
    %325 = arith.divf %323, %324 : vector<32x1xf32>
    %cst_142 = arith.constant 9.99999974E-6 : f32
    %326 = vector.broadcast %cst_142 : f32 to vector<32x1xf32>
    %327 = arith.addf %325, %326 : vector<32x1xf32>
    %328 = math.rsqrt %327 : vector<32x1xf32>
    %329 = vector.broadcast %328 : vector<32x1xf32> to vector<32x64xf32>
    %330 = arith.mulf %320, %329 : vector<32x64xf32>
    %331 = vector.broadcast %313 : vector<1x64xf32> to vector<32x64xf32>
    %332 = arith.mulf %330, %331 : vector<32x64xf32>
    %333 = vector.broadcast %314 : vector<1x64xf32> to vector<32x64xf32>
    %334 = arith.addf %332, %333 : vector<32x64xf32>
    %335 = arith.truncf %334 : vector<32x64xf32> to vector<32x64xbf16>
    %c0_143 = arith.constant 0 : index
    %c0_144 = arith.constant 0 : index
    %336 = vector.load %arg4[%c0_143, %c0_144] : memref<64x128xbf16, #tpu.memory_space<vmem>>, vector<64x128xbf16>
    %cst_145 = arith.constant dense<0.000000e+00> : vector<32x128xf32>
    %337 = tpu.matmul %335, %336, %cst_145 {dimension_numbers = #tpu.dot_dimension_numbers<[1], [0], [0], [1], [0, 0, 1, 1], [], []>} : vector<32x64xbf16>, vector<64x128xbf16>, vector<32x128xf32> -> vector<32x128xf32>
    %338 = vector.shape_cast %337 : vector<32x128xf32> to vector<2x16x128xf32>
    %c0_146 = arith.constant 0 : index
    %c0_147 = arith.constant 0 : index
    %c0_148 = arith.constant 0 : index
    %339 = vector.load %arg19[%c0_146, %c0_147, %c0_148] : memref<2x16x128xf32, #tpu.memory_space<vmem>>, vector<2x16x128xf32>
    tpu.vector_store %arg19[%c0_146, %c0_147, %c0_148], %338 {strides = array<i32>} : memref<2x16x128xf32, #tpu.memory_space<vmem>>, vector<2x16x128xf32>,
    %c0_149 = arith.constant 0 : index
    %c0_150 = arith.constant 0 : index
    %c0_151 = arith.constant 0 : index
    %340 = vector.load %arg3[%c0_149, %c0_150, %c0_151] : memref<1x32x1xi32, #tpu.memory_space<vmem>>, vector<1x32x1xi32>
    %341 = vector.shape_cast %340 : vector<1x32x1xi32> to vector<32x1xi32>
    %c-100_i32 = arith.constant -100 : i32
    %342 = vector.broadcast %c-100_i32 : i32 to vector<32x1xi32>
    %343 = arith.cmpi ne, %341, %342 : vector<32x1xi32>
    %344 = tpu.iota {dimensions = array<i32: 1>} : vector<32x128xi32>
    %345 = vector.broadcast %341 : vector<32x1xi32> to vector<32x128xi32>
    %346 = arith.cmpi eq, %344, %345 : vector<32x128xi32>
    %cst_152 = arith.constant dense<0xFF800000> : vector<32xf32>
    %347 = vector.multi_reduction <maximumf>, %337, %cst_152 [1] : vector<32x128xf32> to vector<32xf32>
    %348 = vector.shape_cast %347 : vector<32xf32> to vector<32x1xf32>
    %349 = vector.broadcast %348 : vector<32x1xf32> to vector<32x128xf32>
    %350 = arith.subf %337, %349 : vector<32x128xf32>
    %351 = math.exp %350 : vector<32x128xf32>
    %cst_153 = arith.constant dense<0.000000e+00> : vector<32xf32>
    %352 = vector.multi_reduction <add>, %351, %cst_153 [1] : vector<32x128xf32> to vector<32xf32>
    %353 = vector.shape_cast %352 : vector<32xf32> to vector<32x1xf32>
    %354 = math.log %353 : vector<32x1xf32>
    %355 = arith.addf %348, %354 : vector<32x1xf32>
    %cst_154 = arith.constant 0.000000e+00 : f32
    %356 = vector.broadcast %cst_154 : f32 to vector<32x128xf32>
    %357 = arith.select %346, %337, %356 : vector<32x128xi1>, vector<32x128xf32>
    %cst_155 = arith.constant dense<0.000000e+00> : vector<32xf32>
    %358 = vector.multi_reduction <add>, %357, %cst_155 [1] : vector<32x128xf32> to vector<32xf32>
    %359 = vector.shape_cast %358 : vector<32xf32> to vector<32x1xf32>
    %360 = arith.subf %355, %359 : vector<32x1xf32>
    %cst_156 = arith.constant 0.000000e+00 : f32
    %361 = vector.broadcast %cst_156 : f32 to vector<32x1xf32>
    %362 = arith.select %343, %360, %361 : vector<32x1xi1>, vector<32x1xf32>
    %363 = vector.shape_cast %362 : vector<32x1xf32> to vector<1x32x1xf32>
    %cst_157 = arith.constant dense<0.000000e+00> : vector<1xf32>
    %364 = vector.multi_reduction <add>, %363, %cst_157 [1, 2] : vector<1x32x1xf32> to vector<1xf32>
    %365 = vector.shape_cast %364 : vector<1xf32> to vector<1x1x1xf32>
    %366 = vector.extract %365[0, 0, 0] : f32 from vector<1x1x1xf32>
    %367 = vector.broadcast %366 : f32 to vector<1x1x128xf32>
    %c0_158 = arith.constant 0 : index
    %c0_159 = arith.constant 0 : index
    %c0_160 = arith.constant 0 : index
    %368 = vector.load %arg20[%c0_158, %c0_159, %c0_160] : memref<1x1x128xf32, #tpu.memory_space<vmem>>, vector<1x1x128xf32>
    tpu.vector_store %arg20[%c0_158, %c0_159, %c0_160], %367 {strides = array<i32>} : memref<1x1x128xf32, #tpu.memory_space<vmem>>, vector<1x1x128xf32>,
    %369 = arith.extui %343 : vector<32x1xi1> to vector<32x1xi32>
    %370 = arith.sitofp %369 : vector<32x1xi32> to vector<32x1xf32>
    %371 = vector.shape_cast %370 : vector<32x1xf32> to vector<1x32x1xf32>
    %cst_161 = arith.constant dense<0.000000e+00> : vector<1xf32>
    %372 = vector.multi_reduction <add>, %371, %cst_161 [1, 2] : vector<1x32x1xf32> to vector<1xf32>
    %373 = vector.shape_cast %372 : vector<1xf32> to vector<1x1x1xf32>
    %374 = vector.extract %373[0, 0, 0] : f32 from vector<1x1x1xf32>
    %375 = vector.broadcast %374 : f32 to vector<1x1x128xf32>
    %c0_162 = arith.constant 0 : index
    %c0_163 = arith.constant 0 : index
    %c0_164 = arith.constant 0 : index
    %376 = vector.load %arg21[%c0_162, %c0_163, %c0_164] : memref<1x1x128xf32, #tpu.memory_space<vmem>>, vector<1x1x128xf32>
    tpu.vector_store %arg21[%c0_162, %c0_163, %c0_164], %375 {strides = array<i32>} : memref<1x1x128xf32, #tpu.memory_space<vmem>>, vector<1x1x128xf32>,
    return
  }
  func.func @transform_0(%arg0: i32) -> (i32, i32, i32) {
    %c0_i32 = arith.constant 0 : i32
    %c0_i32_0 = arith.constant 0 : i32
    %c0_i32_1 = arith.constant 0 : i32
    return %arg0, %c0_i32, %c0_i32_0 : i32, i32, i32
  }
  func.func @transform_1(%arg0: i32) -> (i32, i32, i32) {
    %c0_i32 = arith.constant 0 : i32
    %c0_i32_0 = arith.constant 0 : i32
    %c0_i32_1 = arith.constant 0 : i32
    return %arg0, %c0_i32, %c0_i32_0 : i32, i32, i32
  }
  func.func @transform_2(%arg0: i32) -> (i32, i32, i32) {
    %c0_i32 = arith.constant 0 : i32
    %c0_i32_0 = arith.constant 0 : i32
    %c0_i32_1 = arith.constant 0 : i32
    return %arg0, %c0_i32, %c0_i32_0 : i32, i32, i32
  }
  func.func @transform_3(%arg0: i32) -> (i32, i32) {
    %c0_i32 = arith.constant 0 : i32
    %c0_i32_0 = arith.constant 0 : i32
    %c0_i32_1 = arith.constant 0 : i32
    return %c0_i32, %c0_i32_0 : i32, i32
  }
  func.func @transform_4(%arg0: i32) -> (i32, i32, i32) {
    %c0_i32 = arith.constant 0 : i32
    %c0_i32_0 = arith.constant 0 : i32
    %c0_i32_1 = arith.constant 0 : i32
    %c0_i32_2 = arith.constant 0 : i32
    return %c0_i32, %c0_i32_0, %c0_i32_1 : i32, i32, i32
  }
  func.func @transform_5(%arg0: i32) -> (i32, i32, i32) {
    %c0_i32 = arith.constant 0 : i32
    %c0_i32_0 = arith.constant 0 : i32
    %c0_i32_1 = arith.constant 0 : i32
    %c0_i32_2 = arith.constant 0 : i32
    return %c0_i32, %c0_i32_0, %c0_i32_1 : i32, i32, i32
  }
  func.func @transform_6(%arg0: i32) -> (i32, i32, i32) {
    %c0_i32 = arith.constant 0 : i32
    %c0_i32_0 = arith.constant 0 : i32
    %c0_i32_1 = arith.constant 0 : i32
    %c0_i32_2 = arith.constant 0 : i32
    return %c0_i32, %c0_i32_0, %c0_i32_1 : i32, i32, i32
  }
  func.func @transform_7(%arg0: i32) -> (i32, i32, i32) {
    %c0_i32 = arith.constant 0 : i32
    %c0_i32_0 = arith.constant 0 : i32
    %c0_i32_1 = arith.constant 0 : i32
    %c0_i32_2 = arith.constant 0 : i32
    return %c0_i32, %c0_i32_0, %c0_i32_1 : i32, i32, i32
  }
  func.func @transform_8(%arg0: i32) -> (i32, i32, i32) {
    %c0_i32 = arith.constant 0 : i32
    %c0_i32_0 = arith.constant 0 : i32
    %c0_i32_1 = arith.constant 0 : i32
    %c0_i32_2 = arith.constant 0 : i32
    return %c0_i32, %c0_i32_0, %c0_i32_1 : i32, i32, i32
  }
  func.func @transform_9(%arg0: i32) -> (i32, i32, i32) {
    %c0_i32 = arith.constant 0 : i32
    %c0_i32_0 = arith.constant 0 : i32
    %c0_i32_1 = arith.constant 0 : i32
    %c0_i32_2 = arith.constant 0 : i32
    return %c0_i32, %c0_i32_0, %c0_i32_1 : i32, i32, i32
  }
  func.func @transform_10(%arg0: i32) -> (i32, i32, i32) {
    %c0_i32 = arith.constant 0 : i32
    %c0_i32_0 = arith.constant 0 : i32
    %c0_i32_1 = arith.constant 0 : i32
    %c0_i32_2 = arith.constant 0 : i32
    return %c0_i32, %c0_i32_0, %c0_i32_1 : i32, i32, i32
  }
  func.func @transform_11(%arg0: i32) -> (i32, i32, i32) {
    %c0_i32 = arith.constant 0 : i32
    %c0_i32_0 = arith.constant 0 : i32
    %c0_i32_1 = arith.constant 0 : i32
    %c0_i32_2 = arith.constant 0 : i32
    return %c0_i32, %c0_i32_0, %c0_i32_1 : i32, i32, i32
  }
  func.func @transform_12(%arg0: i32) -> (i32, i32, i32) {
    %c0_i32 = arith.constant 0 : i32
    %c0_i32_0 = arith.constant 0 : i32
    %c0_i32_1 = arith.constant 0 : i32
    %c0_i32_2 = arith.constant 0 : i32
    return %c0_i32, %c0_i32_0, %c0_i32_1 : i32, i32, i32
  }
  func.func @transform_13(%arg0: i32) -> (i32, i32, i32) {
    %c0_i32 = arith.constant 0 : i32
    %c0_i32_0 = arith.constant 0 : i32
    %c0_i32_1 = arith.constant 0 : i32
    %c0_i32_2 = arith.constant 0 : i32
    return %c0_i32, %c0_i32_0, %c0_i32_1 : i32, i32, i32
  }
  func.func @transform_14(%arg0: i32) -> (i32, i32, i32) {
    %c0_i32 = arith.constant 0 : i32
    %c0_i32_0 = arith.constant 0 : i32
    %c0_i32_1 = arith.constant 0 : i32
    %c0_i32_2 = arith.constant 0 : i32
    return %c0_i32, %c0_i32_0, %c0_i32_1 : i32, i32, i32
  }
  func.func @transform_15(%arg0: i32) -> (i32, i32, i32) {
    %c0_i32 = arith.constant 0 : i32
    %c0_i32_0 = arith.constant 0 : i32
    %c0_i32_1 = arith.constant 0 : i32
    %c0_i32_2 = arith.constant 0 : i32
    return %c0_i32, %c0_i32_0, %c0_i32_1 : i32, i32, i32
  }
  func.func @transform_16(%arg0: i32) -> (i32, i32) {
    %c0_i32 = arith.constant 0 : i32
    %c0_i32_0 = arith.constant 0 : i32
    %c0_i32_1 = arith.constant 0 : i32
    return %c0_i32, %c0_i32_0 : i32, i32
  }
  func.func @transform_17(%arg0: i32) -> (i32, i32) {
    %c0_i32 = arith.constant 0 : i32
    %c0_i32_0 = arith.constant 0 : i32
    %c0_i32_1 = arith.constant 0 : i32
    return %c0_i32, %c0_i32_0 : i32, i32
  }
  func.func @transform_18(%arg0: i32) -> (i32, i32, i32) {
    %c0_i32 = arith.constant 0 : i32
    %c0_i32_0 = arith.constant 0 : i32
    %c0_i32_1 = arith.constant 0 : i32
    return %arg0, %c0_i32, %c0_i32_0 : i32, i32, i32
  }
  func.func @transform_19(%arg0: i32) -> (i32, i32, i32) {
    %c0_i32 = arith.constant 0 : i32
    %c0_i32_0 = arith.constant 0 : i32
    %c0_i32_1 = arith.constant 0 : i32
    return %arg0, %c0_i32, %c0_i32_0 : i32, i32, i32
  }
  func.func @transform_20(%arg0: i32) -> (i32, i32, i32) {
    %c0_i32 = arith.constant 0 : i32
    %c0_i32_0 = arith.constant 0 : i32
    %c0_i32_1 = arith.constant 0 : i32
    return %arg0, %c0_i32, %c0_i32_0 : i32, i32, i32
  }
}

</mosaic_0001>

<bundles_post_ra>
// kernel: tpu_custom_call.1
= control target key start
LH: loop header
LB: loop body
LE: loop exit
PB: predicated region body
PF: predicated region fallthrough
CT: control target
= control target key end

     0   :  { %s5851_s0 = inlined_call_operand.vmem [shape: f32[4,16,64], index: 0, kind: input, shape index: {}]   ;;  %s5852_s1 = inlined_call_operand.vmem [shape: f32[2,2,16], index: 1, kind: input, shape index: {}]   ;;  %s5853_s2 = inlined_call_operand.vmem [shape: s32[2,32,1], index: 2, kind: input, shape index: {}]   ;;  %s5854_s3 = inlined_call_operand.vmem [shape: bf16[64,128], index: 3, kind: input, shape index: {}]   ;;  %s5855_s4 = inlined_call_operand.vmem [shape: f32[2,1,64], index: 4, kind: input, shape index: {}]   ;;  %s5856_s5 = inlined_call_operand.vmem [shape: f32[2,1,64], index: 5, kind: input, shape index: {}]   ;;  %s5857_s6 = inlined_call_operand.vmem [shape: bf16[2,64,192], index: 6, kind: input, shape index: {}]   ;;  %s5858_s7 = inlined_call_operand.vmem [shape: f32[2,1,192], index: 7, kind: input, shape index: {}]   ;;  %s5859_s8 = inlined_call_operand.vmem [shape: bf16[2,64,64], index: 8, kind: input, shape index: {}]   ;;  %s5860_s9 = inlined_call_operand.vmem [shape: f32[2,1,64], index: 9, kind: input, shape index: {}]   ;;  %s5861_s10 = inlined_call_operand.vmem [shape: f32[2,1,64], index: 10, kind: input, shape index: {}]   ;;  %s5862_s11 = inlined_call_operand.vmem [shape: f32[2,1,64], index: 11, kind: input, shape index: {}]   ;;  %s5863_s12 = inlined_call_operand.vmem [shape: bf16[2,64,256], index: 12, kind: input, shape index: {}]   ;;  %s5864_s13 = inlined_call_operand.vmem [shape: f32[2,1,256], index: 13, kind: input, shape index: {}]   ;;  %s5865_s14 = inlined_call_operand.vmem [shape: bf16[2,256,64], index: 14, kind: input, shape index: {}]   ;;  %s5866_s15 = inlined_call_operand.vmem [shape: f32[2,1,64], index: 15, kind: input, shape index: {}]   ;;  %s5867_s16 = inlined_call_operand.vmem [shape: f32[1,64], index: 16, kind: input, shape index: {}]   ;;  %s5868_s17 = inlined_call_operand.vmem [shape: f32[1,64], index: 17, kind: input, shape index: {}]   ;;  %s5869_s18 = inlined_call_operand.hbm [shape: f32[4,16,128], index: 18, kind: output, shape index: {0}]   ;;  %s5870_s19 = inlined_call_operand.hbm [shape: f32[2,1,128], index: 19, kind: output, shape index: {1}]   ;;  %s5871_s20 = inlined_call_operand.hbm [shape: f32[2,1,128], index: 20, kind: output, shape index: {2}]  }
   0x1   :  { %5889 = sst [smem:[#allocation15_spill]] %s5851_s0 }
   0x2   :  { %5890 = sst [smem:[#allocation16_spill]] %s5852_s1 }
   0x3   :  { %5891 = sst [smem:[#allocation17_spill]] %s5853_s2 }
   0x4   :  { %5892 = sst [smem:[#allocation18_spill]] %s5854_s3 }
   0x5   :  { %5893 = sst [smem:[#allocation19_spill]] %s5855_s4 }
   0x6   :  { %5894 = sst [smem:[#allocation20_spill]] %s5856_s5 }
   0x7   :  { %5895 = sst [smem:[#allocation21_spill]] %s5857_s6 }
   0x8   :  { %5896 = sst [smem:[#allocation22_spill]] %s5858_s7 }
   0x9   :  { %5897 = sst [smem:[#allocation23_spill]] %s5859_s8 }
   0xa   :  { %26 = vsyncpa [#allocation3], 0 }
   0xb   :  { %28 = vsyncpa [#allocation3 + $0x1], 0 }
   0xc   :  { %29 = vsyncpa [#allocation5], 0 }
   0xd   :  { %31 = vsyncpa [#allocation5 + $0x1], 0  ;;  %s4816_s1 = smov 0   ;;  %s4818_s22 = smov 0  }
   0xe   :  { %s4820_s23 = smov 0   ;;  %s4822_s24 = smov 0  }
   0xf LB: > { %5898 = sst [smem:[#allocation9_spill]] %s4684_s1  ;;  %s4837_s2 = sadd.s32 4294967295, %s4696_s24   ;;  %s4696_s24 = sphi %s4822_s24, %s5923_s24   ;;  %s4692_s23 = sphi %s4820_s23, %s5925_s23   ;;  %s4688_s22 = sphi %s4818_s22, %s5927_s22   ;;  %s4684_s1 = sphi %s4816_s1, %s5926_s1  }
  0x10   : > { %5899 = sst [smem:[#allocation10_spill]] %s4692_s23  ;;  %s5874_s25 = sadd.s32 4294967294, %s4696_s24  }
  0x11   : > { %5900 = sst [smem:[#allocation11_spill]] %s4696_s24  ;;  %s4841_s3 = sadd.s32 1, %s4696_s24  }
  0x12   : > { %5901 = sst [smem:[#allocation12_spill]] %s4841_s3  ;;  %s437_s26 = sadd.s32 1, %s4692_s23 }
  0x13   : > { %s434_s27 = ssub.s32 %s4696_s24, %s4841_s3  ;;  %p447_p0 = scmp.ne.s32.totalorder %s4692_s23, %s4688_s22 }
  0x14   : > { %p435_p1 = scmp.eq.s32.totalorder %s434_s27, 0  ;;  %p448_p2 = scmp.eq.s32.totalorder %s4837_s2, 1 }
  0x15   : > { %p453_p3 = scmp.ne.s32.totalorder %s4688_s22, %s4684_s1  ;;  %p454_p4 = scmp.eq.s32.totalorder %s5874_s25, 1 }
  0x16   : > { %s4854_s28 = scalar_select %p435_p1, %s4692_s23, %s437_s26  }
  0x17   : > { %p4856_p5 = por %p448_p2, %p447_p0  ;;  %p4860_p6 = por %p454_p4, %p453_p3 }
  0x18   : > { %5902 = sst [smem:[#allocation13_spill]] %s4854_s28  ;;  %p3797_p7 = scmp.ge.s32.totalorder %s4696_s24, 1 }
  0x19   : > { %s5904_s29 = scalar_select %p4860_p6, 1, 0 }
  0x1a   : > { %p594_p8 = scmp.lt.s32.totalorder %s4696_s24, 3 }
  0x1b   : > { %5905 = sst [smem:[#allocation14_spill]] %s5904_s29 }
  0x1c   : > { %p595_p9 = pnand %p3797_p7, %p594_p8 }
  0x1d   : > { %s3799_s30 = sshll.u32 (!%p595_p9), %s4837_s2, 1  ;;  %vm752_vm0 = vcmask (!%p595_p9), 523264   ;;  %s5906_s27 = sld [smem:[#allocation15_spill]] (!%p595_p9)  ;;  %v4698_v36 = vmov (!%p595_p9), 0   ;;  %vm4700_vm1 = vmmov (!%p595_p9), 0   ;;  %vm954_vm2 = vcmask (!%p595_p9), 261120  }
  0x1e   : > { %598 = sbr.rel (%p595_p9) target bundleno = 7402 (0x1cea), region = 92  ;;  %p671_p10 = scmp.lt.s32.totalorder (!%p595_p9), %s3799_s30, 3  ;;  %926 = vmatprep.mubr.bf16.mxu0 (!%p595_p9), %v4698_v36  ;;  %4327 = vset.pattern.permute.xlu1 (!%p595_p9), %v4698_v36  ;;  %vm1060_vm11 = vcmask (!%p595_p9), 130048  }
  0x1f   : > { %s5907_s6 = sld [smem:[#allocation21_spill]] (!%p595_p9)  ;;  %4326 = vset.pattern.permute.xlu0 (!%p595_p9), %v4698_v36  ;;  %s5908_s3 = sld [smem:[#allocation19_spill]] (!%p595_p9) }
  0x20   : > { %s5909_s5 = sld [smem:[#allocation20_spill]] (!%p595_p9)  ;;  %s5910_s7 = sld [smem:[#allocation22_spill]] (!%p595_p9) }
  0x21   : > { %s5884_s26 = smov (!%p595_p9), 64   ;;  %p677_p11 = scmp.lt.s32.totalorder (!%p595_p9), %s4837_s2, 1 }
  0x22   : > { %s5911_s29 = sld [smem:[#allocation16_spill]] (!%p595_p9)  ;;  %s5880_s21 = smov (!%p595_p9), 96  }
  0x23   : > { %s5912_s8 = sld [smem:[#allocation23_spill]] (!%p595_p9)  ;;  %s5914_s23 = smov (!%p595_p9), 32  }
  0x24   : > { %s4004_s24 = sshll.u32 (!%p595_p9), %s4837_s2, 9 }
  0x25   : > { %s5929_s30 = smov (!%p671_p10, %s3799_s30), 3  ;;  %v4328_v28 = vld [vmem:[%s5907_s6 + $0x4] ss:$8 sps:$4 sm:$0xff]   ;;  %v4330_v29 = vld [vmem:[%s5907_s6] ss:$8 sps:$4 sm:$0xff]  }
  0x26   : > { %s4001_s0 = sshll.u32 %s5929_s30, 4  ;;  %894 = vmatprep.subr.bf16.mxu0 %v4328_v28  ;;  %v4331_v30 = vld [vmem:[%s5907_s6 + $0x14] ss:$8 sps:$4 sm:$0xff]   ;;  %v4333_v31 = vld [vmem:[%s5907_s6 + $0x10] ss:$8 sps:$4 sm:$0xff]  }
  0x27   : > { %s4870_s25 = scalar_lea.vmem %s5906_s27, %s4001_s0  ;;  %895 = vmatpush1.bf16.msra.mxu0 %v4330_v29  ;;  %v4334_v32 = vld [vmem:[%s5907_s6 + $0x24] ss:$8 sps:$4 sm:$0xff]   ;;  %v4336_v33 = vld [vmem:[%s5907_s6 + $0x20] ss:$8 sps:$4 sm:$0xff]   ;;  %v4337_v34 = vld [vmem:[%s5907_s6 + $0x34] ss:$8 sps:$4 sm:$0xff]  }
  0x28   : > { %v4873_v0 = vld [vmem:[%s4870_s25] sm:$0xff]  ;;  %v4876_v1 = vld [vmem:[%s4870_s25 + $0x10] sm:$0xff]  ;;  %v689_v2 = vld [vmem:[%s4870_s25 + $0x8] sm:$0xff]  ;;  %896 = vmatprep.subr.bf16.mxu0 %v4331_v30  ;;  %s4983_s28 = scalar_select %p677_p11, %s4837_s2, 1 }
  0x29   : > { %v753_v3 = vsel %vm752_vm0, %v4873_v0, 0.0  ;;  %v759_v4 = vsel %vm752_vm0, %v4876_v1, 0.0  ;;  %v756_v5 = vsel %vm752_vm0, %v689_v2, 0.0  ;;  %v691_v6 = vld [vmem:[%s4870_s25 + $0x18] sm:$0xff]  ;;  %v3805_v51 = vld [vmem:[%s5908_s3] ss:$0 sm:$0xff] }
  0x2a   : > { %754 = vadd.xlane.f32.xlu0 %v753_v3  ;;  %760 = vadd.xlane.f32.xlu1 %v759_v4  ;;  %v762_v7 = vsel %vm752_vm0, %v691_v6, 0.0  ;;  %v4339_v35 = vld [vmem:[%s5907_s6 + $0x30] ss:$8 sps:$4 sm:$0xff]   ;;  %v3806_v56 = vld [vmem:[%s5909_s5] ss:$0 sm:$0xff]  ;;  %s3802_s27 = sshll.u32 %s4983_s28, 1 }
  0x2b   : > { %897 = vmatpush1.bf16.msra.mxu0 %v4333_v31  ;;  %s680_s30 = scalar_lea.vmem %s5911_s29, %s3802_s27  ;;  %s5882_s0 = smov 32  }
  0x2c   : > { %898 = vmatprep.subr.bf16.mxu0 %v4334_v32  ;;  %s5662_s27 = sand.u32 1, %s4688_s22   ;;  %s4706_s29 = smov [#allocation2]  }
  0x2d   : > { %s3798_s1 = sshll.u32 %s5662_s27, 5 }
  0x2e   : > { %757 = vadd.xlane.f32.xlu0 %v756_v5  ;;  %763 = vadd.xlane.f32.xlu1 %v762_v7  ;;  %v692_v7 = vlaneseq }
  0x2f   : > { %899 = vmatpush1.bf16.msra.mxu0 %v4336_v33 }
  0x30   : > { %900 = vmatprep.subr.bf16.mxu0 %v4337_v34 }
  0x33   : > { %901 = vmatpush1.bf16.msra.mxu0 %v4339_v35 }
  0xb7   : > { %v755_v8 = vpop.xlane.xlu0 %754  ;;  %v761_v9 = vpop.xlane.xlu1 %760 }
  0xb8   : > { %v766_v10 = vmul.f32 0.015625, %v755_v8  ;;  %v768_v11 = vmul.f32 0.015625, %v761_v9  ;;  %v4934_v8 = vshrl.u32 %v692_v7, 7 }
  0xba   : > { %v770_v12 = vsub.f32 %v4873_v0, %v766_v10  ;;  %v4888_v13 = vsub.f32 %v4876_v1, %v768_v11  ;;  %v4937_v9 = vsub.s32 0, %v4934_v8  ;;  %v4699_v10 = vmov 0.0   ;;  %v836_v11 = vld [vmem:[%s5910_s7] sm:$0x3] }
  0xbb   : > { %v758_v14 = vpop.xlane.xlu0 %757  ;;  %v764_v15 = vpop.xlane.xlu1 %763  ;;  %4111 = vmatprep.subr.bf16.mxu0 %v4699_v10  ;;  %4117 = vmatprep.subr.bf16.mxu1 %v4699_v10 }
  0xbc   : > { %v767_v16 = vmul.f32 0.015625, %v758_v14  ;;  %v769_v17 = vmul.f32 0.015625, %v764_v15  ;;  %v774_v18 = vmul.f32 %v770_v12, %v770_v12  ;;  %v776_v19 = vmul.f32 %v4888_v13, %v4888_v13  ;;  %4119 = vmatprep.mubr.msk.bf16.mxu1 %vm4700_vm1, %v4699_v10 }
  0xbe   : > { %v771_v20 = vsub.f32 %v689_v2, %v767_v16  ;;  %v773_v21 = vsub.f32 %v691_v6, %v769_v17  ;;  %v778_v22 = vsel %vm752_vm0, %v774_v18, 0.0  ;;  %v784_v23 = vsel %vm752_vm0, %v776_v19, 0.0 }
  0xbf   : > { %779 = vadd.xlane.f32.xlu0 %v778_v22 }
  0xc0   : > { %v775_v24 = vmul.f32 %v771_v20, %v771_v20  ;;  %v777_v25 = vmul.f32 %v773_v21, %v773_v21 }
  0xc2   : > { %v781_v26 = vsel %vm752_vm0, %v775_v24, 0.0  ;;  %v787_v27 = vsel %vm752_vm0, %v777_v25, 0.0 }
  0xc3   : > { %785 = vadd.xlane.f32.xlu0 %v784_v23  ;;  %782 = vadd.xlane.f32.xlu1 %v781_v26 }
  0xc7   : > { %788 = vadd.xlane.f32.xlu1 %v787_v27 }
 0x14c   : > { %v780_v37 = vpop.xlane.xlu0 %779 }
 0x14d   : > { %v790_v38 = vmul.f32 0.015625, %v780_v37 }
 0x14f   : > { %v794_v39 = vadd.f32 1e-05, %v790_v38 }
 0x150   : > { %v783_v40 = vpop.xlane.xlu1 %782  ;;  %v786_v41 = vpop.xlane.xlu0 %785 }
 0x151   : > { %4420 = vrsqrt.f32 %v794_v39  ;;  %v791_v42 = vmul.f32 0.015625, %v783_v40  ;;  %v792_v43 = vmul.f32 0.015625, %v786_v41  ;;  %v4702_v40 = vmov 1966171168  }
 0x152   : > { %v703_v41 = vunpack.c.l.s4 %v4702_v40 }
 0x153   : > { %v795_v44 = vadd.f32 1e-05, %v791_v42  ;;  %v796_v45 = vadd.f32 1e-05, %v792_v43  ;;  %v699_v42 = vld [vmem:[%s680_s30] sm:$0x3] }
 0x154   : > { %v789_v46 = vpop.xlane.xlu1 %788  ;;  %v704_v43 = vunpack.c.0.s8 %v703_v41  ;;  %vm700_vm3 = vcmp.gt.f32.partialorder %v699_v42, 0.5  ;;  %s4578_s30 = sshll.u32 %s4706_s29, 4  ;;  %s4579_s30 = int_to_ptr.vmem [resolvable:$false] %s4578_s30 }
 0x155   : > { %4422 = vrsqrt.f32 %v795_v44  ;;  %v793_v47 = vmul.f32 0.015625, %v789_v46 }
 0x156   : > { %4424 = vrsqrt.f32 %v796_v45  ;;  %v707_v44 = vsub.s32 %v704_v43, %v4934_v8  ;;  %v701_v45 = vsel %vm700_vm3, 1, %v4698_v36 }
 0x157   : > { %v797_v48 = vadd.f32 1e-05, %v793_v47 }
 0x158   : > { %v708_v46 = vrot.slane %v701_v45, %v707_v44 }
 0x159   : > { %4426 = vrsqrt.f32 %v797_v48 }
 0x15a   : > { %v716_v47 = vrot.slane %v708_v46, %v707_v44  ;;  %v709_v48 = vcombine.high %v708_v46, %v708_v46 }
 0x15b   : > { %v4421_v49 = vpop.eup %4420 }
 0x15c   : > { %v802_v50 = vmul.f32 %v4421_v49, %v770_v12  ;;  %v4945_v12 = vsub.s32 1, %v4934_v8  ;;  %vm724_vm4 = vcmp.ne.s32.totalorder %v716_v47, 0 }
 0x15d   : > { %v730_v49 = vsel %vm724_vm4, 1, %v4698_v36 }
 0x15e   : > { %v812_v54 = vmul.f32 %v3805_v51, %v802_v50  ;;  %v845_v15 = vrot.slane %v836_v11, %v4945_v12  ;;  %v723_v50 = vrot.slane %v709_v48, %v707_v44 }
 0x15f   : > { %v4423_v52 = vpop.eup %4422 }
 0x160   : > { %v803_v53 = vmul.f32 %v4423_v52, %v771_v20  ;;  %v4425_v55 = vpop.eup %4424  ;;  %v822_v60 = vadd.f32 %v3806_v56, %v812_v54  ;;  %v735_v52 = vrot.slane %v730_v49, %v4937_v9  ;;  %vm725_vm5 = vcmp.ne.s32.totalorder %v723_v50, 0 }
 0x161   : > { %v804_v59 = vmul.f32 %v4425_v55, %v4888_v13  ;;  %v841_v13 = vrot.slane %v836_v11, %v4937_v9  ;;  %v731_v54 = vsel %vm725_vm5, 1, %v4698_v36  ;;  %vm3561_vm5 = vcmask 7168  }
 0x162   : > { %v813_v57 = vmul.f32 %v3805_v51, %v803_v53  ;;  %v694_v53 = vadd.s32 8, %v4934_v8  ;;  %vm740_vm7 = vcmp.eq.s32.totalorder %v735_v52, 1  ;;  %v739_v55 = vrot.slane %v731_v54, %v4937_v9 }
 0x163   : > { %v4427_v58 = vpop.eup %4426  ;;  %v814_v3 = vmul.f32 %v3805_v51, %v804_v59 }
 0x164   : > { %v823_v61 = vadd.f32 %v3806_v56, %v813_v57  ;;  %v805_v62 = vmul.f32 %v4427_v58, %v773_v21  ;;  %v4703_v57 = vmov -1e+30   ;;  %vm741_vm12 = vcmp.eq.s32.totalorder %v739_v55, 1 }
 0x165   : > { %v824_v5 = vadd.f32 %v3806_v56, %v814_v3 }
 0x166   : > { %v826_v63 = vpack.c.bf16 %v823_v61, %v822_v60  ;;  %v815_v2 = vmul.f32 %v3805_v51, %v805_v62  ;;  %v4993_v51 = vand.u32 127, %v692_v7 }
 0x168   : > { %3815 = vmatmul.mubr.msk.bf16.vlgmr.msra.gmra.mrb[0].mxu0 %vm752_vm0, %v826_v63  ;;  %v825_v4 = vadd.f32 %v3806_v56, %v815_v2  ;;  %vm697_vm6 = vcmp.le.s32.totalorder %v4993_v51, %v4934_v8  ;;  %vm698_vm8 = vcmp.le.s32.totalorder %v4993_v51, %v694_v53 }
 0x169   : > { %936 = vmatprep.mubr.bf16.mxu0 %v4698_v36  ;;  %vm742_vm9 = vmand %vm697_vm6, %vm740_vm7 }
 0x16a   : > { %v827_v6 = vpack.c.bf16 %v825_v4, %v824_v5  ;;  %vm743_vm10 = vmand %vm698_vm8, %vm740_vm7  ;;  %v5007_v58 = vsel %vm742_vm9, 0.0, %v4703_v57 }
 0x16b   : > { %v5009_v62 = vsel %vm743_vm10, 0.0, %v4703_v57  ;;  %vm744_vm13 = vmand %vm697_vm6, %vm741_vm12 }
 0x16c   : > { %vm745_vm14 = vmand %vm698_vm8, %vm741_vm12  ;;  %v5020_v11 = vsel %vm744_vm13, 0.0, %v4703_v57 }
 0x170   : > { %3816 = vmatmul.mubr.msk.bf16.gmra.mrb[4].mxu0 %vm752_vm0, %v827_v6 }
 0x171   : > { %4113 = vmatprep.mubr.msk.bf16.mxu0 %vm4700_vm1, %v4699_v10 }
 0x23b   : > { %v928_v14 = vpop.f32.mrb[0].mxu0 }
 0x23c   : > { %v930_v16 = vpop.f32.mrb[1].mxu0  ;;  %v929_v18 = vadd.f32 %v928_v14, %v841_v13 }
 0x23d   : > { %v932_v17 = vpop.f32.mrb[2].mxu0  ;;  %v931_v21 = vadd.f32 %v930_v16, %v845_v15  ;;  %v5022_v16 = vsel %vm745_vm14, 0.0, %v4703_v57 }
 0x23e   : > { %v933_v19 = vadd.f32 %v932_v17, %v841_v13  ;;  %v934_v20 = vpop.f32.mrb[3].mxu0 }
 0x23f   : > { %v935_v22 = vadd.f32 %v934_v20, %v845_v15 }
 0x240   : > { %v4953_v23 = vpack.c.bf16 %v933_v19, %v929_v18 }
 0x241   : > { %v4955_v24 = vpack.c.bf16 %v935_v22, %v931_v21 }
 0x242   : > { %952 = vrot.lane.b32.xlu0 %v4953_v23, %s5884_s26 }
 0x243   : > { %v938_v25 = vpop.f32.mrb[4].mxu0 }
 0x244   : > { %v940_v26 = vpop.f32.mrb[5].mxu0  ;;  %v939_v28 = vadd.f32 %v938_v25, %v841_v13 }
 0x245   : > { %v942_v27 = vpop.f32.mrb[6].mxu0  ;;  %v941_v31 = vadd.f32 %v940_v26, %v845_v15 }
 0x246   : > { %v943_v29 = vadd.f32 %v942_v27, %v841_v13  ;;  %v944_v30 = vpop.f32.mrb[7].mxu0 }
 0x247   : > { %v945_v32 = vadd.f32 %v944_v30, %v845_v15 }
 0x248   : > { %v4959_v33 = vpack.c.bf16 %v943_v29, %v939_v28 }
 0x249   : > { %v4961_v34 = vpack.c.bf16 %v945_v32, %v941_v31 }
 0x24a   : > { %1003 = vrot.lane.b32.xlu1 %v4959_v33, %s5884_s26  ;;  %s4002_s26 = sshll.u32 %s4983_s28, 5 }
 0x2b4   : > { %v953_v35 = vpop.permute.xlu0 %952 }
 0x2b5   : > { %v959_v37 = vsel %vm954_vm2, %v953_v35, 0 }
 0x2b6   : > { %4112 = vmatpush3.bf16.xpose.msra.mxu0 %v959_v37 }
 0x2b7   : > { %4129 = vmatprep.subr.bf16.mxu0 %v4699_v10 }
 0x2bc   : > { %v1004_v38 = vpop.permute.xlu1 %1003 }
 0x2bd   : > { %4114 = vmatmul.mubr.msk.bf16.vlgmr.msra.gmra.mrb[8].mxu0 %vm954_vm2, %v4953_v23  ;;  %v1009_v39 = vsel %vm954_vm2, %v1004_v38, 0 }
 0x2be   : > { %4118 = vmatpush3.bf16.xpose.msra.mxu1 %v1009_v39  ;;  %4130 = vmatpush3.bf16.msra.mxu0 %v4961_v34 }
 0x2bf   : > { %4123 = vmatprep.subr.bf16.mxu1 %v4699_v10  ;;  %4131 = vmatprep.mubr.msk.bf16.mxu0 %vm4700_vm1, %v4699_v10 }
 0x2c0   : > { %4141 = vmatprep.subr.bf16.mxu0 %v4699_v10 }
 0x2c5   : > { %4120 = vmatmul.mubr.msk.bf16.vlgmr.msra.gmra.mrb[0].mxu1 %vm954_vm2, %v4959_v33 }
 0x2c6   : > { %4124 = vmatpush3.bf16.msra.mxu1 %v4955_v24  ;;  %4125 = vmatprep.mubr.msk.bf16.mxu1 %vm4700_vm1, %v4699_v10 }
 0x2c7   : > { %4135 = vmatprep.subr.bf16.mxu1 %v4699_v10 }
 0x390   : > { %v995_v56 = vpop.f32.mrb[8].mxu0 }
 0x391   : > { %v1052_v59 = vmul.f32 0.17677669, %v995_v56  ;;  %v4115_v60 = vpop.f32.mrb[9].mxu0 }
 0x392   : > { %v998_v61 = vpop.f32.mrb[10].mxu0 }
 0x393   : > { %v1053_v63 = vmul.f32 0.17677669, %v998_v61  ;;  %v4116_v2 = vpop.f32.mrb[11].mxu0  ;;  %v1056_v3 = vadd.f32 %v1052_v59, %v5007_v58 }
 0x395   : > { %v1061_v4 = vsel %vm1060_vm11, %v1056_v3, -inf  ;;  %v1057_v5 = vadd.f32 %v1053_v63, %v5009_v62 }
 0x396   : > { %1062 = vmax.xlane.f32.xlu1 %v1061_v4 }
 0x397   : > { %v1064_v6 = vsel %vm1060_vm11, %v1057_v5, -inf }
 0x398   : > { %v1045_v7 = vpop.f32.mrb[0].mxu1  ;;  %1065 = vmax.xlane.f32.xlu0 %v1064_v6 }
 0x399   : > { %v1054_v13 = vmul.f32 0.17677669, %v1045_v7  ;;  %v4121_v14 = vpop.f32.mrb[1].mxu1 }
 0x39a   : > { %v1048_v15 = vpop.f32.mrb[2].mxu1 }
 0x39b   : > { %v1055_v17 = vmul.f32 0.17677669, %v1048_v15  ;;  %v4122_v18 = vpop.f32.mrb[3].mxu1  ;;  %v1058_v8 = vadd.f32 %v1054_v13, %v5020_v11 }
 0x39d   : > { %v1067_v19 = vsel %vm1060_vm11, %v1058_v8, -inf  ;;  %v1059_v20 = vadd.f32 %v1055_v17, %v5022_v16 }
 0x39e   : > { %1068 = vmax.xlane.f32.xlu0 %v1067_v19 }
 0x39f   : > { %v1070_v21 = vsel %vm1060_vm11, %v1059_v20, -inf }
 0x3a0   : > { %1071 = vmax.xlane.f32.xlu1 %v1070_v21 }
 0x423   : > { %v1063_v22 = vpop.xlane.xlu1 %1062 }
 0x424   : > { %v1073_v25 = vsub.f32 %v1056_v3, %v1063_v22 }
 0x425   : > { %v1066_v26 = vpop.xlane.xlu0 %1065 }
 0x426   : > { %v1077_v27 = vmul.f32 1.442695, %v1073_v25  ;;  %v1074_v28 = vsub.f32 %v1057_v5, %v1066_v26 }
 0x428   : > { %4428 = vpow2.f32 %v1077_v27  ;;  %v1079_v29 = vmul.f32 1.442695, %v1074_v28 }
 0x42a   : > { %4430 = vpow2.f32 %v1079_v29 }
 0x42b   : > { %v1069_v30 = vpop.xlane.xlu0 %1068 }
 0x42c   : > { %v1075_v31 = vsub.f32 %v1058_v8, %v1069_v30 }
 0x42d   : > { %v1072_v42 = vpop.xlane.xlu1 %1071 }
 0x42e   : > { %v1081_v32 = vmul.f32 1.442695, %v1075_v31  ;;  %v1076_v43 = vsub.f32 %v1059_v20, %v1072_v42 }
 0x430   : > { %4432 = vpow2.f32 %v1081_v32  ;;  %v1083_v44 = vmul.f32 1.442695, %v1076_v43 }
 0x432   : > { %v4429_v35 = vpop.eup %4428  ;;  %4434 = vpow2.f32 %v1083_v44 }
 0x433   : > { %v1085_v37 = vsel %vm1060_vm11, %v4429_v35, 0.0 }
 0x434   : > { %v4431_v38 = vpop.eup %4430  ;;  %1086 = vadd.xlane.f32.xlu0 %v1085_v37 }
 0x435   : > { %v1088_v39 = vsel %vm1060_vm11, %v4431_v38, 0.0 }
 0x436   : > { %1089 = vadd.xlane.f32.xlu1 %v1088_v39 }
 0x43a   : > { %v4433_v40 = vpop.eup %4432 }
 0x43b   : > { %v1091_v41 = vsel %vm1060_vm11, %v4433_v40, 0.0 }
 0x43c   : > { %1092 = vadd.xlane.f32.xlu0 %v1091_v41  ;;  %v4435_v45 = vpop.eup %4434 }
 0x43d   : > { %v1094_v46 = vsel %vm1060_vm11, %v4435_v45, 0.0 }
 0x447   : > { %1248 = vrot.lane.b32.xlu1 %v4959_v33, %s5882_s0 }
 0x452   : > { %1197 = vrot.lane.b32.xlu0 %v4953_v23, %s5882_s0 }
 0x46b   : > { %1095 = vadd.xlane.f32.xlu1 %v1094_v46 }
 0x47c   : > { %1195 = vrot.lane.b32.xlu1 %v4953_v23, %s5880_s21 }
 0x480   : > { %1246 = vrot.lane.b32.xlu1 %v4959_v33, %s5880_s21 }
 0x4c1   : > { %v1087_v47 = vpop.xlane.xlu0 %1086 }
 0x4c2   : > { %4436 = vrcp.f32 %v1087_v47 }
 0x4c3   : > { %v1090_v48 = vpop.xlane.xlu1 %1089 }
 0x4c4   : > { %4438 = vrcp.f32 %v1090_v48 }
 0x4c7   : > { %v1249_v23 = vpop.permute.xlu1 %1248 }
 0x4c8   : > { %v1254_v4 = vsel %vm954_vm2, %v1249_v23, 0 }
 0x4c9   : > { %v1093_v49 = vpop.xlane.xlu0 %1092 }
 0x4ca   : > { %4440 = vrcp.f32 %v1093_v49 }
 0x4cc   : > { %v4437_v50 = vpop.eup %4436 }
 0x4cd   : > { %v1101_v53 = vmul.f32 %v4437_v50, %v4429_v35  ;;  %v1198_v55 = vpop.permute.xlu0 %1197 }
 0x4ce   : > { %v4439_v52 = vpop.eup %4438  ;;  %v1203_v57 = vsel %vm954_vm2, %v1198_v55, 0 }
 0x4cf   : > { %v1102_v54 = vmul.f32 %v4439_v52, %v4431_v38 }
 0x4d1   : > { %v1105_v56 = vpack.c.bf16 %v1102_v54, %v1101_v53 }
 0x4d3   : > { %4126 = vmatmul.mubr.msk.bf16.vlgmr.msra.gmra.mrb[4].mxu1 %vm1060_vm11, %v1105_v56 }
 0x4d4   : > { %4136 = vmatpush3.bf16.xpose.msra.mxu1 %v1203_v57  ;;  %4137 = vmatprep.mubr.msk.bf16.mxu1 %vm4700_vm1, %v4699_v10  ;;  %v4441_v60 = vpop.eup %4440 }
 0x4d5   : > { %4147 = vmatprep.subr.bf16.mxu1 %v4699_v10  ;;  %v1103_v63 = vmul.f32 %v4441_v60, %v4433_v40 }
 0x4f8   : > { %v1096_v33 = vpop.xlane.xlu1 %1095 }
 0x4f9   : > { %4442 = vrcp.f32 %v1096_v33 }
 0x4fc   : > { %v1196_v59 = vpop.permute.xlu1 %1195 }
 0x4fd   : > { %4138 = vmatmul.mubr.msk.bf16.vlgmr.msra.gmra.mrb[8].mxu1 %vm954_vm2, %v1196_v59 }
 0x4fe   : > { %4149 = vmatprep.mubr.msk.bf16.mxu1 %vm4700_vm1, %v4699_v10 }
 0x500   : > { %v1247_v5 = vpop.permute.xlu1 %1246 }
 0x503   : > { %v4443_v61 = vpop.eup %4442 }
 0x504   : > { %v1104_v2 = vmul.f32 %v4443_v61, %v4435_v45 }
 0x506   : > { %v1106_v3 = vpack.c.bf16 %v1104_v2, %v1103_v63 }
 0x508   : > { %4132 = vmatmul.mubr.msk.bf16.vlgmr.msra.gmra.mrb[12].mxu0 %vm1060_vm11, %v1106_v3 }
 0x509   : > { %4142 = vmatpush3.bf16.xpose.msra.mxu0 %v1254_v4  ;;  %4143 = vmatprep.mubr.msk.bf16.mxu0 %vm4700_vm1, %v4699_v10 }
 0x50a   : > { %4153 = vmatprep.subr.bf16.mxu0 %v4699_v10 }
 0x510   : > { %4144 = vmatmul.mubr.msk.bf16.vlgmr.msra.gmra.mrb[16].mxu0 %vm954_vm2, %v1247_v5 }
 0x511   : > { %4155 = vmatprep.mubr.msk.bf16.mxu0 %vm4700_vm1, %v4699_v10 }
 0x5a6   : > { %v5056_v6 = vpop.f32.mrb[4].mxu1 }
 0x5a7   : > { %v4127_v7 = vpop.f32.mrb[5].mxu1 }
 0x5a8   : > { %v5058_v13 = vpop.f32.mrb[6].mxu1 }
 0x5a9   : > { %v4128_v14 = vpop.f32.mrb[7].mxu1 }
 0x5d0   : > { %v1239_v15 = vpop.f32.mrb[8].mxu1 }
 0x5d1   : > { %v1297_v17 = vmul.f32 0.17677669, %v1239_v15  ;;  %v4139_v18 = vpop.f32.mrb[9].mxu1 }
 0x5d2   : > { %v1242_v8 = vpop.f32.mrb[10].mxu1 }
 0x5d3   : > { %v1298_v19 = vmul.f32 0.17677669, %v1242_v8  ;;  %v4140_v20 = vpop.f32.mrb[11].mxu1  ;;  %v1301_v21 = vadd.f32 %v1297_v17, %v5007_v58 }
 0x5d5   : > { %v1305_v22 = vsel %vm1060_vm11, %v1301_v21, -inf  ;;  %v1302_v25 = vadd.f32 %v1298_v19, %v5009_v62 }
 0x5d6   : > { %1306 = vmax.xlane.f32.xlu0 %v1305_v22 }
 0x5d7   : > { %v1308_v26 = vsel %vm1060_vm11, %v1302_v25, -inf }
 0x5d8   : > { %1309 = vmax.xlane.f32.xlu1 %v1308_v26  ;;  %v4340_v26 = vld [vmem:[%s5912_s8] sm:$0xff]  }
 0x5db   : > { %v5064_v27 = vpop.f32.mrb[12].mxu0 }
 0x5dc   : > { %v4133_v28 = vpop.f32.mrb[13].mxu0 }
 0x5dd   : > { %v5066_v29 = vpop.f32.mrb[14].mxu0  ;;  %v4341_v28 = vld [vmem:[%s5912_s8 + $0x8] sm:$0xff]  }
 0x5de   : > { %v4134_v30 = vpop.f32.mrb[15].mxu0 }
 0x5df   : > { %v4342_v30 = vld [vmem:[%s5912_s8 + $0x10] sm:$0xff]  }
 0x5e3   : > { %v1290_v31 = vpop.f32.mrb[16].mxu0 }
 0x5e4   : > { %v1299_v32 = vmul.f32 0.17677669, %v1290_v31  ;;  %v4145_v35 = vpop.f32.mrb[17].mxu0 }
 0x5e5   : > { %v1293_v37 = vpop.f32.mrb[18].mxu0 }
 0x5e6   : > { %v1300_v38 = vmul.f32 0.17677669, %v1293_v37  ;;  %v4146_v39 = vpop.f32.mrb[19].mxu0  ;;  %v1303_v40 = vadd.f32 %v1299_v32, %v5020_v11 }
 0x5e7   : > { %v4343_v39 = vld [vmem:[%s5912_s8 + $0x18] sm:$0xff]  }
 0x5e8   : > { %v1311_v41 = vsel %vm1060_vm11, %v1303_v40, -inf  ;;  %v1304_v42 = vadd.f32 %v1300_v38, %v5022_v16 }
 0x5e9   : > { %1312 = vmax.xlane.f32.xlu0 %v1311_v41 }
 0x5ea   : > { %v1314_v43 = vsel %vm1060_vm11, %v1304_v42, -inf }
 0x5ed   : > { %1315 = vmax.xlane.f32.xlu0 %v1314_v43 }
 0x663   : > { %v1307_v44 = vpop.xlane.xlu0 %1306 }
 0x664   : > { %v1317_v45 = vsub.f32 %v1301_v21, %v1307_v44 }
 0x665   : > { %v1310_v46 = vpop.xlane.xlu1 %1309 }
 0x666   : > { %v1321_v47 = vmul.f32 1.442695, %v1317_v45  ;;  %v1318_v48 = vsub.f32 %v1302_v25, %v1310_v46 }
 0x668   : > { %4444 = vpow2.f32 %v1321_v47  ;;  %v1323_v49 = vmul.f32 1.442695, %v1318_v48 }
 0x66a   : > { %4446 = vpow2.f32 %v1323_v49 }
 0x672   : > { %v4445_v50 = vpop.eup %4444 }
 0x673   : > { %v1329_v52 = vsel %vm1060_vm11, %v4445_v50, 0.0 }
 0x674   : > { %v4447_v53 = vpop.eup %4446  ;;  %1330 = vadd.xlane.f32.xlu0 %v1329_v52 }
 0x675   : > { %v1332_v54 = vsel %vm1060_vm11, %v4447_v53, 0.0 }
 0x676   : > { %1333 = vadd.xlane.f32.xlu1 %v1332_v54  ;;  %v1313_v55 = vpop.xlane.xlu0 %1312 }
 0x677   : > { %v1319_v56 = vsub.f32 %v1303_v40, %v1313_v55 }
 0x679   : > { %v1325_v57 = vmul.f32 1.442695, %v1319_v56 }
 0x67a   : > { %v1316_v23 = vpop.xlane.xlu0 %1315 }
 0x67b   : > { %4448 = vpow2.f32 %v1325_v57  ;;  %v1320_v33 = vsub.f32 %v1304_v42, %v1316_v23 }
 0x67d   : > { %v1327_v59 = vmul.f32 1.442695, %v1320_v33 }
 0x67f   : > { %4450 = vpow2.f32 %v1327_v59 }
 0x685   : > { %v4449_v60 = vpop.eup %4448 }
 0x686   : > { %v1335_v61 = vsel %vm1060_vm11, %v4449_v60, 0.0 }
 0x687   : > { %1336 = vadd.xlane.f32.xlu0 %v1335_v61 }
 0x689   : > { %v4451_v63 = vpop.eup %4450 }
 0x68a   : > { %v1338_v2 = vsel %vm1060_vm11, %v4451_v63, 0.0 }
 0x68b   : > { %1339 = vadd.xlane.f32.xlu1 %v1338_v2 }
 0x69c   : > { %1400 = vrot.lane.b32.xlu1 %v4961_v34, %s5880_s21 }
 0x69d   : > { %1352 = vrot.lane.b32.xlu0 %v4955_v24, %s5880_s21  ;;  %s5665_s21 = scalar_lea.vmem [#allocation2], %s3798_s1  ;;  %s4580_s1 = scalar_lea.vmem %s4579_s30, 1024 }
 0x701   : > { %v1331_v4 = vpop.xlane.xlu0 %1330 }
 0x703   : > { %v1334_v3 = vpop.xlane.xlu1 %1333 }
 0x704   : > { %4452 = vrcp.f32 %v1334_v3  ;;  %v4572_v3 = vld [vmem:[%s4870_s25 + $0x8] sm:$0xff] }
 0x705   : > { %4454 = vrcp.f32 %v1331_v4 }
 0x70e   : > { %v4453_v5 = vpop.eup %4452 }
 0x70f   : > { %v4455_v14 = vpop.eup %4454  ;;  %v1346_v15 = vmul.f32 %v4453_v5, %v4447_v53 }
 0x710   : > { %v1345_v17 = vmul.f32 %v4455_v14, %v4445_v50  ;;  %v4573_v14 = vld [vmem:[%s4870_s25 + $0x18] sm:$0xff]  ;;  %s5915_s25 = smov 96  }
 0x712   : > { %v1349_v19 = vpack.c.bf16 %v1346_v15, %v1345_v17 }
 0x714   : > { %v1337_v7 = vpop.xlane.xlu0 %1336 }
 0x715   : > { %4456 = vrcp.f32 %v1337_v7 }
 0x718   : > { %v1340_v18 = vpop.xlane.xlu1 %1339  ;;  %v1353_v8 = vpop.permute.xlu0 %1352 }
 0x719   : > { %4458 = vrcp.f32 %v1340_v18  ;;  %4148 = vmatpush3.bf16.msra.mxu1 %v1353_v8 }
 0x71a   : > { %4159 = vmatprep.subr.bf16.mxu1 %v4340_v26 }
 0x71c   : > { %v1401_v20 = vpop.permute.xlu1 %1400  ;;  %4150 = vmatmul.mubr.msk.bf16.vlgmr.msra.gmra.mrb[12].mxu1 %vm1060_vm11, %v1349_v19 }
 0x71d   : > { %4154 = vmatpush3.bf16.msra.mxu0 %v1401_v20  ;;  %4160 = vmatpush3.bf16.msra.mxu1 %v4340_v26 }
 0x71e   : > { %4161 = vmatprep.subr.bf16.mxu1 %v4341_v28 }
 0x71f   : > { %v4457_v24 = vpop.eup %4456 }
 0x720   : > { %v1347_v21 = vmul.f32 %v4457_v24, %v4449_v60 }
 0x721   : > { %4162 = vmatpush3.bf16.msra.mxu1 %v4341_v28 }
 0x722   : > { %4163 = vmatprep.subr.bf16.mxu1 %v4342_v30 }
 0x723   : > { %v4459_v34 = vpop.eup %4458 }
 0x724   : > { %v1348_v22 = vmul.f32 %v4459_v34, %v4451_v63 }
 0x725   : > { %4164 = vmatpush3.bf16.msra.mxu1 %v4342_v30 }
 0x726   : > { %v1350_v25 = vpack.c.bf16 %v1348_v22, %v1347_v21  ;;  %4165 = vmatprep.subr.bf16.mxu1 %v4343_v39 }
 0x728   : > { %4156 = vmatmul.mubr.msk.bf16.vlgmr.msra.gmra.mrb[20].mxu0 %vm1060_vm11, %v1350_v25 }
 0x729   : > { %1741 = vmatprep.mubr.bf16.mxu0 %v4698_v36  ;;  %4166 = vmatpush3.bf16.msra.mxu1 %v4343_v39 }
 0x7ef   : > { %v1392_v31 = vpop.f32.mrb[12].mxu1 }
 0x7f0   : > { %v4151_v32 = vpop.f32.mrb[13].mxu1 }
 0x7f1   : > { %v1395_v35 = vpop.f32.mrb[14].mxu1 }
 0x7f2   : > { %v4306_v37 = vpack.i.bf16 %v1395_v35, %v1392_v31  ;;  %v4152_v38 = vpop.f32.mrb[15].mxu1 }
 0x7f4   : > { %4307 = vrot.lane.b32.xlu1 %v4306_v37, %s5882_s0 }
 0x7fb   : > { %v1440_v40 = vpop.f32.mrb[20].mxu0 }
 0x7fc   : > { %v4157_v41 = vpop.f32.mrb[21].mxu0 }
 0x7fd   : > { %v1443_v42 = vpop.f32.mrb[22].mxu0  ;;  %v4346_v41 = vld [vmem:[%s5863_s12 + $0x4] ss:$8 sps:$4 sm:$0xff]  }
 0x7fe   : > { %v4311_v43 = vpack.i.bf16 %v1443_v42, %v1440_v40  ;;  %v4158_v44 = vpop.f32.mrb[23].mxu0  ;;  %v4344_v42 = vld [vmem:[%s5863_s12] ss:$8 sps:$4 sm:$0xff]   ;;  %1709 = vmatprep.subr.bf16.mxu0 %v4346_v41 }
 0x7ff   : > { %1710 = vmatpush1.bf16.msra.mxu0 %v4344_v42  ;;  %v4347_v44 = vld [vmem:[%s5863_s12 + $0x10] ss:$8 sps:$4 sm:$0xff]   ;;  %v4367_v41 = vld [vmem:[%s5865_s14 + $0x28] sm:$0xff]  }
 0x800   : > { %4312 = vrot.lane.b32.xlu1 %v4311_v43, %s5882_s0  ;;  %v4349_v43 = vld [vmem:[%s5863_s12 + $0x14] ss:$8 sps:$4 sm:$0xff]   ;;  %s5913_s0 = smov 64  }
 0x801   : > { %1711 = vmatprep.subr.bf16.mxu0 %v4349_v43  ;;  %v4368_v42 = vld [vmem:[%s5865_s14 + $0x70] sm:$0xff]  }
 0x802   : > { %v4369_v43 = vld [vmem:[%s5865_s14 + $0x30] sm:$0xff]  }
 0x803   : > { %1712 = vmatpush1.bf16.msra.mxu0 %v4347_v44  ;;  %v4370_v44 = vld [vmem:[%s5865_s14 + $0x78] sm:$0xff]  }
 0x866   : > { %v4308_v45 = vpop.permute.xlu1 %4307 }
 0x867   : > { %v4310_v46 = vunpack.i.h.bf16 %v4308_v45  ;;  %v4309_v47 = vunpack.i.l.bf16 %v4308_v45  ;;  %v4352_v45 = vld [vmem:[%s5863_s12 + $0x24] ss:$8 sps:$4 sm:$0xff]  }
 0x868   : > { %1713 = vmatprep.subr.bf16.mxu0 %v4352_v45  ;;  %v4371_v45 = vld [vmem:[%s5865_s14 + $0x38] sm:$0xff]  }
 0x869   : > { %v1464_v48 = vsel %vm954_vm2, %v5058_v13, %v4310_v46  ;;  %v1463_v49 = vsel %vm954_vm2, %v5056_v6, %v4309_v47  ;;  %v3825_v6 = vld [vmem:[%s5860_s9] ss:$0 sm:$0xff]  ;;  %v4355_v47 = vld [vmem:[%s5863_s12 + $0x34] ss:$8 sps:$4 sm:$0xff]  }
 0x86a   : > { %v1467_v50 = vpack.c.bf16 %v1464_v48, %v1463_v49  ;;  %v4350_v46 = vld [vmem:[%s5863_s12 + $0x20] ss:$8 sps:$4 sm:$0xff]   ;;  %v4353_v48 = vld [vmem:[%s5863_s12 + $0x30] ss:$8 sps:$4 sm:$0xff]  }
 0x86b   : > { %1714 = vmatpush1.bf16.msra.mxu0 %v4350_v46  ;;  %v1651_v46 = vld [vmem:[%s5864_s13] sm:$0x3] }
 0x86c   : > { %4167 = vmatprep.mubr.msk.bf16.mxu1 %vm752_vm0, %v1467_v50  ;;  %1715 = vmatprep.subr.bf16.mxu0 %v4355_v47  ;;  %v1656_v47 = vrot.slane %v1651_v46, %v4937_v9 }
 0x86f   : > { %1716 = vmatpush1.bf16.msra.mxu0 %v4353_v48  ;;  %v1660_v48 = vrot.slane %v1651_v46, %v4945_v12 }
 0x872   : > { %v4313_v52 = vpop.permute.xlu1 %4312 }
 0x873   : > { %v4315_v53 = vunpack.i.h.bf16 %v4313_v52  ;;  %v4314_v54 = vunpack.i.l.bf16 %v4313_v52 }
 0x875   : > { %v1466_v55 = vsel %vm954_vm2, %v5066_v29, %v4315_v53  ;;  %v1465_v56 = vsel %vm954_vm2, %v5064_v27, %v4314_v54 }
 0x876   : > { %v1468_v57 = vpack.c.bf16 %v1466_v55, %v1465_v56 }
 0x878   : > { %4168 = vmatmul.mubr.msk.bf16.vlgmr.msra.gmra.mrb[16].mxu1 %vm752_vm0, %v1468_v57 }
 0x94b   : > { %v4169_v13 = vpop.f32.mrb[16].mxu1 }
 0x94c   : > { %v1548_v23 = vpop.f32.mrb[17].mxu1  ;;  %v1557_v33 = vadd.f32 %v4169_v13, %v3825_v6 }
 0x94d   : > { %v1549_v59 = vadd.f32 %v3825_v6, %v1548_v23  ;;  %v4170_v60 = vpop.f32.mrb[18].mxu1 }
 0x94e   : > { %v1551_v61 = vpop.f32.mrb[19].mxu1  ;;  %v5114_v27 = vadd.f32 %v1557_v33, %v4876_v1  ;;  %v1560_v2 = vadd.f32 %v4170_v60, %v3825_v6  ;;  %v3832_v60 = vld [vmem:[%s5861_s10] ss:$0 sm:$0xff] }
 0x94f   : > { %v5111_v63 = vadd.f32 %v1549_v59, %v4873_v0  ;;  %v1552_v29 = vadd.f32 %v3825_v6, %v1551_v61 }
 0x950   : > { %v5124_v15 = vadd.f32 %v4573_v14, %v1560_v2  ;;  %v1575_v0 = vsel %vm752_vm0, %v5114_v27, 0.0 }
 0x951   : > { %v5117_v4 = vadd.f32 %v4572_v3, %v1552_v29  ;;  %v1569_v5 = vsel %vm752_vm0, %v5111_v63, 0.0 }
 0x952   : > { %1570 = vadd.xlane.f32.xlu0 %v1569_v5  ;;  %v1578_v1 = vsel %vm752_vm0, %v5124_v15, 0.0 }
 0x953   : > { %v1572_v7 = vsel %vm752_vm0, %v5117_v4, 0.0 }
 0x954   : > { %1573 = vadd.xlane.f32.xlu1 %v1572_v7  ;;  %v3833_v7 = vld [vmem:[%s5862_s11] ss:$0 sm:$0xff] }
 0x956   : > { %1576 = vadd.xlane.f32.xlu0 %v1575_v0 }
 0x95a   : > { %1579 = vadd.xlane.f32.xlu0 %v1578_v1 }
 0x9df   : > { %v1571_v17 = vpop.xlane.xlu0 %1570 }
 0x9e0   : > { %v1581_v18 = vmul.f32 0.015625, %v1571_v17 }
 0x9e1   : > { %v1574_v8 = vpop.xlane.xlu1 %1573 }
 0x9e2   : > { %v1585_v19 = vsub.f32 %v5111_v63, %v1581_v18  ;;  %v1582_v20 = vmul.f32 0.015625, %v1574_v8 }
 0x9e3   : > { %v1577_v24 = vpop.xlane.xlu0 %1576 }
 0x9e4   : > { %v1586_v34 = vsub.f32 %v5117_v4, %v1582_v20  ;;  %v1583_v21 = vmul.f32 0.015625, %v1577_v24  ;;  %v1589_v22 = vmul.f32 %v1585_v19, %v1585_v19 }
 0x9e6   : > { %v1587_v25 = vsub.f32 %v5114_v27, %v1583_v21  ;;  %v1593_v26 = vsel %vm752_vm0, %v1589_v22, 0.0  ;;  %v1590_v28 = vmul.f32 %v1586_v34, %v1586_v34 }
 0x9e7   : > { %1594 = vadd.xlane.f32.xlu0 %v1593_v26  ;;  %v1580_v30 = vpop.xlane.xlu0 %1579  ;;  %v4357_v26 = vld [vmem:[%s5865_s14] sm:$0xff]  }
 0x9e8   : > { %v1584_v31 = vmul.f32 0.015625, %v1580_v30  ;;  %v1596_v32 = vsel %vm752_vm0, %v1590_v28, 0.0  ;;  %v1591_v35 = vmul.f32 %v1587_v25, %v1587_v25  ;;  %v4358_v28 = vld [vmem:[%s5865_s14 + $0x48] sm:$0xff]  }
 0x9e9   : > { %1597 = vadd.xlane.f32.xlu1 %v1596_v32  ;;  %v4359_v30 = vld [vmem:[%s5865_s14 + $0x8] sm:$0xff]   ;;  %v4361_v32 = vld [vmem:[%s5865_s14 + $0x10] sm:$0xff]  }
 0x9ea   : > { %v1588_v37 = vsub.f32 %v5124_v15, %v1584_v31  ;;  %v1599_v38 = vsel %vm752_vm0, %v1591_v35, 0.0  ;;  %v4360_v31 = vld [vmem:[%s5865_s14 + $0x50] sm:$0xff]   ;;  %v4362_v35 = vld [vmem:[%s5865_s14 + $0x58] sm:$0xff]  }
 0x9eb   : > { %1600 = vadd.xlane.f32.xlu0 %v1599_v38  ;;  %v4364_v38 = vld [vmem:[%s5865_s14 + $0x60] sm:$0xff]  }
 0x9ec   : > { %v1592_v39 = vmul.f32 %v1588_v37, %v1588_v37 }
 0x9ee   : > { %v1602_v40 = vsel %vm752_vm0, %v1592_v39, 0.0  ;;  %v4365_v39 = vld [vmem:[%s5865_s14 + $0x20] sm:$0xff]  }
 0x9ef   : > { %1603 = vadd.xlane.f32.xlu1 %v1602_v40  ;;  %v4366_v40 = vld [vmem:[%s5865_s14 + $0x68] sm:$0xff]  }
 0xa74   : > { %v1595_v49 = vpop.xlane.xlu0 %1594 }
 0xa75   : > { %v1605_v50 = vmul.f32 0.015625, %v1595_v49 }
 0xa76   : > { %v1598_v52 = vpop.xlane.xlu1 %1597 }
 0xa77   : > { %v1609_v53 = vadd.f32 1e-05, %v1605_v50  ;;  %v1606_v54 = vmul.f32 0.015625, %v1598_v52 }
 0xa78   : > { %v1601_v55 = vpop.xlane.xlu0 %1600 }
 0xa79   : > { %4460 = vrsqrt.f32 %v1609_v53  ;;  %v1610_v56 = vadd.f32 1e-05, %v1606_v54  ;;  %v1607_v57 = vmul.f32 0.015625, %v1601_v55 }
 0xa7b   : > { %4462 = vrsqrt.f32 %v1610_v56  ;;  %v1611_v6 = vadd.f32 1e-05, %v1607_v57 }
 0xa7c   : > { %v1604_v13 = vpop.xlane.xlu1 %1603 }
 0xa7d   : > { %4464 = vrsqrt.f32 %v1611_v6  ;;  %v1608_v23 = vmul.f32 0.015625, %v1604_v13 }
 0xa7f   : > { %v1612_v33 = vadd.f32 1e-05, %v1608_v23 }
 0xa81   : > { %4466 = vrsqrt.f32 %v1612_v33 }
 0xa83   : > { %v4461_v59 = vpop.eup %4460 }
 0xa84   : > { %v1617_v61 = vmul.f32 %v4461_v59, %v1585_v19 }
 0xa85   : > { %v4463_v29 = vpop.eup %4462 }
 0xa86   : > { %v1627_v2 = vmul.f32 %v3832_v60, %v1617_v61  ;;  %v1618_v3 = vmul.f32 %v4463_v29, %v1586_v34 }
 0xa87   : > { %v4465_v5 = vpop.eup %4464 }
 0xa88   : > { %v1628_v14 = vmul.f32 %v3832_v60, %v1618_v3  ;;  %v1619_v0 = vmul.f32 %v4465_v5, %v1587_v25  ;;  %v1637_v1 = vadd.f32 %v3833_v7, %v1627_v2  ;;  %v4356_v25 = vld [vmem:[%s5865_s14 + $0x40] sm:$0xff]  }
 0xa89   : > { %4027 = vmatprep.subr.bf16.mxu1 %v4356_v25 }
 0xa8a   : > { %v1638_v17 = vadd.f32 %v3833_v7, %v1628_v14  ;;  %v1629_v24 = vmul.f32 %v3832_v60, %v1619_v0  ;;  %4028 = vmatpush3.bf16.msra.mxu1 %v4357_v26 }
 0xa8b   : > { %v4467_v18 = vpop.eup %4466  ;;  %4029 = vmatprep.subr.bf16.mxu1 %v4358_v28 }
 0xa8c   : > { %v1620_v8 = vmul.f32 %v4467_v18, %v1588_v37  ;;  %v1641_v20 = vpack.c.bf16 %v1638_v17, %v1637_v1  ;;  %v1639_v34 = vadd.f32 %v3833_v7, %v1629_v24  ;;  %v4363_v37 = vld [vmem:[%s5865_s14 + $0x18] sm:$0xff]  }
 0xa8e   : > { %3842 = vmatmul.mubr.msk.bf16.vlgmr.msra.gmra.mrb[24].mxu0 %vm752_vm0, %v1641_v20  ;;  %v1630_v21 = vmul.f32 %v3832_v60, %v1620_v8  ;;  %4030 = vmatpush3.bf16.msra.mxu1 %v4359_v30 }
 0xa8f   : > { %1751 = vmatprep.mubr.bf16.mxu0 %v4698_v36  ;;  %4031 = vmatprep.subr.bf16.mxu1 %v4360_v31 }
 0xa90   : > { %v1640_v19 = vadd.f32 %v3833_v7, %v1630_v21 }
 0xa92   : > { %v1642_v22 = vpack.c.bf16 %v1640_v19, %v1639_v34  ;;  %4032 = vmatpush3.bf16.msra.mxu1 %v4361_v32 }
 0xa93   : > { %4033 = vmatprep.subr.bf16.mxu1 %v4362_v35 }
 0xa96   : > { %3843 = vmatmul.mubr.msk.bf16.gmra.mrb[28].mxu0 %vm752_vm0, %v1642_v22  ;;  %4034 = vmatpush3.bf16.msra.mxu1 %v4363_v37 }
 0xa97   : > { %2204 = vmatprep.mubr.bf16.mxu0 %v4698_v36  ;;  %4035 = vmatprep.subr.bf16.mxu1 %v4364_v38 }
 0xa9a   : > { %4036 = vmatpush3.bf16.msra.mxu1 %v4365_v39 }
 0xa9b   : > { %4037 = vmatprep.subr.bf16.mxu1 %v4366_v40 }
 0xa9e   : > { %4038 = vmatpush3.bf16.msra.mxu1 %v4367_v41 }
 0xa9f   : > { %4039 = vmatprep.subr.bf16.mxu1 %v4368_v42 }
 0xaa2   : > { %4040 = vmatpush3.bf16.msra.mxu1 %v4369_v43 }
 0xaa3   : > { %4041 = vmatprep.subr.bf16.mxu1 %v4370_v44 }
 0xaa6   : > { %4042 = vmatpush3.bf16.msra.mxu1 %v4371_v45 }
 0xaa7   : > { %4183 = vmatprep.subr.bf16.mxu1 %v4699_v10 }
 0xb61   : > { %v1743_v49 = vpop.f32.mrb[24].mxu0 }
 0xb62   : > { %v5226_v50 = vadd.f32 %v1743_v49, %v1656_v47  ;;  %v1745_v52 = vpop.f32.mrb[25].mxu0 }
 0xb63   : > { %v5228_v53 = vadd.f32 %v1745_v52, %v1660_v48  ;;  %v1747_v54 = vpop.f32.mrb[26].mxu0 }
 0xb64   : > { %v1770_v55 = vmul.f32 0.044715, %v5226_v50  ;;  %v5231_v56 = vadd.f32 %v1747_v54, %v1656_v47  ;;  %v1749_v57 = vpop.f32.mrb[27].mxu0 }
 0xb65   : > { %v1771_v6 = vmul.f32 0.044715, %v5228_v53  ;;  %v5234_v13 = vadd.f32 %v1749_v57, %v1660_v48 }
 0xb66   : > { %v1778_v23 = vmul.f32 %v1770_v55, %v5226_v50  ;;  %v1772_v33 = vmul.f32 0.044715, %v5231_v56 }
 0xb67   : > { %v1779_v59 = vmul.f32 %v1771_v6, %v5228_v53  ;;  %v1773_v60 = vmul.f32 0.044715, %v5234_v13 }
 0xb68   : > { %v1786_v61 = vmul.f32 %v1778_v23, %v5226_v50  ;;  %v1780_v29 = vmul.f32 %v1772_v33, %v5231_v56 }
 0xb69   : > { %v1787_v2 = vmul.f32 %v1779_v59, %v5228_v53  ;;  %v1781_v3 = vmul.f32 %v1773_v60, %v5234_v13  ;;  %v1753_v5 = vpop.f32.mrb[28].mxu0 }
 0xb6a   : > { %v1794_v7 = vadd.f32 %v1786_v61, %v5226_v50  ;;  %v1788_v14 = vmul.f32 %v1780_v29, %v5231_v56  ;;  %v5246_v0 = vadd.f32 %v1753_v5, %v1656_v47  ;;  %v1755_v1 = vpop.f32.mrb[29].mxu0  ;;  %v1762_v29 = vmul.f32 0.5, %v5226_v50 }
 0xb6b   : > { %v1789_v17 = vmul.f32 %v1781_v3, %v5234_v13  ;;  %v5249_v18 = vadd.f32 %v1755_v1, %v1660_v48  ;;  %v1757_v8 = vpop.f32.mrb[30].mxu0  ;;  %v1795_v20 = vadd.f32 %v1787_v2, %v5228_v53  ;;  %v1764_v2 = vmul.f32 0.5, %v5231_v56 }
 0xb6c   : > { %v1802_v24 = vmul.f32 0.7978846, %v1794_v7  ;;  %v1796_v21 = vadd.f32 %v1788_v14, %v5231_v56  ;;  %v1774_v19 = vmul.f32 0.044715, %v5246_v0  ;;  %v1758_v34 = vadd.f32 %v1757_v8, %v1656_v47  ;;  %v1759_v22 = vpop.f32.mrb[31].mxu0 }
 0xb6d   : > { %v1775_v25 = vmul.f32 0.044715, %v5249_v18  ;;  %v1760_v26 = vadd.f32 %v1759_v22, %v1660_v48  ;;  %v1797_v28 = vadd.f32 %v1789_v17, %v5234_v13  ;;  %v1803_v30 = vmul.f32 0.7978846, %v1795_v20 }
 0xb6e   : > { %4468 = vtanh.f32 %v1802_v24  ;;  %v1804_v31 = vmul.f32 0.7978846, %v1796_v21  ;;  %v1782_v32 = vmul.f32 %v1774_v19, %v5246_v0  ;;  %v1776_v35 = vmul.f32 0.044715, %v1758_v34 }
 0xb6f   : > { %v1783_v37 = vmul.f32 %v1775_v25, %v5249_v18  ;;  %v1777_v38 = vmul.f32 0.044715, %v1760_v26  ;;  %v1805_v39 = vmul.f32 0.7978846, %v1797_v28  ;;  %4470 = vtanh.f32 %v1803_v30 }
 0xb70   : > { %4472 = vtanh.f32 %v1804_v31  ;;  %v1790_v40 = vmul.f32 %v1782_v32, %v5246_v0  ;;  %v1784_v41 = vmul.f32 %v1776_v35, %v1758_v34  ;;  %v1763_v5 = vmul.f32 0.5, %v5228_v53 }
 0xb71   : > { %v1791_v42 = vmul.f32 %v1783_v37, %v5249_v18  ;;  %v1785_v43 = vmul.f32 %v1777_v38, %v1760_v26  ;;  %4474 = vtanh.f32 %v1805_v39  ;;  %v1765_v7 = vmul.f32 0.5, %v5234_v13 }
 0xb72   : > { %v1792_v44 = vmul.f32 %v1784_v41, %v1758_v34  ;;  %v1798_v45 = vadd.f32 %v1790_v40, %v5246_v0  ;;  %v1766_v56 = vmul.f32 0.5, %v5246_v0  ;;  %v1768_v53 = vmul.f32 0.5, %v1758_v34  ;;  %v3844_v0 = vld [vmem:[%s5866_s15] ss:$0 sm:$0xff] }
 0xb73   : > { %v1793_v46 = vmul.f32 %v1785_v43, %v1760_v26  ;;  %v1799_v47 = vadd.f32 %v1791_v42, %v5249_v18  ;;  %v1767_v13 = vmul.f32 0.5, %v5249_v18  ;;  %v1769_v32 = vmul.f32 0.5, %v1760_v26 }
 0xb74   : > { %v1800_v48 = vadd.f32 %v1792_v44, %v1758_v34  ;;  %v1806_v49 = vmul.f32 0.7978846, %v1798_v45 }
 0xb75   : > { %v1801_v52 = vadd.f32 %v1793_v46, %v1760_v26  ;;  %v1807_v54 = vmul.f32 0.7978846, %v1799_v47 }
 0xb76   : > { %v1808_v55 = vmul.f32 0.7978846, %v1800_v48  ;;  %4476 = vtanh.f32 %v1806_v49 }
 0xb77   : > { %v1809_v57 = vmul.f32 0.7978846, %v1801_v52  ;;  %4478 = vtanh.f32 %v1807_v54 }
 0xb78   : > { %v4469_v6 = vpop.eup %4468  ;;  %4480 = vtanh.f32 %v1808_v55 }
 0xb79   : > { %v4471_v23 = vpop.eup %4470  ;;  %v1818_v33 = vadd.f32 1.0, %v4469_v6  ;;  %4482 = vtanh.f32 %v1809_v57 }
 0xb7a   : > { %v4473_v59 = vpop.eup %4472  ;;  %v1819_v60 = vadd.f32 1.0, %v4471_v23 }
 0xb7b   : > { %v4475_v61 = vpop.eup %4474  ;;  %v1820_v3 = vadd.f32 1.0, %v4473_v59  ;;  %v1826_v1 = vmul.f32 %v1818_v33, %v1762_v29 }
 0xb7c   : > { %v1821_v14 = vadd.f32 1.0, %v4475_v61  ;;  %v1827_v8 = vmul.f32 %v1819_v60, %v1763_v5 }
 0xb7d   : > { %v1828_v17 = vmul.f32 %v1820_v3, %v1764_v2 }
 0xb7e   : > { %v1829_v20 = vmul.f32 %v1821_v14, %v1765_v7 }
 0xb7f   : > { %v1834_v24 = vpack.c.bf16 %v1828_v17, %v1826_v1 }
 0xb80   : > { %v4477_v21 = vpop.eup %4476  ;;  %v1835_v19 = vpack.c.bf16 %v1829_v20, %v1827_v8 }
 0xb81   : > { %v4479_v22 = vpop.eup %4478  ;;  %v1822_v25 = vadd.f32 1.0, %v4477_v21 }
 0xb82   : > { %v4481_v28 = vpop.eup %4480  ;;  %2005 = vmatprep.mubr.bf16.mxu1 %v1835_v19  ;;  %v1823_v50 = vadd.f32 1.0, %v4479_v22 }
 0xb83   : > { %v4483_v30 = vpop.eup %4482  ;;  %2006 = vmatmul.mubr.bf16.vlgmr.msra.gmra.mrb[20].mxu1 %v1834_v24  ;;  %v1824_v31 = vadd.f32 1.0, %v4481_v28  ;;  %v1830_v37 = vmul.f32 %v1822_v25, %v1766_v56 }
 0xb84   : > { %v1825_v35 = vadd.f32 1.0, %v4483_v30  ;;  %v1831_v39 = vmul.f32 %v1823_v50, %v1767_v13  ;;  %v4372_v13 = vld [vmem:[%s5907_s6 + $0x40] ss:$8 sps:$4 sm:$0xff]  }
 0xb85   : > { %v1832_v38 = vmul.f32 %v1824_v31, %v1768_v53  ;;  %v4374_v31 = vld [vmem:[%s5907_s6 + $0x44] ss:$8 sps:$4 sm:$0xff]  }
 0xb86   : > { %v1833_v40 = vmul.f32 %v1825_v35, %v1769_v32  ;;  %2172 = vmatprep.subr.bf16.mxu0 %v4374_v31  ;;  %v4377_v32 = vld [vmem:[%s5907_s6 + $0x54] ss:$8 sps:$4 sm:$0xff]   ;;  %v4375_v35 = vld [vmem:[%s5907_s6 + $0x50] ss:$8 sps:$4 sm:$0xff]  }
 0xb87   : > { %v1836_v41 = vpack.c.bf16 %v1832_v38, %v1830_v37  ;;  %2173 = vmatpush1.bf16.msra.mxu0 %v4372_v13  ;;  %v4380_v37 = vld [vmem:[%s5907_s6 + $0x64] ss:$8 sps:$4 sm:$0xff]   ;;  %v4378_v38 = vld [vmem:[%s5907_s6 + $0x60] ss:$8 sps:$4 sm:$0xff]  }
 0xb88   : > { %v1837_v42 = vpack.c.bf16 %v1833_v40, %v1831_v39  ;;  %2174 = vmatprep.subr.bf16.mxu0 %v4377_v32  ;;  %v4381_v39 = vld [vmem:[%s5907_s6 + $0x70] ss:$8 sps:$4 sm:$0xff]   ;;  %v4383_v40 = vld [vmem:[%s5907_s6 + $0x74] ss:$8 sps:$4 sm:$0xff]  }
 0xb8a   : > { %2013 = vmatprep.mubr.bf16.mxu1 %v1837_v42 }
 0xb8b   : > { %2014 = vmatmul.mubr.bf16.gmra.mrb[24].mxu1 %v1836_v41  ;;  %2175 = vmatpush1.bf16.msra.mxu0 %v4375_v35 }
 0xb8c   : > { %4185 = vmatprep.mubr.msk.bf16.mxu1 %vm4700_vm1, %v4699_v10  ;;  %2176 = vmatprep.subr.bf16.mxu0 %v4380_v37 }
 0xb8f   : > { %2177 = vmatpush1.bf16.msra.mxu0 %v4378_v38 }
 0xb90   : > { %2178 = vmatprep.subr.bf16.mxu0 %v4383_v40 }
 0xb93   : > { %2179 = vmatpush1.bf16.msra.mxu0 %v4381_v39 }
 0xb94   : > { %4171 = vmatprep.subr.bf16.mxu0 %v4699_v10 }
 0xc56   : > { %v4043_v43 = vpop.f32.mrb[20].mxu1 }
 0xc57   : > { %v4044_v34 = vpop.f32.mrb[21].mxu1 }
 0xc58   : > { %v4045_v18 = vadd.f32 %v4044_v34, %v4043_v43  ;;  %v4046_v26 = vpop.f32.mrb[22].mxu1 }
 0xc59   : > { %v4047_v44 = vpop.f32.mrb[23].mxu1 }
 0xc5a   : > { %v2008_v45 = vadd.f32 %v4045_v18, %v3844_v0  ;;  %v4048_v46 = vadd.f32 %v4047_v44, %v4046_v26 }
 0xc5c   : > { %v5274_v47 = vadd.f32 %v2008_v45, %v5111_v63  ;;  %v2011_v48 = vadd.f32 %v4048_v46, %v3844_v0 }
 0xc5e   : > { %v5277_v49 = vadd.f32 %v2011_v48, %v5117_v4  ;;  %v4049_v52 = vpop.f32.mrb[24].mxu1  ;;  %v2030_v54 = vsel %vm752_vm0, %v5274_v47, 0.0 }
 0xc5f   : > { %v4050_v55 = vpop.f32.mrb[25].mxu1  ;;  %2031 = vadd.xlane.f32.xlu0 %v2030_v54 }
 0xc60   : > { %v4051_v57 = vadd.f32 %v4050_v55, %v4049_v52  ;;  %v4052_v6 = vpop.f32.mrb[26].mxu1  ;;  %v2033_v23 = vsel %vm752_vm0, %v5277_v49, 0.0  ;;  %v3863_v55 = vld [vmem:[%s5908_s3 + $0x1] ss:$0 sm:$0xff]  ;;  %s5918_s3 = sld [smem:[#allocation17_spill]] }
 0xc61   : > { %v4053_v33 = vpop.f32.mrb[27].mxu1  ;;  %2034 = vadd.xlane.f32.xlu1 %v2033_v23 }
 0xc62   : > { %v2016_v59 = vadd.f32 %v4051_v57, %v3844_v0  ;;  %v4054_v63 = vadd.f32 %v4053_v33, %v4052_v6 }
 0xc64   : > { %v5284_v60 = vadd.f32 %v2016_v59, %v5114_v27  ;;  %v2019_v4 = vadd.f32 %v4054_v63, %v3844_v0  ;;  %v3864_v59 = vld [vmem:[%s5909_s5 + $0x1] ss:$0 sm:$0xff] }
 0xc66   : > { %v5287_v61 = vadd.f32 %v2019_v4, %v5124_v15  ;;  %v2036_v29 = vsel %vm752_vm0, %v5284_v60, 0.0  ;;  %s5647_s5 = scalar_lea.vmem %s5918_s3, %s4002_s26  ;;  %s3607_s3 = scalar_lea.sflag [#allocation3], %s5662_s27 }
 0xc67   : > { %2037 = vadd.xlane.f32.xlu0 %v2036_v29 }
 0xc68   : > { %v2039_v2 = vsel %vm752_vm0, %v5287_v61, 0.0 }
 0xc69   : > { %2040 = vadd.xlane.f32.xlu1 %v2039_v2 }
 0xcec   : > { %v2032_v3 = vpop.xlane.xlu0 %2031 }
 0xced   : > { %v2042_v5 = vmul.f32 0.015625, %v2032_v3 }
 0xcee   : > { %v2035_v7 = vpop.xlane.xlu1 %2034 }
 0xcef   : > { %v2046_v14 = vsub.f32 %v5274_v47, %v2042_v5  ;;  %v2043_v1 = vmul.f32 0.015625, %v2035_v7 }
 0xcf1   : > { %v2047_v27 = vsub.f32 %v5277_v49, %v2043_v1  ;;  %v2050_v17 = vmul.f32 %v2046_v14, %v2046_v14 }
 0xcf3   : > { %v2054_v15 = vsel %vm752_vm0, %v2050_v17, 0.0  ;;  %v2051_v8 = vmul.f32 %v2047_v27, %v2047_v27 }
 0xcf4   : > { %2055 = vadd.xlane.f32.xlu0 %v2054_v15  ;;  %v2038_v20 = vpop.xlane.xlu0 %2037 }
 0xcf5   : > { %v2044_v24 = vmul.f32 0.015625, %v2038_v20  ;;  %v2057_v21 = vsel %vm752_vm0, %v2051_v8, 0.0  ;;  %v3873_v20 = vld [vmem:[%s5910_s7 + $0x2] sm:$0x3] }
 0xcf6   : > { %2058 = vadd.xlane.f32.xlu1 %v2057_v21  ;;  %v2041_v19 = vpop.xlane.xlu1 %2040 }
 0xcf7   : > { %v2048_v22 = vsub.f32 %v5284_v60, %v2044_v24  ;;  %v2045_v25 = vmul.f32 0.015625, %v2041_v19  ;;  %v2119_v24 = vrot.slane %v3873_v20, %v4937_v9  ;;  %v2123_v19 = vrot.slane %v3873_v20, %v4945_v12 }
 0xcf9   : > { %v2049_v28 = vsub.f32 %v5287_v61, %v2045_v25  ;;  %v2052_v50 = vmul.f32 %v2048_v22, %v2048_v22 }
 0xcfb   : > { %v2060_v30 = vsel %vm752_vm0, %v2052_v50, 0.0  ;;  %v2053_v56 = vmul.f32 %v2049_v28, %v2049_v28 }
 0xcfc   : > { %2061 = vadd.xlane.f32.xlu0 %v2060_v30 }
 0xcfd   : > { %v2063_v53 = vsel %vm752_vm0, %v2053_v56, 0.0 }
 0xcfe   : > { %2064 = vadd.xlane.f32.xlu1 %v2063_v53 }
 0xd81   : > { %v2056_v41 = vpop.xlane.xlu0 %2055 }
 0xd82   : > { %v2066_v42 = vmul.f32 0.015625, %v2056_v41 }
 0xd83   : > { %v2059_v43 = vpop.xlane.xlu1 %2058 }
 0xd84   : > { %v2070_v0 = vadd.f32 1e-05, %v2066_v42  ;;  %v2067_v34 = vmul.f32 0.015625, %v2059_v43 }
 0xd86   : > { %4484 = vrsqrt.f32 %v2070_v0  ;;  %v2071_v18 = vadd.f32 1e-05, %v2067_v34 }
 0xd88   : > { %4486 = vrsqrt.f32 %v2071_v18 }
 0xd89   : > { %v2062_v26 = vpop.xlane.xlu0 %2061 }
 0xd8a   : > { %v2068_v44 = vmul.f32 0.015625, %v2062_v26 }
 0xd8b   : > { %v2065_v45 = vpop.xlane.xlu1 %2064 }
 0xd8c   : > { %v2072_v46 = vadd.f32 1e-05, %v2068_v44  ;;  %v2069_v48 = vmul.f32 0.015625, %v2065_v45 }
 0xd8e   : > { %4488 = vrsqrt.f32 %v2072_v46  ;;  %v2073_v52 = vadd.f32 1e-05, %v2069_v48 }
 0xd90   : > { %v4485_v54 = vpop.eup %4484  ;;  %4490 = vrsqrt.f32 %v2073_v52 }
 0xd91   : > { %v2078_v57 = vmul.f32 %v4485_v54, %v2046_v14 }
 0xd92   : > { %v4487_v6 = vpop.eup %4486 }
 0xd93   : > { %v2088_v23 = vmul.f32 %v3863_v55, %v2078_v57  ;;  %v2079_v33 = vmul.f32 %v4487_v6, %v2047_v27 }
 0xd95   : > { %v2089_v63 = vmul.f32 %v3863_v55, %v2079_v33  ;;  %v2098_v4 = vadd.f32 %v3864_v59, %v2088_v23 }
 0xd97   : > { %v2099_v29 = vadd.f32 %v3864_v59, %v2089_v63 }
 0xd98   : > { %v4489_v2 = vpop.eup %4488 }
 0xd99   : > { %v2080_v3 = vmul.f32 %v4489_v2, %v2048_v22  ;;  %v2102_v5 = vpack.c.bf16 %v2099_v29, %v2098_v4 }
 0xd9a   : > { %v4491_v7 = vpop.eup %4490 }
 0xd9b   : > { %v2081_v1 = vmul.f32 %v4491_v7, %v2049_v28  ;;  %3882 = vmatmul.mubr.msk.bf16.vlgmr.msra.gmra.mrb[32].mxu0 %vm752_vm0, %v2102_v5  ;;  %v2090_v17 = vmul.f32 %v3863_v55, %v2080_v3 }
 0xd9c   : > { %2214 = vmatprep.mubr.bf16.mxu0 %v4698_v36 }
 0xd9d   : > { %v2091_v14 = vmul.f32 %v3863_v55, %v2081_v1  ;;  %v2100_v15 = vadd.f32 %v3864_v59, %v2090_v17 }
 0xd9f   : > { %v2101_v27 = vadd.f32 %v3864_v59, %v2091_v14 }
 0xda1   : > { %v2103_v8 = vpack.c.bf16 %v2101_v27, %v2100_v15 }
 0xda3   : > { %3883 = vmatmul.mubr.msk.bf16.gmra.mrb[36].mxu0 %vm752_vm0, %v2103_v8 }
 0xda4   : > { %4173 = vmatprep.mubr.msk.bf16.mxu0 %vm4700_vm1, %v4699_v10 }
 0xe6e   : > { %v2206_v21 = vpop.f32.mrb[32].mxu0 }
 0xe6f   : > { %v2208_v22 = vpop.f32.mrb[33].mxu0  ;;  %v2207_v28 = vadd.f32 %v2206_v21, %v2119_v24 }
 0xe70   : > { %v2210_v25 = vpop.f32.mrb[34].mxu0  ;;  %v2209_v56 = vadd.f32 %v2208_v22, %v2123_v19 }
 0xe71   : > { %v2211_v50 = vadd.f32 %v2210_v25, %v2119_v24  ;;  %v2212_v30 = vpop.f32.mrb[35].mxu0 }
 0xe72   : > { %v2213_v53 = vadd.f32 %v2212_v30, %v2123_v19 }
 0xe73   : > { %v5342_v31 = vpack.c.bf16 %v2211_v50, %v2207_v28 }
 0xe74   : > { %v5344_v13 = vpack.c.bf16 %v2213_v53, %v2209_v56 }
 0xe75   : > { %2230 = vrot.lane.b32.xlu0 %v5342_v31, %s5913_s0 }
 0xe76   : > { %v2216_v32 = vpop.f32.mrb[36].mxu0  ;;  %4184 = vmatpush3.bf16.msra.mxu1 %v5344_v13 }
 0xe77   : > { %v2218_v35 = vpop.f32.mrb[37].mxu0  ;;  %4195 = vmatprep.subr.bf16.mxu1 %v4699_v10  ;;  %v2217_v39 = vadd.f32 %v2216_v32, %v2119_v24 }
 0xe78   : > { %v2219_v37 = vadd.f32 %v2218_v35, %v2123_v19  ;;  %v2220_v38 = vpop.f32.mrb[38].mxu0 }
 0xe79   : > { %v2221_v40 = vadd.f32 %v2220_v38, %v2119_v24  ;;  %v2222_v41 = vpop.f32.mrb[39].mxu0 }
 0xe7a   : > { %v2223_v42 = vadd.f32 %v2222_v41, %v2123_v19 }
 0xe7b   : > { %v5350_v43 = vpack.c.bf16 %v2221_v40, %v2217_v39 }
 0xe7c   : > { %v5352_v0 = vpack.c.bf16 %v2223_v42, %v2219_v37 }
 0xe7d   : > { %2280 = vrot.lane.b32.xlu1 %v5350_v43, %s5913_s0 }
 0xee7   : > { %v2231_v34 = vpop.permute.xlu0 %2230 }
 0xee8   : > { %v2236_v18 = vsel %vm954_vm2, %v2231_v34, 0 }
 0xee9   : > { %4172 = vmatpush3.bf16.xpose.msra.mxu0 %v2236_v18 }
 0xeea   : > { %4177 = vmatprep.subr.bf16.mxu0 %v4699_v10 }
 0xeef   : > { %v2281_v26 = vpop.permute.xlu1 %2280 }
 0xef0   : > { %v2286_v44 = vsel %vm954_vm2, %v2281_v26, 0  ;;  %4174 = vmatmul.mubr.msk.bf16.vlgmr.msra.gmra.mrb[40].mxu0 %vm954_vm2, %v5342_v31 }
 0xef1   : > { %4178 = vmatpush3.bf16.xpose.msra.mxu0 %v2286_v44  ;;  %4179 = vmatprep.mubr.msk.bf16.mxu0 %vm4700_vm1, %v4699_v10 }
 0xef2   : > { %4189 = vmatprep.subr.bf16.mxu0 %v4699_v10 }
 0xef8   : > { %4180 = vmatmul.mubr.msk.bf16.vlgmr.msra.gmra.mrb[44].mxu0 %vm954_vm2, %v5350_v43 }
 0xef9   : > { %4190 = vmatpush3.bf16.msra.mxu0 %v5352_v0  ;;  %4191 = vmatprep.mubr.msk.bf16.mxu0 %vm4700_vm1, %v4699_v10 }
 0xefa   : > { %4201 = vmatprep.subr.bf16.mxu0 %v4699_v10 }
 0xfc3   : > { %v2272_v45 = vpop.f32.mrb[40].mxu0 }
 0xfc4   : > { %v2329_v46 = vmul.f32 0.17677669, %v2272_v45  ;;  %v4175_v48 = vpop.f32.mrb[41].mxu0 }
 0xfc5   : > { %v2275_v52 = vpop.f32.mrb[42].mxu0 }
 0xfc6   : > { %v2330_v54 = vmul.f32 0.17677669, %v2275_v52  ;;  %v4176_v55 = vpop.f32.mrb[43].mxu0  ;;  %v2333_v57 = vadd.f32 %v2329_v46, %v5007_v58 }
 0xfc8   : > { %v2337_v6 = vsel %vm1060_vm11, %v2333_v57, -inf  ;;  %v2334_v23 = vadd.f32 %v2330_v54, %v5009_v62 }
 0xfc9   : > { %2338 = vmax.xlane.f32.xlu1 %v2337_v6 }
 0xfca   : > { %v2340_v33 = vsel %vm1060_vm11, %v2334_v23, -inf }
 0xfcb   : > { %2341 = vmax.xlane.f32.xlu0 %v2340_v33  ;;  %v2322_v59 = vpop.f32.mrb[44].mxu0 }
 0xfcc   : > { %v2331_v63 = vmul.f32 0.17677669, %v2322_v59  ;;  %v4181_v4 = vpop.f32.mrb[45].mxu0 }
 0xfcd   : > { %v2325_v29 = vpop.f32.mrb[46].mxu0 }
 0xfce   : > { %v2332_v2 = vmul.f32 0.17677669, %v2325_v29  ;;  %v4182_v3 = vpop.f32.mrb[47].mxu0  ;;  %v2335_v5 = vadd.f32 %v2331_v63, %v5020_v11 }
 0xfd0   : > { %v2343_v7 = vsel %vm1060_vm11, %v2335_v5, -inf  ;;  %v2336_v1 = vadd.f32 %v2332_v2, %v5022_v16 }
 0xfd1   : > { %2344 = vmax.xlane.f32.xlu0 %v2343_v7 }
 0xfd2   : > { %v2346_v17 = vsel %vm1060_vm11, %v2336_v1, -inf }
 0xfd3   : > { %2347 = vmax.xlane.f32.xlu1 %v2346_v17 }
0x1056   : > { %v2339_v14 = vpop.xlane.xlu1 %2338 }
0x1057   : > { %v2349_v15 = vsub.f32 %v2333_v57, %v2339_v14 }
0x1058   : > { %v2342_v27 = vpop.xlane.xlu0 %2341 }
0x1059   : > { %v2353_v8 = vmul.f32 1.442695, %v2349_v15  ;;  %v2350_v20 = vsub.f32 %v2334_v23, %v2342_v27 }
0x105b   : > { %4492 = vpow2.f32 %v2353_v8  ;;  %v2355_v24 = vmul.f32 1.442695, %v2350_v20 }
0x105d   : > { %4494 = vpow2.f32 %v2355_v24 }
0x105e   : > { %v2345_v21 = vpop.xlane.xlu0 %2344 }
0x105f   : > { %v2351_v19 = vsub.f32 %v2335_v5, %v2345_v21 }
0x1060   : > { %v2348_v32 = vpop.xlane.xlu1 %2347 }
0x1061   : > { %v2357_v22 = vmul.f32 1.442695, %v2351_v19  ;;  %v2352_v35 = vsub.f32 %v2336_v1, %v2348_v32 }
0x1063   : > { %4496 = vpow2.f32 %v2357_v22  ;;  %v2359_v37 = vmul.f32 1.442695, %v2352_v35 }
0x1065   : > { %v4493_v25 = vpop.eup %4492  ;;  %4498 = vpow2.f32 %v2359_v37 }
0x1066   : > { %v2361_v28 = vsel %vm1060_vm11, %v4493_v25, 0.0 }
0x1067   : > { %v4495_v50 = vpop.eup %4494  ;;  %2362 = vadd.xlane.f32.xlu0 %v2361_v28 }
0x1068   : > { %v2364_v30 = vsel %vm1060_vm11, %v4495_v50, 0.0 }
0x1069   : > { %2365 = vadd.xlane.f32.xlu1 %v2364_v30 }
0x106d   : > { %v4497_v56 = vpop.eup %4496 }
0x106e   : > { %v2367_v53 = vsel %vm1060_vm11, %v4497_v56, 0.0 }
0x106f   : > { %2368 = vadd.xlane.f32.xlu0 %v2367_v53  ;;  %v4499_v38 = vpop.eup %4498 }
0x1070   : > { %v2370_v39 = vsel %vm1060_vm11, %v4499_v38, 0.0 }
0x107a   : > { %2524 = vrot.lane.b32.xlu1 %v5350_v43, %s5914_s23 }
0x1085   : > { %2473 = vrot.lane.b32.xlu0 %v5342_v31, %s5914_s23 }
0x109e   : > { %2371 = vadd.xlane.f32.xlu1 %v2370_v39 }
0x10af   : > { %2471 = vrot.lane.b32.xlu1 %v5342_v31, %s5915_s25 }
0x10b3   : > { %2522 = vrot.lane.b32.xlu1 %v5350_v43, %s5915_s25 }
0x10f4   : > { %v2363_v40 = vpop.xlane.xlu0 %2362 }
0x10f5   : > { %4500 = vrcp.f32 %v2363_v40 }
0x10f6   : > { %v2366_v41 = vpop.xlane.xlu1 %2365 }
0x10f7   : > { %4502 = vrcp.f32 %v2366_v41 }
0x10fa   : > { %v2525_v31 = vpop.permute.xlu1 %2524 }
0x10fb   : > { %v2530_v33 = vsel %vm954_vm2, %v2525_v31, 0 }
0x10fc   : > { %v2369_v42 = vpop.xlane.xlu0 %2368 }
0x10fd   : > { %4504 = vrcp.f32 %v2369_v42 }
0x10ff   : > { %v4501_v34 = vpop.eup %4500 }
0x1100   : > { %v2377_v26 = vmul.f32 %v4501_v34, %v4493_v25  ;;  %v2474_v45 = vpop.permute.xlu0 %2473 }
0x1101   : > { %v4503_v18 = vpop.eup %4502  ;;  %v2479_v48 = vsel %vm954_vm2, %v2474_v45, 0 }
0x1102   : > { %v2378_v44 = vmul.f32 %v4503_v18, %v4495_v50 }
0x1104   : > { %v2381_v46 = vpack.c.bf16 %v2378_v44, %v2377_v26 }
0x1106   : > { %4186 = vmatmul.mubr.msk.bf16.vlgmr.msra.gmra.mrb[28].mxu1 %vm1060_vm11, %v2381_v46 }
0x1107   : > { %4196 = vmatpush3.bf16.xpose.msra.mxu1 %v2479_v48  ;;  %4197 = vmatprep.mubr.msk.bf16.mxu1 %vm4700_vm1, %v4699_v10  ;;  %v4505_v54 = vpop.eup %4504 }
0x1108   : > { %4207 = vmatprep.subr.bf16.mxu1 %v4699_v10  ;;  %v2379_v57 = vmul.f32 %v4505_v54, %v4497_v56 }
0x112b   : > { %v2372_v43 = vpop.xlane.xlu1 %2371 }
0x112c   : > { %4506 = vrcp.f32 %v2372_v43 }
0x112f   : > { %v2472_v52 = vpop.permute.xlu1 %2471 }
0x1130   : > { %4198 = vmatmul.mubr.msk.bf16.vlgmr.msra.gmra.mrb[32].mxu1 %vm954_vm2, %v2472_v52 }
0x1131   : > { %4209 = vmatprep.mubr.msk.bf16.mxu1 %vm4700_vm1, %v4699_v10 }
0x1133   : > { %v2523_v59 = vpop.permute.xlu1 %2522 }
0x1136   : > { %v4507_v55 = vpop.eup %4506 }
0x1137   : > { %v2380_v6 = vmul.f32 %v4507_v55, %v4499_v38 }
0x1139   : > { %v2382_v23 = vpack.c.bf16 %v2380_v6, %v2379_v57 }
0x113b   : > { %4192 = vmatmul.mubr.msk.bf16.vlgmr.msra.gmra.mrb[48].mxu0 %vm1060_vm11, %v2382_v23 }
0x113c   : > { %4202 = vmatpush3.bf16.xpose.msra.mxu0 %v2530_v33  ;;  %4203 = vmatprep.mubr.msk.bf16.mxu0 %vm4700_vm1, %v4699_v10 }
0x113d   : > { %4213 = vmatprep.subr.bf16.mxu0 %v4699_v10 }
0x1143   : > { %4204 = vmatmul.mubr.msk.bf16.vlgmr.msra.gmra.mrb[52].mxu0 %vm954_vm2, %v2523_v59 }
0x1144   : > { %4215 = vmatprep.mubr.msk.bf16.mxu0 %vm4700_vm1, %v4699_v10 }
0x11d9   : > { %v5406_v63 = vpop.f32.mrb[28].mxu1 }
0x11da   : > { %v4187_v4 = vpop.f32.mrb[29].mxu1 }
0x11db   : > { %v5408_v29 = vpop.f32.mrb[30].mxu1 }
0x11dc   : > { %v4188_v2 = vpop.f32.mrb[31].mxu1 }
0x1203   : > { %v2515_v3 = vpop.f32.mrb[32].mxu1 }
0x1204   : > { %v2573_v5 = vmul.f32 0.17677669, %v2515_v3  ;;  %v4199_v7 = vpop.f32.mrb[33].mxu1 }
0x1205   : > { %v2518_v1 = vpop.f32.mrb[34].mxu1 }
0x1206   : > { %v2574_v17 = vmul.f32 0.17677669, %v2518_v1  ;;  %v4200_v14 = vpop.f32.mrb[35].mxu1  ;;  %v2577_v15 = vadd.f32 %v2573_v5, %v5007_v58 }
0x1208   : > { %v2581_v27 = vsel %vm1060_vm11, %v2577_v15, -inf  ;;  %v2578_v8 = vadd.f32 %v2574_v17, %v5009_v62 }
0x1209   : > { %2582 = vmax.xlane.f32.xlu0 %v2581_v27  ;;  %v4384_v27 = vld [vmem:[%s5912_s8 + $0x20] sm:$0xff]  }
0x120a   : > { %v2584_v20 = vsel %vm1060_vm11, %v2578_v8, -inf }
0x120b   : > { %2585 = vmax.xlane.f32.xlu1 %v2584_v20  ;;  %v4386_v20 = vld [vmem:[%s5912_s8 + $0x30] sm:$0xff]  }
0x120e   : > { %v5414_v24 = vpop.f32.mrb[48].mxu0 }
0x120f   : > { %v4193_v21 = vpop.f32.mrb[49].mxu0 }
0x1210   : > { %v5416_v19 = vpop.f32.mrb[50].mxu0 }
0x1211   : > { %v4194_v22 = vpop.f32.mrb[51].mxu0 }
0x1216   : > { %v2566_v25 = vpop.f32.mrb[52].mxu0 }
0x1217   : > { %v2575_v28 = vmul.f32 0.17677669, %v2566_v25  ;;  %v4205_v50 = vpop.f32.mrb[53].mxu0 }
0x1218   : > { %v2569_v30 = vpop.f32.mrb[54].mxu0 }
0x1219   : > { %v2576_v56 = vmul.f32 0.17677669, %v2569_v30  ;;  %v4206_v58 = vpop.f32.mrb[55].mxu0  ;;  %v2579_v53 = vadd.f32 %v2575_v28, %v5020_v11  ;;  %v4387_v30 = vld [vmem:[%s5912_s8 + $0x38] sm:$0xff]  }
0x121b   : > { %v2587_v62 = vsel %vm1060_vm11, %v2579_v53, -inf  ;;  %v2580_v32 = vadd.f32 %v2576_v56, %v5022_v16 }
0x121c   : > { %2588 = vmax.xlane.f32.xlu0 %v2587_v62 }
0x121d   : > { %v2590_v35 = vsel %vm1060_vm11, %v2580_v32, -inf }
0x1220   : > { %2591 = vmax.xlane.f32.xlu0 %v2590_v35 }
0x1296   : > { %v2583_v37 = vpop.xlane.xlu0 %2582 }
0x1297   : > { %v2593_v38 = vsub.f32 %v2577_v15, %v2583_v37 }
0x1298   : > { %v2586_v39 = vpop.xlane.xlu1 %2585 }
0x1299   : > { %v2597_v40 = vmul.f32 1.442695, %v2593_v38  ;;  %v2594_v41 = vsub.f32 %v2578_v8, %v2586_v39  ;;  %v4385_v8 = vld [vmem:[%s5912_s8 + $0x28] sm:$0xff]  }
0x129b   : > { %4508 = vpow2.f32 %v2597_v40  ;;  %v2599_v42 = vmul.f32 1.442695, %v2594_v41 }
0x129d   : > { %4510 = vpow2.f32 %v2599_v42 }
0x12a5   : > { %v4509_v34 = vpop.eup %4508 }
0x12a6   : > { %v2605_v18 = vsel %vm1060_vm11, %v4509_v34, 0.0 }
0x12a7   : > { %v4511_v11 = vpop.eup %4510  ;;  %2606 = vadd.xlane.f32.xlu0 %v2605_v18 }
0x12a8   : > { %v2608_v26 = vsel %vm1060_vm11, %v4511_v11, 0.0 }
0x12a9   : > { %2609 = vadd.xlane.f32.xlu1 %v2608_v26  ;;  %v2589_v16 = vpop.xlane.xlu0 %2588 }
0x12aa   : > { %v2595_v44 = vsub.f32 %v2579_v53, %v2589_v16 }
0x12ac   : > { %v2601_v45 = vmul.f32 1.442695, %v2595_v44 }
0x12ad   : > { %v2592_v46 = vpop.xlane.xlu0 %2591 }
0x12ae   : > { %4512 = vpow2.f32 %v2601_v45  ;;  %v2596_v48 = vsub.f32 %v2580_v32, %v2592_v46 }
0x12b0   : > { %v2603_v31 = vmul.f32 1.442695, %v2596_v48 }
0x12b2   : > { %4514 = vpow2.f32 %v2603_v31 }
0x12b8   : > { %v4513_v43 = vpop.eup %4512 }
0x12b9   : > { %v2611_v52 = vsel %vm1060_vm11, %v4513_v43, 0.0 }
0x12ba   : > { %2612 = vadd.xlane.f32.xlu0 %v2611_v52 }
0x12bc   : > { %v4515_v54 = vpop.eup %4514 }
0x12bd   : > { %v2614_v55 = vsel %vm1060_vm11, %v4515_v54, 0.0 }
0x12be   : > { %2615 = vadd.xlane.f32.xlu1 %v2614_v55 }
0x12cf   : > { %2676 = vrot.lane.b32.xlu1 %v5352_v0, %s5915_s25 }
0x12d0   : > { %2628 = vrot.lane.b32.xlu0 %v5344_v13, %s5915_s25 }
0x1334   : > { %v2607_v6 = vpop.xlane.xlu0 %2606 }
0x1336   : > { %v2610_v57 = vpop.xlane.xlu1 %2609 }
0x1337   : > { %4516 = vrcp.f32 %v2610_v57 }
0x1338   : > { %4518 = vrcp.f32 %v2607_v6 }
0x1341   : > { %v4517_v23 = vpop.eup %4516 }
0x1342   : > { %v4519_v59 = vpop.eup %4518  ;;  %v2622_v4 = vmul.f32 %v4517_v23, %v4511_v11 }
0x1343   : > { %v2621_v2 = vmul.f32 %v4519_v59, %v4509_v34 }
0x1345   : > { %v2625_v7 = vpack.c.bf16 %v2622_v4, %v2621_v2 }
0x1347   : > { %v2613_v33 = vpop.xlane.xlu0 %2612 }
0x1348   : > { %4520 = vrcp.f32 %v2613_v33 }
0x134b   : > { %v2616_v3 = vpop.xlane.xlu1 %2615  ;;  %v2629_v5 = vpop.permute.xlu0 %2628 }
0x134c   : > { %4522 = vrcp.f32 %v2616_v3  ;;  %4208 = vmatpush3.bf16.msra.mxu1 %v2629_v5 }
0x134d   : > { %4219 = vmatprep.subr.bf16.mxu1 %v4384_v27 }
0x134f   : > { %v2677_v1 = vpop.permute.xlu1 %2676  ;;  %4210 = vmatmul.mubr.msk.bf16.vlgmr.msra.gmra.mrb[36].mxu1 %vm1060_vm11, %v2625_v7 }
0x1350   : > { %4214 = vmatpush3.bf16.msra.mxu0 %v2677_v1  ;;  %4220 = vmatpush3.bf16.msra.mxu1 %v4384_v27 }
0x1351   : > { %4221 = vmatprep.subr.bf16.mxu1 %v4385_v8 }
0x1352   : > { %v4521_v13 = vpop.eup %4520 }
0x1353   : > { %v2623_v17 = vmul.f32 %v4521_v13, %v4513_v43 }
0x1354   : > { %4222 = vmatpush3.bf16.msra.mxu1 %v4385_v8 }
0x1355   : > { %4223 = vmatprep.subr.bf16.mxu1 %v4386_v20 }
0x1356   : > { %v4523_v0 = vpop.eup %4522 }
0x1357   : > { %v2624_v14 = vmul.f32 %v4523_v0, %v4515_v54 }
0x1358   : > { %4224 = vmatpush3.bf16.msra.mxu1 %v4386_v20 }
0x1359   : > { %v2626_v15 = vpack.c.bf16 %v2624_v14, %v2623_v17  ;;  %4225 = vmatprep.subr.bf16.mxu1 %v4387_v30 }
0x135b   : > { %4216 = vmatmul.mubr.msk.bf16.vlgmr.msra.gmra.mrb[56].mxu0 %vm1060_vm11, %v2626_v15 }
0x135c   : > { %3023 = vmatprep.mubr.bf16.mxu0 %v4698_v36  ;;  %4226 = vmatpush3.bf16.msra.mxu1 %v4387_v30  ;;  %v4396_v30 = vld [vmem:[%s5863_s12 + $0x64] ss:$8 sps:$4 sm:$0xff]  }
0x1422   : > { %v2668_v21 = vpop.f32.mrb[36].mxu1 }
0x1423   : > { %v4211_v22 = vpop.f32.mrb[37].mxu1 }
0x1424   : > { %v2671_v25 = vpop.f32.mrb[38].mxu1  ;;  %v4390_v22 = vld [vmem:[%s5863_s12 + $0x44] ss:$8 sps:$4 sm:$0xff]  }
0x1425   : > { %v4316_v28 = vpack.i.bf16 %v2671_v25, %v2668_v21  ;;  %v4212_v50 = vpop.f32.mrb[39].mxu1  ;;  %v4388_v25 = vld [vmem:[%s5863_s12 + $0x40] ss:$8 sps:$4 sm:$0xff]   ;;  %2991 = vmatprep.subr.bf16.mxu0 %v4390_v22 }
0x1426   : > { %2992 = vmatpush1.bf16.msra.mxu0 %v4388_v25  ;;  %v4391_v50 = vld [vmem:[%s5863_s12 + $0x50] ss:$8 sps:$4 sm:$0xff]   ;;  %v3920_v22 = vld [vmem:[%s5864_s13 + $0x2] sm:$0x3] }
0x1427   : > { %4317 = vrot.lane.b32.xlu1 %v4316_v28, %s5914_s23  ;;  %v4393_v28 = vld [vmem:[%s5863_s12 + $0x54] ss:$8 sps:$4 sm:$0xff]   ;;  %v2938_v25 = vrot.slane %v3920_v22, %v4937_v9 }
0x1428   : > { %2993 = vmatprep.subr.bf16.mxu0 %v4393_v28  ;;  %v2942_v28 = vrot.slane %v3920_v22, %v4945_v12 }
0x142a   : > { %2994 = vmatpush1.bf16.msra.mxu0 %v4391_v50 }
0x142b   : > { %2995 = vmatprep.subr.bf16.mxu0 %v4396_v30 }
0x142e   : > { %v2716_v56 = vpop.f32.mrb[56].mxu0 }
0x142f   : > { %v4217_v58 = vpop.f32.mrb[57].mxu0 }
0x1430   : > { %v2719_v53 = vpop.f32.mrb[58].mxu0  ;;  %v4399_v58 = vld [vmem:[%s5863_s12 + $0x74] ss:$8 sps:$4 sm:$0xff]  }
0x1431   : > { %v4321_v62 = vpack.i.bf16 %v2719_v53, %v2716_v56  ;;  %v4218_v32 = vpop.f32.mrb[59].mxu0  ;;  %v4394_v56 = vld [vmem:[%s5863_s12 + $0x60] ss:$8 sps:$4 sm:$0xff]   ;;  %v4397_v53 = vld [vmem:[%s5863_s12 + $0x70] ss:$8 sps:$4 sm:$0xff]  }
0x1432   : > { %2996 = vmatpush1.bf16.msra.mxu0 %v4394_v56 }
0x1433   : > { %4322 = vrot.lane.b32.xlu1 %v4321_v62, %s5914_s23  ;;  %2997 = vmatprep.subr.bf16.mxu0 %v4399_v58  ;;  %s5916_s23 = sld [smem:[#allocation18_spill]] }
0x1436   : > { %2998 = vmatpush1.bf16.msra.mxu0 %v4397_v53 }
0x1439   : > { %s5917_s25 = smov %s5916_s23 }
0x1499   : > { %v4318_v35 = vpop.permute.xlu1 %4317 }
0x149a   : > { %v4320_v37 = vunpack.i.h.bf16 %v4318_v35  ;;  %v4319_v38 = vunpack.i.l.bf16 %v4318_v35 }
0x149c   : > { %v2740_v39 = vsel %vm954_vm2, %v5408_v29, %v4320_v37  ;;  %v2739_v40 = vsel %vm954_vm2, %v5406_v63, %v4319_v38  ;;  %v3901_v29 = vld [vmem:[%s5860_s9 + $0x1] ss:$0 sm:$0xff] }
0x149d   : > { %v2743_v41 = vpack.c.bf16 %v2740_v39, %v2739_v40 }
0x149f   : > { %4227 = vmatprep.mubr.msk.bf16.mxu1 %vm752_vm0, %v2743_v41 }
0x14a5   : > { %v4323_v42 = vpop.permute.xlu1 %4322 }
0x14a6   : > { %v4325_v34 = vunpack.i.h.bf16 %v4323_v42  ;;  %v4324_v18 = vunpack.i.l.bf16 %v4323_v42 }
0x14a8   : > { %v2742_v11 = vsel %vm954_vm2, %v5416_v19, %v4325_v34  ;;  %v2741_v26 = vsel %vm954_vm2, %v5414_v24, %v4324_v18 }
0x14a9   : > { %v2744_v16 = vpack.c.bf16 %v2742_v11, %v2741_v26 }
0x14ab   : > { %4228 = vmatmul.mubr.msk.bf16.vlgmr.msra.gmra.mrb[40].mxu1 %vm752_vm0, %v2744_v16  ;;  %v3910_v16 = vld [vmem:[%s5861_s10 + $0x1] ss:$0 sm:$0xff] }
0x157e   : > { %v4229_v63 = vpop.f32.mrb[40].mxu1 }
0x157f   : > { %v2826_v44 = vpop.f32.mrb[41].mxu1  ;;  %v2835_v45 = vadd.f32 %v4229_v63, %v3901_v29 }
0x1580   : > { %v2827_v46 = vadd.f32 %v3901_v29, %v2826_v44  ;;  %v4230_v48 = vpop.f32.mrb[42].mxu1 }
0x1581   : > { %v2829_v31 = vpop.f32.mrb[43].mxu1  ;;  %v5464_v52 = vadd.f32 %v2835_v45, %v5284_v60  ;;  %v2838_v24 = vadd.f32 %v4230_v48, %v3901_v29  ;;  %v3911_v48 = vld [vmem:[%s5862_s11 + $0x1] ss:$0 sm:$0xff] }
0x1582   : > { %v5461_v43 = vadd.f32 %v2827_v46, %v5274_v47  ;;  %v2830_v19 = vadd.f32 %v3901_v29, %v2829_v31 }
0x1583   : > { %v5474_v6 = vadd.f32 %v2838_v24, %v5287_v61  ;;  %v2855_v47 = vsel %vm752_vm0, %v5464_v52, 0.0 }
0x1584   : > { %v5467_v54 = vadd.f32 %v2830_v19, %v5277_v49  ;;  %v2849_v55 = vsel %vm752_vm0, %v5461_v43, 0.0 }
0x1585   : > { %2850 = vadd.xlane.f32.xlu0 %v2849_v55  ;;  %v2858_v60 = vsel %vm752_vm0, %v5474_v6, 0.0 }
0x1586   : > { %v2852_v57 = vsel %vm752_vm0, %v5467_v54, 0.0 }
0x1587   : > { %2853 = vadd.xlane.f32.xlu1 %v2852_v57 }
0x1589   : > { %2856 = vadd.xlane.f32.xlu0 %v2855_v47 }
0x158d   : > { %2859 = vadd.xlane.f32.xlu0 %v2858_v60 }
0x1612   : > { %v2851_v49 = vpop.xlane.xlu0 %2850 }
0x1613   : > { %v2861_v23 = vmul.f32 0.015625, %v2851_v49 }
0x1614   : > { %v2854_v33 = vpop.xlane.xlu1 %2853 }
0x1615   : > { %v2865_v59 = vsub.f32 %v5461_v43, %v2861_v23  ;;  %v2862_v4 = vmul.f32 0.015625, %v2854_v33 }
0x1616   : > { %v2857_v2 = vpop.xlane.xlu0 %2856 }
0x1617   : > { %v2866_v3 = vsub.f32 %v5467_v54, %v2862_v4  ;;  %v2863_v5 = vmul.f32 0.015625, %v2857_v2  ;;  %v2869_v61 = vmul.f32 %v2865_v59, %v2865_v59  ;;  %v4400_v2 = vld [vmem:[%s5865_s14 + $0xc0] sm:$0xff]  }
0x1618   : > { %4077 = vmatprep.subr.bf16.mxu1 %v4400_v2 }
0x1619   : > { %v2867_v7 = vsub.f32 %v5464_v52, %v2863_v5  ;;  %v2873_v1 = vsel %vm752_vm0, %v2869_v61, 0.0  ;;  %v2870_v13 = vmul.f32 %v2866_v3, %v2866_v3  ;;  %v4402_v5 = vld [vmem:[%s5865_s14 + $0xc8] sm:$0xff]   ;;  %v4404_v61 = vld [vmem:[%s5865_s14 + $0xd0] sm:$0xff]  }
0x161a   : > { %2874 = vadd.xlane.f32.xlu0 %v2873_v1  ;;  %v2860_v0 = vpop.xlane.xlu0 %2859  ;;  %v4406_v1 = vld [vmem:[%s5865_s14 + $0xd8] sm:$0xff]  }
0x161b   : > { %v2864_v17 = vmul.f32 0.015625, %v2860_v0  ;;  %v2876_v14 = vsel %vm752_vm0, %v2870_v13, 0.0  ;;  %v2871_v15 = vmul.f32 %v2867_v7, %v2867_v7  ;;  %v4407_v13 = vld [vmem:[%s5865_s14 + $0x98] sm:$0xff]   ;;  %v4408_v0 = vld [vmem:[%s5865_s14 + $0xe0] sm:$0xff]  }
0x161c   : > { %2877 = vadd.xlane.f32.xlu1 %v2876_v14  ;;  %v4410_v14 = vld [vmem:[%s5865_s14 + $0xe8] sm:$0xff]  }
0x161d   : > { %v2868_v27 = vsub.f32 %v5474_v6, %v2864_v17  ;;  %v2879_v8 = vsel %vm752_vm0, %v2871_v15, 0.0  ;;  %v4409_v17 = vld [vmem:[%s5865_s14 + $0xa0] sm:$0xff]   ;;  %v4411_v15 = vld [vmem:[%s5865_s14 + $0xa8] sm:$0xff]  }
0x161e   : > { %2880 = vadd.xlane.f32.xlu0 %v2879_v8  ;;  %v4413_v8 = vld [vmem:[%s5865_s14 + $0xb0] sm:$0xff]  }
0x161f   : > { %v2872_v20 = vmul.f32 %v2868_v27, %v2868_v27 }
0x1621   : > { %v2882_v21 = vsel %vm752_vm0, %v2872_v20, 0.0  ;;  %v4414_v20 = vld [vmem:[%s5865_s14 + $0xf8] sm:$0xff]  }
0x1622   : > { %2883 = vadd.xlane.f32.xlu1 %v2882_v21  ;;  %v4415_v21 = vld [vmem:[%s5865_s14 + $0xb8] sm:$0xff]  }
0x16a7   : > { %v2875_v62 = vpop.xlane.xlu0 %2874 }
0x16a8   : > { %v2885_v32 = vmul.f32 0.015625, %v2875_v62 }
0x16a9   : > { %v2878_v35 = vpop.xlane.xlu1 %2877 }
0x16aa   : > { %v2889_v37 = vadd.f32 1e-05, %v2885_v32  ;;  %v2886_v38 = vmul.f32 0.015625, %v2878_v35 }
0x16ab   : > { %v2881_v39 = vpop.xlane.xlu0 %2880 }
0x16ac   : > { %4524 = vrsqrt.f32 %v2889_v37  ;;  %v2890_v40 = vadd.f32 1e-05, %v2886_v38  ;;  %v2887_v41 = vmul.f32 0.015625, %v2881_v39 }
0x16ae   : > { %4526 = vrsqrt.f32 %v2890_v40  ;;  %v2891_v42 = vadd.f32 1e-05, %v2887_v41 }
0x16af   : > { %v2884_v34 = vpop.xlane.xlu1 %2883 }
0x16b0   : > { %4528 = vrsqrt.f32 %v2891_v42  ;;  %v2888_v18 = vmul.f32 0.015625, %v2884_v34 }
0x16b2   : > { %v2892_v11 = vadd.f32 1e-05, %v2888_v18 }
0x16b4   : > { %4530 = vrsqrt.f32 %v2892_v11 }
0x16b6   : > { %v4525_v26 = vpop.eup %4524 }
0x16b7   : > { %v2897_v29 = vmul.f32 %v4525_v26, %v2865_v59 }
0x16b8   : > { %v4527_v63 = vpop.eup %4526 }
0x16b9   : > { %v2907_v44 = vmul.f32 %v3910_v16, %v2897_v29  ;;  %v2898_v45 = vmul.f32 %v4527_v63, %v2866_v3  ;;  %v4401_v3 = vld [vmem:[%s5865_s14 + $0x80] sm:$0xff]  }
0x16ba   : > { %v4529_v46 = vpop.eup %4528  ;;  %4078 = vmatpush3.bf16.msra.mxu1 %v4401_v3 }
0x16bb   : > { %v2908_v31 = vmul.f32 %v3910_v16, %v2898_v45  ;;  %v2899_v19 = vmul.f32 %v4529_v46, %v2867_v7  ;;  %v2917_v24 = vadd.f32 %v3911_v48, %v2907_v44  ;;  %4079 = vmatprep.subr.bf16.mxu1 %v4402_v5  ;;  %v4405_v7 = vld [vmem:[%s5865_s14 + $0x90] sm:$0xff]  }
0x16bd   : > { %v2918_v55 = vadd.f32 %v3911_v48, %v2908_v31  ;;  %v2909_v49 = vmul.f32 %v3910_v16, %v2899_v19 }
0x16be   : > { %v4531_v57 = vpop.eup %4530 }
0x16bf   : > { %v2900_v47 = vmul.f32 %v4531_v57, %v2868_v27  ;;  %v2921_v60 = vpack.c.bf16 %v2918_v55, %v2917_v24  ;;  %v2919_v59 = vadd.f32 %v3911_v48, %v2909_v49  ;;  %v4412_v27 = vld [vmem:[%s5865_s14 + $0xf0] sm:$0xff]  }
0x16c1   : > { %3929 = vmatmul.mubr.msk.bf16.vlgmr.msra.gmra.mrb[60].mxu0 %vm752_vm0, %v2921_v60  ;;  %v2910_v23 = vmul.f32 %v3910_v16, %v2900_v47 }
0x16c2   : > { %3033 = vmatprep.mubr.bf16.mxu0 %v4698_v36  ;;  %v4403_v36 = vld [vmem:[%s5865_s14 + $0x88] sm:$0xff]  }
0x16c3   : > { %v2920_v33 = vadd.f32 %v3911_v48, %v2910_v23  ;;  %4080 = vmatpush3.bf16.msra.mxu1 %v4403_v36 }
0x16c4   : > { %4081 = vmatprep.subr.bf16.mxu1 %v4404_v61 }
0x16c5   : > { %v2922_v4 = vpack.c.bf16 %v2920_v33, %v2919_v59 }
0x16c7   : > { %4082 = vmatpush3.bf16.msra.mxu1 %v4405_v7 }
0x16c8   : > { %4083 = vmatprep.subr.bf16.mxu1 %v4406_v1 }
0x16c9   : > { %3930 = vmatmul.mubr.msk.bf16.gmra.mrb[64].mxu0 %vm752_vm0, %v2922_v4 }
0x16cb   : > { %4084 = vmatpush3.bf16.msra.mxu1 %v4407_v13 }
0x16cc   : > { %4085 = vmatprep.subr.bf16.mxu1 %v4408_v0 }
0x16cf   : > { %4086 = vmatpush3.bf16.msra.mxu1 %v4409_v17 }
0x16d0   : > { %4087 = vmatprep.subr.bf16.mxu1 %v4410_v14 }
0x16d3   : > { %4088 = vmatpush3.bf16.msra.mxu1 %v4411_v15 }
0x16d4   : > { %4089 = vmatprep.subr.bf16.mxu1 %v4412_v27 }
0x16d7   : > { %4090 = vmatpush3.bf16.msra.mxu1 %v4413_v8 }
0x16d8   : > { %4091 = vmatprep.subr.bf16.mxu1 %v4414_v20 }
0x16db   : > { %4092 = vmatpush3.bf16.msra.mxu1 %v4415_v21 }
0x1794   : > { %v3025_v50 = vpop.f32.mrb[60].mxu0 }
0x1795   : > { %v5574_v30 = vadd.f32 %v3025_v50, %v2938_v25  ;;  %v3027_v56 = vpop.f32.mrb[61].mxu0 }
0x1796   : > { %v5576_v58 = vadd.f32 %v3027_v56, %v2942_v28  ;;  %v3029_v53 = vpop.f32.mrb[62].mxu0 }
0x1797   : > { %v3052_v62 = vmul.f32 0.044715, %v5574_v30  ;;  %v5579_v32 = vadd.f32 %v3029_v53, %v2938_v25  ;;  %v3031_v35 = vpop.f32.mrb[63].mxu0 }
0x1798   : > { %v3053_v37 = vmul.f32 0.044715, %v5576_v58  ;;  %v5582_v38 = vadd.f32 %v3031_v35, %v2942_v28  ;;  %v3044_v35 = vmul.f32 0.5, %v5574_v30 }
0x1799   : > { %v3060_v9 = vmul.f32 %v3052_v62, %v5574_v30  ;;  %v3054_v12 = vmul.f32 0.044715, %v5579_v32 }
0x179a   : > { %v3061_v39 = vmul.f32 %v3053_v37, %v5576_v58  ;;  %v3055_v40 = vmul.f32 0.044715, %v5582_v38  ;;  %v3046_v37 = vmul.f32 0.5, %v5579_v32 }
0x179b   : > { %v3068_v41 = vmul.f32 %v3060_v9, %v5574_v30  ;;  %v3062_v42 = vmul.f32 %v3054_v12, %v5579_v32  ;;  %v3045_v12 = vmul.f32 0.5, %v5576_v58 }
0x179c   : > { %v3069_v34 = vmul.f32 %v3061_v39, %v5576_v58  ;;  %v3063_v18 = vmul.f32 %v3055_v40, %v5582_v38  ;;  %v3035_v11 = vpop.f32.mrb[64].mxu0  ;;  %v3047_v39 = vmul.f32 0.5, %v5582_v38 }
0x179d   : > { %v3076_v26 = vadd.f32 %v3068_v41, %v5574_v30  ;;  %v3070_v16 = vmul.f32 %v3062_v42, %v5579_v32  ;;  %v5594_v29 = vadd.f32 %v3035_v11, %v2938_v25  ;;  %v3037_v63 = vpop.f32.mrb[65].mxu0 }
0x179e   : > { %v3071_v44 = vmul.f32 %v3063_v18, %v5582_v38  ;;  %v5597_v45 = vadd.f32 %v3037_v63, %v2942_v28  ;;  %v3039_v46 = vpop.f32.mrb[66].mxu0  ;;  %v3077_v48 = vadd.f32 %v3069_v34, %v5576_v58 }
0x179f   : > { %v3084_v31 = vmul.f32 0.7978846, %v3076_v26  ;;  %v3078_v19 = vadd.f32 %v3070_v16, %v5579_v32  ;;  %v3056_v24 = vmul.f32 0.044715, %v5594_v29  ;;  %v3040_v55 = vadd.f32 %v3039_v46, %v2938_v25  ;;  %v3041_v57 = vpop.f32.mrb[67].mxu0 }
0x17a0   : > { %v3057_v47 = vmul.f32 0.044715, %v5597_v45  ;;  %v3042_v60 = vadd.f32 %v3041_v57, %v2942_v28  ;;  %v3079_v49 = vadd.f32 %v3071_v44, %v5582_v38  ;;  %v3085_v23 = vmul.f32 0.7978846, %v3077_v48 }
0x17a1   : > { %4532 = vtanh.f32 %v3084_v31  ;;  %v3086_v33 = vmul.f32 0.7978846, %v3078_v19  ;;  %v3064_v59 = vmul.f32 %v3056_v24, %v5594_v29  ;;  %v3058_v4 = vmul.f32 0.044715, %v3040_v55 }
0x17a2   : > { %v3065_v2 = vmul.f32 %v3057_v47, %v5597_v45  ;;  %v3059_v3 = vmul.f32 0.044715, %v3042_v60  ;;  %v3087_v5 = vmul.f32 0.7978846, %v3079_v49  ;;  %4534 = vtanh.f32 %v3085_v23 }
0x17a3   : > { %4536 = vtanh.f32 %v3086_v33  ;;  %v3072_v36 = vmul.f32 %v3064_v59, %v5594_v29  ;;  %v3066_v61 = vmul.f32 %v3058_v4, %v3040_v55  ;;  %v3048_v32 = vmul.f32 0.5, %v5594_v29 }
0x17a4   : > { %v3073_v7 = vmul.f32 %v3065_v2, %v5597_v45  ;;  %v3067_v1 = vmul.f32 %v3059_v3, %v3042_v60  ;;  %4538 = vtanh.f32 %v3087_v5  ;;  %v3050_v58 = vmul.f32 0.5, %v3040_v55  ;;  %v3964_v2 = vld [vmem:[%s5866_s15 + $0x1] ss:$0 sm:$0xff] }
0x17a5   : > { %v3074_v13 = vmul.f32 %v3066_v61, %v3040_v55  ;;  %v3080_v0 = vadd.f32 %v3072_v36, %v5594_v29  ;;  %v3049_v38 = vmul.f32 0.5, %v5597_v45  ;;  %v3051_v19 = vmul.f32 0.5, %v3042_v60 }
0x17a6   : > { %v3075_v17 = vmul.f32 %v3067_v1, %v3042_v60  ;;  %v3081_v14 = vadd.f32 %v3073_v7, %v5597_v45 }
0x17a7   : > { %v3082_v15 = vadd.f32 %v3074_v13, %v3040_v55  ;;  %v3088_v27 = vmul.f32 0.7978846, %v3080_v0 }
0x17a8   : > { %v3083_v8 = vadd.f32 %v3075_v17, %v3042_v60  ;;  %v3089_v20 = vmul.f32 0.7978846, %v3081_v14 }
0x17a9   : > { %v3090_v21 = vmul.f32 0.7978846, %v3082_v15  ;;  %4540 = vtanh.f32 %v3088_v27 }
0x17aa   : > { %v3091_v22 = vmul.f32 0.7978846, %v3083_v8  ;;  %4542 = vtanh.f32 %v3089_v20 }
0x17ab   : > { %v4533_v25 = vpop.eup %4532  ;;  %4544 = vtanh.f32 %v3090_v21 }
0x17ac   : > { %v4535_v28 = vpop.eup %4534  ;;  %v3100_v50 = vadd.f32 1.0, %v4533_v25  ;;  %4546 = vtanh.f32 %v3091_v22 }
0x17ad   : > { %v4537_v56 = vpop.eup %4536  ;;  %v3101_v53 = vadd.f32 1.0, %v4535_v28 }
0x17ae   : > { %v4539_v62 = vpop.eup %4538  ;;  %v3102_v9 = vadd.f32 1.0, %v4537_v56  ;;  %v3108_v41 = vmul.f32 %v3100_v50, %v3044_v35 }
0x17af   : > { %v3103_v40 = vadd.f32 1.0, %v4539_v62  ;;  %v3109_v34 = vmul.f32 %v3101_v53, %v3045_v12 }
0x17b0   : > { %v3110_v42 = vmul.f32 %v3102_v9, %v3046_v37 }
0x17b1   : > { %v3111_v18 = vmul.f32 %v3103_v40, %v3047_v39 }
0x17b2   : > { %v3116_v11 = vpack.c.bf16 %v3110_v42, %v3108_v41 }
0x17b3   : > { %v4541_v26 = vpop.eup %4540  ;;  %v3117_v16 = vpack.c.bf16 %v3111_v18, %v3109_v34 }
0x17b4   : > { %v4543_v63 = vpop.eup %4542  ;;  %v3104_v44 = vadd.f32 1.0, %v4541_v26 }
0x17b5   : > { %v4545_v46 = vpop.eup %4544  ;;  %3289 = vmatprep.mubr.bf16.mxu1 %v3117_v16  ;;  %v3105_v30 = vadd.f32 1.0, %v4543_v63  ;;  %v4416_v63 = vld [vmem:[%s5916_s23] sm:$0xff]   ;;  %s5742_s23 = scalar_lea.hbm %s5869_s18, %s4004_s24 }
0x17b6   : > { %v4547_v48 = vpop.eup %4546  ;;  %3290 = vmatmul.mubr.bf16.vlgmr.msra.gmra.mrb[44].mxu1 %v3116_v11  ;;  %v3106_v31 = vadd.f32 1.0, %v4545_v46  ;;  %v3112_v57 = vmul.f32 %v3104_v44, %v3048_v32  ;;  %4231 = vmatprep.subr.bf16.mxu0 %v4416_v63  ;;  %v4417_v44 = vld [vmem:[%s5917_s25 + $0x8] sm:$0xff]   ;;  %v4418_v46 = vld [vmem:[%s5917_s25 + $0x10] sm:$0xff]  }
0x17b7   : > { %v3107_v24 = vadd.f32 1.0, %v4547_v48  ;;  %v3113_v49 = vmul.f32 %v3105_v30, %v3049_v38  ;;  %4232 = vmatpush3.bf16.msra.mxu0 %v4416_v63  ;;  %v4419_v30 = vld [vmem:[%s5917_s25 + $0x18] sm:$0xff]   ;;  %v5650_v48 = vld [vmem:[%s5647_s5 + $0x8] sm:$0xff] }
0x17b8   : > { %v3114_v47 = vmul.f32 %v3106_v31, %v3050_v58  ;;  %4233 = vmatprep.subr.bf16.mxu0 %v4417_v44  ;;  %vm3482_vm3 = vcmp.ne.s32.totalorder %v5650_v48, 4294967196 }
0x17b9   : > { %v3115_v23 = vmul.f32 %v3107_v24, %v3051_v19 }
0x17ba   : > { %v3118_v33 = vpack.c.bf16 %v3114_v47, %v3112_v57 }
0x17bb   : > { %v3119_v59 = vpack.c.bf16 %v3115_v23, %v3113_v49  ;;  %4234 = vmatpush3.bf16.msra.mxu0 %v4417_v44 }
0x17bc   : > { %4235 = vmatprep.subr.bf16.mxu0 %v4418_v46 }
0x17bd   : > { %3297 = vmatprep.mubr.bf16.mxu1 %v3119_v59 }
0x17be   : > { %3298 = vmatmul.mubr.bf16.gmra.mrb[48].mxu1 %v3118_v33 }
0x17bf   : > { %4236 = vmatpush3.bf16.msra.mxu0 %v4418_v46 }
0x17c0   : > { %4237 = vmatprep.subr.bf16.mxu0 %v4419_v30 }
0x17c3   : > { %4238 = vmatpush3.bf16.msra.mxu0 %v4419_v30 }
0x1889   : > { %v4093_v4 = vpop.f32.mrb[44].mxu1 }
0x188a   : > { %v4094_v29 = vpop.f32.mrb[45].mxu1 }
0x188b   : > { %v4095_v55 = vadd.f32 %v4094_v29, %v4093_v4  ;;  %v4096_v3 = vpop.f32.mrb[46].mxu1 }
0x188c   : > { %v4097_v5 = vpop.f32.mrb[47].mxu1 }
0x188d   : > { %v3292_v45 = vadd.f32 %v4095_v55, %v3964_v2  ;;  %v4098_v60 = vadd.f32 %v4097_v5, %v4096_v3 }
0x188f   : > { %v3295_v36 = vadd.f32 %v4098_v60, %v3964_v2  ;;  %v3306_v61 = vadd.f32 %v3292_v45, %v5461_v43  ;;  %v3982_v45 = vld [vmem:[%s5868_s17] ss:$0 sm:$0xff] }
0x1891   : > { %v4099_v7 = vpop.f32.mrb[48].mxu1  ;;  %v3312_v1 = vsel %vm752_vm0, %v3306_v61, 0.0  ;;  %v3307_v13 = vadd.f32 %v3295_v36, %v5467_v54 }
0x1892   : > { %v4100_v0 = vpop.f32.mrb[49].mxu1  ;;  %3313 = vadd.xlane.f32.xlu0 %v3312_v1 }
0x1893   : > { %v4101_v17 = vadd.f32 %v4100_v0, %v4099_v7  ;;  %v4102_v14 = vpop.f32.mrb[50].mxu1  ;;  %v3315_v15 = vsel %vm752_vm0, %v3307_v13, 0.0 }
0x1894   : > { %v4103_v27 = vpop.f32.mrb[51].mxu1  ;;  %3316 = vadd.xlane.f32.xlu1 %v3315_v15 }
0x1895   : > { %v3300_v8 = vadd.f32 %v4101_v17, %v3964_v2  ;;  %v4104_v20 = vadd.f32 %v4103_v27, %v4102_v14 }
0x1897   : > { %v3303_v21 = vadd.f32 %v4104_v20, %v3964_v2  ;;  %v3308_v22 = vadd.f32 %v3300_v8, %v5464_v52  ;;  %v3981_v2 = vld [vmem:[%s5867_s16] ss:$0 sm:$0xff] }
0x1899   : > { %v3318_v43 = vsel %vm752_vm0, %v3308_v22, 0.0  ;;  %v3309_v25 = vadd.f32 %v3303_v21, %v5474_v6 }
0x189a   : > { %3319 = vadd.xlane.f32.xlu0 %v3318_v43 }
0x189b   : > { %v3321_v54 = vsel %vm752_vm0, %v3309_v25, 0.0 }
0x189c   : > { %3322 = vadd.xlane.f32.xlu1 %v3321_v54  ;;  %v5672_v54 = vld [vmem:[%s5647_s5 + $0x10] sm:$0xff] }
0x189d   : > { %vm3483_vm6 = vcmp.ne.s32.totalorder %v5672_v54, 4294967196 }
0x191f   : > { %v3314_v28 = vpop.xlane.xlu0 %3313 }
0x1920   : > { %v3324_v50 = vmul.f32 0.015625, %v3314_v28  ;;  %v5676_v28 = vld [vmem:[%s5647_s5] sm:$0xff] }
0x1921   : > { %v3317_v56 = vpop.xlane.xlu1 %3316  ;;  %vm3481_vm4 = vcmp.ne.s32.totalorder %v5676_v28, 4294967196 }
0x1922   : > { %v3328_v53 = vsub.f32 %v3306_v61, %v3324_v50  ;;  %v3325_v62 = vmul.f32 0.015625, %v3317_v56  ;;  %v5679_v50 = vld [vmem:[%s5647_s5 + $0x18] sm:$0xff]  ;;  %s3629_s5 = sshll.u32 %s5665_s21, 4  ;;  %s5736_s5 = int_to_ptr.vmem [resolvable:$true] %s3629_s5 }
0x1923   : > { %vm3484_vm7 = vcmp.ne.s32.totalorder %v5679_v50, 4294967196  ;;  %s4574_s28 = scalar_lea.vmem %s5736_s5, 512  ;;  %p4581_p1 = scmp.lt.s32.totalorder %s5736_s5, %s4579_s30 }
0x1924   : > { %v3329_v35 = vsub.f32 %v3307_v13, %v3325_v62  ;;  %v3332_v37 = vmul.f32 %v3328_v53, %v3328_v53  ;;  %p4575_p12 = scmp.ne.s32.totalorder %s5736_s5, %s4574_s28  ;;  %p4582_p2 = scmp.lt.s32.totalorder %s4580_s1, %s4574_s28 }
0x1926   : > { %v3336_v9 = vsel %vm752_vm0, %v3332_v37, 0.0  ;;  %v3333_v12 = vmul.f32 %v3329_v35, %v3329_v35  ;;  %p4576_p13 = pnand %p4575_p12, %p4856_p5  ;;  %p4583_p3 = por %p4582_p2, %p4581_p1 }
0x1927   : > { %3337 = vadd.xlane.f32.xlu0 %v3336_v9  ;;  %v3320_v52 = vpop.xlane.xlu0 %3319 }
0x1928   : > { %v3326_v39 = vmul.f32 0.015625, %v3320_v52  ;;  %v3339_v40 = vsel %vm752_vm0, %v3333_v12, 0.0  ;;  %p4577_p0 = pneg %p4576_p13 }
0x1929   : > { %3340 = vadd.xlane.f32.xlu1 %v3339_v40  ;;  %v3323_v6 = vpop.xlane.xlu1 %3322 }
0x192a   : > { %v3330_v41 = vsub.f32 %v3308_v22, %v3326_v39  ;;  %v3327_v42 = vmul.f32 0.015625, %v3323_v6  ;;  %p4584_p4 = pnand %p4583_p3, %p4577_p0 }
0x192c   : > { %v3331_v34 = vsub.f32 %v3309_v25, %v3327_v42  ;;  %v3334_v18 = vmul.f32 %v3330_v41, %v3330_v41 }
0x192e   : > { %v3342_v11 = vsel %vm752_vm0, %v3334_v18, 0.0  ;;  %v3335_v26 = vmul.f32 %v3331_v34, %v3331_v34 }
0x192f   : > { %3343 = vadd.xlane.f32.xlu0 %v3342_v11 }
0x1930   : > { %v3345_v16 = vsel %vm752_vm0, %v3335_v26, 0.0 }
0x1931   : > { %3346 = vadd.xlane.f32.xlu1 %v3345_v16 }
0x1942   : > { %3489 = vperm.xlu1 %4327, %v5650_v48  }
0x19b4   : > { %v3338_v32 = vpop.xlane.xlu0 %3337 }
0x19b5   : > { %v3348_v58 = vmul.f32 0.015625, %v3338_v32 }
0x19b6   : > { %v3341_v31 = vpop.xlane.xlu1 %3340 }
0x19b7   : > { %v3352_v38 = vadd.f32 1e-05, %v3348_v58  ;;  %v3349_v19 = vmul.f32 0.015625, %v3341_v31  ;;  %v3990_v31 = vsel %vm3482_vm3, 1.0, %v4699_v10 }
0x19b9   : > { %4548 = vrsqrt.f32 %v3352_v38  ;;  %v3353_v24 = vadd.f32 1e-05, %v3349_v19  ;;  %v3989_v38 = vsel %vm3481_vm4, 1.0, %v4699_v10 }
0x19ba   : > { %v3588_v19 = vsel %vm3561_vm5, %v3989_v38, 0.0 }
0x19bb   : > { %4550 = vrsqrt.f32 %v3353_v24  ;;  %v3991_v24 = vsel %vm3483_vm6, 1.0, %v4699_v10 }
0x19bc   : > { %v3344_v57 = vpop.xlane.xlu0 %3343 }
0x19bd   : > { %v3350_v47 = vmul.f32 0.015625, %v3344_v57 }
0x19be   : > { %v3347_v49 = vpop.xlane.xlu1 %3346 }
0x19bf   : > { %v3354_v23 = vadd.f32 1e-05, %v3350_v47  ;;  %v3351_v33 = vmul.f32 0.015625, %v3347_v49  ;;  %v3591_v47 = vsel %vm3561_vm5, %v3991_v24, 0.0  ;;  %v3992_v49 = vsel %vm3484_vm7, 1.0, %v4699_v10 }
0x19c1   : > { %4552 = vrsqrt.f32 %v3354_v23  ;;  %v3355_v59 = vadd.f32 1e-05, %v3351_v33  ;;  %v3593_v33 = vsel %vm3561_vm5, %v3992_v49, 0.0 }
0x19c2   : > { %v3490_v56 = vpop.permute.xlu1 %3489 }
0x19c3   : > { %v4549_v4 = vpop.eup %4548  ;;  %4554 = vrsqrt.f32 %v3355_v59  ;;  %vm3498_vm1 = vcmp.eq.s32.totalorder %v4993_v51, %v3490_v56 }
0x19c4   : > { %v3360_v29 = vmul.f32 %v4549_v4, %v3328_v53 }
0x19c5   : > { %v4551_v55 = vpop.eup %4550 }
0x19c6   : > { %v3361_v3 = vmul.f32 %v4551_v55, %v3329_v35  ;;  %v3370_v5 = vmul.f32 %v3981_v2, %v3360_v29 }
0x19c8   : > { %v3371_v60 = vmul.f32 %v3981_v2, %v3361_v3  ;;  %v3380_v36 = vadd.f32 %v3982_v45, %v3370_v5 }
0x19ca   : > { %v3381_v61 = vadd.f32 %v3982_v45, %v3371_v60 }
0x19cb   : > { %v4553_v7 = vpop.eup %4552 }
0x19cc   : > { %v3362_v1 = vmul.f32 %v4553_v7, %v3330_v41  ;;  %v3384_v13 = vpack.c.bf16 %v3381_v61, %v3380_v36 }
0x19cd   : > { %v4555_v0 = vpop.eup %4554 }
0x19ce   : > { %v3372_v17 = vmul.f32 %v3981_v2, %v3362_v1  ;;  %v3363_v14 = vmul.f32 %v4555_v0, %v3331_v34  ;;  %4239 = vmatprep.mubr.msk.bf16.mxu0 %vm752_vm0, %v3384_v13 }
0x19d0   : > { %v3373_v15 = vmul.f32 %v3981_v2, %v3363_v14  ;;  %v3382_v27 = vadd.f32 %v3982_v45, %v3372_v17 }
0x19d2   : > { %v3383_v8 = vadd.f32 %v3982_v45, %v3373_v15 }
0x19d4   : > { %v3385_v20 = vpack.c.bf16 %v3383_v8, %v3382_v27 }
0x19d6   : > { %4240 = vmatmul.mubr.msk.bf16.vlgmr.msra.gmra.mrb[68].mxu0 %vm752_vm0, %v3385_v20 }
0x1aa9   : > { %v4241_v21 = vpop.f32.mrb[68].mxu0 }
0x1aaa   : > { %3475 = vst [vmem:[%s5665_s21 + $0x10] sm:$0xff] %v4241_v21  ;;  %v3458_v22 = vpop.f32.mrb[69].mxu0 }
0x1aab   : > { %3473 = vst [vmem:[%s5665_s21] sm:$0xff] %v3458_v22  ;;  %3501 = vmax.xlane.f32.xlu0 %v3458_v22  ;;  %v4242_v43 = vpop.f32.mrb[70].mxu0 }
0x1aac   : > { %3476 = vst [vmem:[%s5665_s21 + $0x18] sm:$0xff] %v4242_v43  ;;  %3507 = vmax.xlane.f32.xlu1 %v4242_v43  ;;  %v3461_v25 = vpop.f32.mrb[71].mxu0 }
0x1aad   : > { %3474 = vst [vmem:[%s5665_s21 + $0x8] sm:$0xff] %v3461_v25  ;;  %v3542_v32 = vsel %vm3498_vm1, %v3461_v25, 0.0 }
0x1aaf   : > { %3505 = vmax.xlane.f32.xlu0 %v4241_v21 }
0x1ab0   : > { %3503 = vmax.xlane.f32.xlu1 %v3461_v25 }
0x1ac1   : > { %3492 = vperm.xlu1 %4327, %v5672_v54  }
0x1ac5   : > { %3486 = vperm.xlu0 %4326, %v5676_v28   ;;  %3495 = vperm.xlu1 %4327, %v5679_v50  }
0x1b38   : > { %v5683_v53 = vpop.xlane.xlu0 %3501 }
0x1b39   : > { %v3509_v62 = vsub.f32 %v3458_v22, %v5683_v53  ;;  %v5686_v35 = vpop.xlane.xlu1 %3507 }
0x1b3a   : > { %v3512_v12 = vsub.f32 %v4242_v43, %v5686_v35 }
0x1b3b   : > { %v3513_v37 = vmul.f32 1.442695, %v3509_v62 }
0x1b3c   : > { %v5688_v9 = vpop.xlane.xlu0 %3505  ;;  %v3519_v42 = vmul.f32 1.442695, %v3512_v12 }
0x1b3d   : > { %4556 = vpow2.f32 %v3513_v37  ;;  %v3511_v52 = vsub.f32 %v4241_v21, %v5688_v9  ;;  %v5692_v39 = vpop.xlane.xlu1 %3503 }
0x1b3e   : > { %v3510_v40 = vsub.f32 %v3461_v25, %v5692_v39 }
0x1b3f   : > { %v3517_v6 = vmul.f32 1.442695, %v3511_v52 }
0x1b40   : > { %v3515_v41 = vmul.f32 1.442695, %v3510_v40 }
0x1b41   : > { %4558 = vpow2.f32 %v3517_v6  ;;  %v3493_v18 = vpop.permute.xlu1 %3492 }
0x1b42   : > { %4560 = vpow2.f32 %v3515_v41  ;;  %vm3499_vm15 = vcmp.eq.s32.totalorder %v4993_v51, %v3493_v18 }
0x1b43   : > { %4562 = vpow2.f32 %v3519_v42  ;;  %v3543_v44 = vsel %vm3499_vm15, %v4241_v21, 0.0 }
0x1b44   : > { %v3487_v16 = vpop.permute.xlu0 %3486 }
0x1b45   : > { %vm3497_vm0 = vcmp.eq.s32.totalorder %v4993_v51, %v3487_v16  ;;  %v3496_v30 = vpop.permute.xlu1 %3495 }
0x1b46   : > { %v3541_v46 = vsel %vm3497_vm0, %v3458_v22, 0.0  ;;  %vm3500_vm2 = vcmp.eq.s32.totalorder %v4993_v51, %v3496_v30  ;;  %v3589_v51 = vsel %vm3561_vm5, %v3990_v31, 0.0 }
0x1b47   : > { %v4557_v34 = vpop.eup %4556  ;;  %v3544_v58 = vsel %vm3500_vm2, %v4242_v43, 0.0  ;;  %v3590_v57 = vadd.f32 %v3589_v51, %v3588_v19 }
0x1b48   : > { %3521 = vadd.xlane.f32.xlu1 %v4557_v34 }
0x1b49   : > { %v3592_v23 = vadd.f32 %v3591_v47, %v3590_v57 }
0x1b4b   : > { %v4559_v11 = vpop.eup %4558  ;;  %v3594_v59 = vadd.f32 %v3593_v33, %v3592_v23 }
0x1b4c   : > { %v4561_v26 = vpop.eup %4560  ;;  %3525 = vadd.xlane.f32.xlu1 %v4559_v11 }
0x1b4d   : > { %3523 = vadd.xlane.f32.xlu0 %v4561_v26  ;;  %v4563_v63 = vpop.eup %4562 }
0x1b50   : > { %3527 = vadd.xlane.f32.xlu1 %v4563_v63 }
0x1b51   : > { %3549 = vadd.xlane.f32.xlu0 %v3543_v44 }
0x1b54   : > { %3545 = vadd.xlane.f32.xlu1 %v3541_v46 }
0x1b58   : > { %3547 = vadd.xlane.f32.xlu1 %v3542_v32 }
0x1b5c   : > { %3551 = vadd.xlane.f32.xlu1 %v3544_v58 }
0x1b60   : > { %3595 = vadd.xlane.f32.xlu1 %v3594_v59 }
0x1bd5   : > { %v3522_v4 = vpop.xlane.xlu1 %3521 }
0x1bd6   : > { %4564 = vlog2.f32 %v3522_v4 }
0x1bd9   : > { %v3526_v2 = vpop.xlane.xlu1 %3525 }
0x1bda   : > { %4566 = vlog2.f32 %v3526_v2  ;;  %v3524_v29 = vpop.xlane.xlu0 %3523 }
0x1bdb   : > { %4568 = vlog2.f32 %v3524_v29 }
0x1bdd   : > { %v3528_v55 = vpop.xlane.xlu1 %3527 }
0x1bde   : > { %4570 = vlog2.f32 %v3528_v55  ;;  %v3550_v14 = vpop.xlane.xlu0 %3549 }
0x1be0   : > { %v4565_v3 = vpop.eup %4564 }
0x1be1   : > { %v3530_v5 = vmul.f32 0.6931472, %v4565_v3  ;;  %v3546_v45 = vpop.xlane.xlu1 %3545 }
0x1be3   : > { %v3537_v60 = vadd.f32 %v3530_v5, %v5683_v53 }
0x1be4   : > { %v4567_v36 = vpop.eup %4566 }
0x1be5   : > { %v4569_v10 = vpop.eup %4568  ;;  %v3534_v61 = vmul.f32 0.6931472, %v4567_v36  ;;  %v3553_v1 = vsub.f32 %v3537_v60, %v3546_v45  ;;  %v3548_v13 = vpop.xlane.xlu1 %3547 }
0x1be6   : > { %v3532_v7 = vmul.f32 0.6931472, %v4569_v10 }
0x1be7   : > { %v3539_v0 = vadd.f32 %v3534_v61, %v5688_v9  ;;  %v3557_v20 = vsel %vm3481_vm4, %v3553_v1, 0.0 }
0x1be8   : > { %v4571_v17 = vpop.eup %4570  ;;  %v3538_v15 = vadd.f32 %v3532_v7, %v5692_v39  ;;  %v3562_v53 = vsel %vm3561_vm5, %v3557_v20, 0.0 }
0x1be9   : > { %v3536_v27 = vmul.f32 0.6931472, %v4571_v17  ;;  %v3555_v8 = vsub.f32 %v3539_v0, %v3550_v14  ;;  %v3552_v56 = vpop.xlane.xlu1 %3551 }
0x1bea   : > { %v3554_v21 = vsub.f32 %v3538_v15, %v3548_v13 }
0x1beb   : > { %v3540_v22 = vadd.f32 %v3536_v27, %v5686_v35  ;;  %v3559_v43 = vsel %vm3483_vm6, %v3555_v8, 0.0 }
0x1bec   : > { %v3558_v25 = vsel %vm3482_vm3, %v3554_v21, 0.0  ;;  %v3565_v9 = vsel %vm3561_vm5, %v3559_v43, 0.0 }
0x1bed   : > { %v3563_v62 = vsel %vm3561_vm5, %v3558_v25, 0.0  ;;  %v3556_v28 = vsub.f32 %v3540_v22, %v3552_v56 }
0x1bee   : > { %v3564_v37 = vadd.f32 %v3563_v62, %v3562_v53 }
0x1bef   : > { %v3560_v35 = vsel %vm3484_vm7, %v3556_v28, 0.0 }
0x1bf0   : > { %v3567_v54 = vsel %vm3561_vm5, %v3560_v35, 0.0  ;;  %v3566_v12 = vadd.f32 %v3565_v9, %v3564_v37 }
0x1bf2   : > { %v3568_v52 = vadd.f32 %v3567_v54, %v3566_v12 }
0x1bf4   : > { %3569 = vadd.xlane.f32.xlu0 %v3568_v52 }
0x1bf5   : > { %4587 = shalt.err (!%p4584_p4)
}
0x1bf6   : > { %s4588_s21 = scalar_lea.hbm %s5742_s23, 512  ;;  %s4592_s0 = scalar_lea.hbm %s5869_s18, 1024 }
0x1bf7   : > { %p4589_p7 = scmp.ne.s32.totalorder %s5742_s23, %s4588_s21  ;;  %p4593_p10 = scmp.lt.u32.totalorder %s5742_s23, %s5869_s18 }
0x1bf8   : > { %p4594_p11 = scmp.lt.u32.totalorder %s4592_s0, %s4588_s21  ;;  %p4596_p13 = scmp.lt.u32.totalorder %s4588_s21, %s5742_s23 }
0x1bf9   : > { %p4590_p8 = pnand %p4589_p7, %p4856_p5 }
0x1bfa   : > { %p4595_p12 = por %p4594_p11, %p4593_p10 }
0x1bfb   : > { %p4591_p9 = pneg %p4590_p8 }
0x1bfc   : > { %p4597_p0 = por %p4596_p13, %p4595_p12 }
0x1bfe   : > { %p4598_p1 = pnand %p4597_p0, %p4591_p9 }
0x1c00   : > { %4601 = shalt.err (!%p4598_p1)
}
0x1c01   : > { %s4707_s28 = smov 128   ;;  %s4708_s1 = smov 8   ;;  %v3596_v48 = vpop.xlane.xlu1 %3595 }
0x1c02   : > { %4247 = dma.vmem_to_hbm [thread:$0]  (%p4856_p5), %s5736_s5, 512, %s5742_s23, %s3607_s3, %s4707_s28, %s4707_s28, %s4708_s1   ;;  %v3597_v50 = vrot.slane %v3596_v48, 4 }
0x1c03   : > { %s669_s5 = scalar_lea.vmem [#allocation6], %s5662_s27  ;;  %s663_s3 = scalar_lea.vmem [#allocation4], %s5662_s27 }
0x1c04   : > { %v3598_v39 = vadd.f32 %v3597_v50, %v3596_v48  ;;  %s3658_s23 = sshll.u32 %s669_s5, 4  ;;  %s3645_s21 = sshll.u32 %s663_s3, 4  ;;  %s5772_s23 = int_to_ptr.vmem [resolvable:$true] %s3658_s23  ;;  %s5774_s21 = int_to_ptr.vmem [resolvable:$true] %s3645_s21 }
0x1c05   : > { %s3611_s24 = sand.u32 1, %s4837_s2   ;;  %s3997_s26 = sshll.u32 %s4837_s2, 4 }
0x1c06   : > { %v3599_v6 = vrot.slane %v3598_v39, 2  ;;  %s5779_s28 = scalar_lea.hbm %s5870_s19, %s3997_s26  ;;  %s5784_s7 = scalar_lea.hbm %s5871_s20, %s3997_s26 }
0x1c07   : > { %s5786_s2 = scalar_lea.sflag [#allocation5], %s3611_s24  ;;  %s4602_s8 = scalar_lea.vmem %s5774_s21, 16 }
0x1c08   : > { %v3600_v34 = vadd.f32 %v3599_v6, %v3598_v39  ;;  %p4603_p2 = scmp.ne.s32.totalorder %s5774_s21, %s4602_s8  ;;  %s4709_s29 = smov [#allocation4]  }
0x1c09   : > { %s4606_s30 = sshll.u32 %s4709_s29, 4  ;;  %s4607_s30 = int_to_ptr.vmem [resolvable:$false] %s4606_s30 }
0x1c0a   : > { %v3601_v26 = vrot.slane %v3600_v34, 1  ;;  %p4604_p3 = pnand %p4603_p2, %p4856_p5  ;;  %p4609_p7 = scmp.lt.s32.totalorder %s5774_s21, %s4607_s30 }
0x1c0c   : > { %v3602_v44 = vadd.f32 %v3601_v26, %v3600_v34  ;;  %p4605_p4 = pneg %p4604_p3 }
0x1c81   : > { %v3570_v40 = vpop.xlane.xlu0 %3569 }
0x1c82   : > { %v3571_v41 = vrot.slane %v3570_v40, 4 }
0x1c84   : > { %v3572_v42 = vadd.f32 %v3571_v41, %v3570_v40 }
0x1c86   : > { %v3573_v18 = vrot.slane %v3572_v42, 2 }
0x1c88   : > { %v3574_v11 = vadd.f32 %v3573_v18, %v3572_v42 }
0x1c8a   : > { %v3575_v16 = vrot.slane %v3574_v11, 1 }
0x1c8c   : > { %v3576_v63 = vadd.f32 %v3575_v16, %v3574_v11 }
0x1c8e   : > { %4243 = vpush %v3576_v63 }
0x1c8f   : > { %4245 = vpush %v3602_v44 }
0x1cbf   : > { %s4244_s0 = spop %4243 }
0x1cc0   : > { %v3578_v46 = vstv %s4244_s0  ;;  %s4246_s1 = spop %4245  ;;  %s4608_s0 = scalar_lea.vmem %s4607_s30, 32 }
0x1cc1   : > { %3579 = vst [vmem:[%s663_s3] sm:$0x1] %v3578_v46  ;;  %v3604_v30 = vstv %s4246_s1  ;;  %p4610_p8 = scmp.lt.s32.totalorder %s4608_s0, %s4602_s8 }
0x1cc2   : > { %3605 = vst [vmem:[%s669_s5] sm:$0x1] %v3604_v30 }
0x1cc3   : > { %p4611_p9 = por %p4610_p8, %p4609_p7 }
0x1cc5   : > { %p4612_p10 = pnand %p4611_p9, %p4605_p4 }
0x1cc7   : > { %4615 = shalt.err (!%p4612_p10)
}
0x1cc8   : > { %s4616_s6 = scalar_lea.hbm %s5779_s28, 16  ;;  %s4620_s24 = scalar_lea.hbm %s5870_s19, 32 }
0x1cc9   : > { %p4617_p11 = scmp.ne.s32.totalorder %s5779_s28, %s4616_s6  ;;  %p4621_p0 = scmp.lt.u32.totalorder %s5779_s28, %s5870_s19 }
0x1cca   : > { %p4622_p1 = scmp.lt.u32.totalorder %s4620_s24, %s4616_s6  ;;  %p4624_p3 = scmp.lt.u32.totalorder %s4616_s6, %s5779_s28 }
0x1ccb   : > { %p4618_p12 = pnand %p4617_p11, %p4856_p5 }
0x1ccc   : > { %p4623_p2 = por %p4622_p1, %p4621_p0 }
0x1ccd   : > { %p4619_p13 = pneg %p4618_p12 }
0x1cce   : > { %p4625_p4 = por %p4624_p3, %p4623_p2 }
0x1cd0   : > { %p4626_p7 = pnand %p4625_p4, %p4619_p13 }
0x1cd2   : > { %4629 = shalt.err (!%p4626_p7)
}
0x1cd3   : > { %4248 = dma.vmem_to_hbm [thread:$0]  (%p4856_p5), %s5774_s21, 16, %s5779_s28, %s5786_s2  }
0x1cd4   : > { %s4630_s8 = scalar_lea.vmem %s5772_s23, 16  ;;  %s4710_s27 = smov [#allocation6]  }
0x1cd5   : > { %p4631_p8 = scmp.ne.s32.totalorder %s5772_s23, %s4630_s8  ;;  %s4634_s29 = sshll.u32 %s4710_s27, 4  ;;  %s4635_s29 = int_to_ptr.vmem [resolvable:$false] %s4634_s29 }
0x1cd6   : > { %s4636_s30 = scalar_lea.vmem %s4635_s29, 32  ;;  %p4637_p11 = scmp.lt.s32.totalorder %s5772_s23, %s4635_s29 }
0x1cd7   : > { %p4632_p9 = pnand %p4631_p8, %p4856_p5  ;;  %p4638_p12 = scmp.lt.s32.totalorder %s4636_s30, %s4630_s8 }
0x1cd9   : > { %p4633_p10 = pneg %p4632_p9  ;;  %p4639_p13 = por %p4638_p12, %p4637_p11 }
0x1cdb   : > { %p4640_p0 = pnand %p4639_p13, %p4633_p10 }
0x1cdd   : > { %4643 = shalt.err (!%p4640_p0)
}
0x1cde   : > { %s4644_s21 = scalar_lea.hbm %s5784_s7, 16  ;;  %s4648_s6 = scalar_lea.hbm %s5871_s20, 32 }
0x1cdf   : > { %p4645_p1 = scmp.ne.s32.totalorder %s5784_s7, %s4644_s21  ;;  %p4649_p4 = scmp.lt.u32.totalorder %s5784_s7, %s5871_s20 }
0x1ce0   : > { %p4650_p7 = scmp.lt.u32.totalorder %s4648_s6, %s4644_s21  ;;  %p4652_p9 = scmp.lt.u32.totalorder %s4644_s21, %s5784_s7 }
0x1ce1   : > { %p4646_p2 = pnand %p4645_p1, %p4856_p5 }
0x1ce2   : > { %p4651_p8 = por %p4650_p7, %p4649_p4 }
0x1ce3   : > { %p4647_p3 = pneg %p4646_p2 }
0x1ce4   : > { %p4653_p10 = por %p4652_p9, %p4651_p8 }
0x1ce6   : > { %p4654_p11 = pnand %p4653_p10, %p4647_p3 }
0x1ce8   : > { %4657 = shalt.err (!%p4654_p11)
}
0x1ce9   : > { %4249 = dma.vmem_to_hbm [thread:$0]  (%p4856_p5), %s5772_s23, 16, %s5784_s7, %s5786_s2  }
0x1cea PF: > { %s5919_s24 = sld [smem:[#allocation11_spill]]  ;;  %s5920_s26 = sld [smem:[#allocation9_spill]] }
0x1cf0   : > { %p4263_p12 = scmp.ge.s32.totalorder %s5919_s24, 2  ;;  %s3670_s8 = sand.u32 1, %s5920_s26  }
0x1cf1   : > { %s3671_s27 = scalar_lea.sflag [#allocation3], %s3670_s8 }
0x1cf2   : > { %p4254_p13 = pnand %p4263_p12, %p4860_p6 }
0x1cf4   : > { %4675 = dma.done.wait (!%p4254_p13), %s3671_s27, 512  }
0x1cf5   : > { %4677 = vsyncadd (!%p4254_p13), %s3671_s27, 4294966784  ;;  %s5922_s29 = sadd.s32 4294967294, %s5919_s24  }
0x1cf6   : > { %s3679_s30 = sand.u32 1, %s5922_s29  }
0x1cf7   : > { %s3680_s21 = scalar_lea.sflag [#allocation5], %s3679_s30 }
0x1cf8   : > { %4679 = dma.done.wait (!%p4254_p13), %s3680_s21, 32  }
0x1cf9   : > { %4681 = vsyncadd (!%p4254_p13), %s3680_s21, 4294967264  ;;  %s5923_s24 = sld [smem:[#allocation12_spill]]  ;;  %s5924_s7 = sld [smem:[#allocation10_spill]] }
0x1cfa   : > { %s5925_s23 = sld [smem:[#allocation13_spill]]  ;;  %s5926_s1 = smov %s4688_s22 }
0x1cff   : > { %p34_p5 = scmp.ge.s32.totalorder %s5923_s24, 4   ;;  %s5927_s22 = smov %s5924_s7 }
0x1d01   :  { %36 = sbr.rel (!%p34_p5) target bundleno = 15 (0xf), region = 177 }
0x1d08   :  { %3692 = vsyncpa [#allocation3], 1 }
0x1d09   :  { %3694 = vsyncpa [#allocation3 + $0x1], 1 }
0x1d0a   :  { %3695 = vsyncpa [#allocation5], 1 }
0x1d0b   :  { %3697 = vsyncpa [#allocation5 + $0x1], 1 }

</bundles_post_ra>
